<compile_context>
chip_gen: v5e
topology: v5e:2x2
jax: 0.10.0
libtpu: 0.0.40
codegen_flags: <defaults>
</compile_context>

<pallas_src>
import jax
import jax.numpy as jnp
from jax.experimental import pallas as pl
from jax.experimental.pallas import tpu as pltpu

# Matmul operand dtype (accumulation is always f32).  bf16 doubles MXU
# throughput on v6e/v7x; set to jnp.float32 for bit-exact f32 numerics.
MXU_DTYPE = jnp.bfloat16


def _round_up(x, m):
    return ((x + m - 1) // m) * m


# ----------------------------------------------------------------------------
# Fused Pallas kernel: one grid step == one HeteroConv(GATv2) layer.
# ----------------------------------------------------------------------------
def _make_fused_kernel(node_types, edge_types, src_groups, dst_groups,
                       h_pad, n_rows, alpha_lanes):
    n_nt = len(node_types)
    n_et = len(edge_types)
    nt_index = {nt: i for i, nt in enumerate(node_types)}
    dst_of = [nt_index[et[2]] for et in edge_types]
    chem_i = nt_index["Chemical"]
    assert chem_i in dst_of, "'Chemical' must be a destination of some edge type"

    n_sg, n_dg = len(src_groups), len(dst_groups)
    # edge -> (group index, slot within group) for the stacked weight matmuls.
    src_slot, dst_slot = {}, {}
    for gi, (_, members) in enumerate(src_groups):
        for slot, e in enumerate(members):
            src_slot[e] = (gi, slot)
    for gi, (_, members) in enumerate(dst_groups):
        for slot, e in enumerate(members):
            dst_slot[e] = (gi, slot)

    def kernel(x_ref, adj_ref, *rest):
        wl_refs = rest[:n_sg]
        wr_refs = rest[n_sg:n_sg + n_dg]
        (att_ref, bias_ref, sel_ref, pw_ref, pb_ref,
         pred_ref, alpha_ref) = rest[n_sg + n_dg:]

        # --- stacked linear transforms: one MXU dot per (node type, side) ----
        # Wl of edges sharing a source type (resp. Wr sharing a destination
        # type) are packed side-by-side -> 256-wide operands on v6e/v7x.
        z_src_all = []
        for (t, _members), w_ref in zip(src_groups, wl_refs):
            z_src_all.append(jnp.dot(x_ref[t], w_ref[0],
                                     preferred_element_type=jnp.float32))
        z_dst_all = []
        for (t, _members), w_ref in zip(dst_groups, wr_refs):
            z_dst_all.append(jnp.dot(x_ref[t], w_ref[0],
                                     preferred_element_type=jnp.float32))

        alphas, z_srcs = [], []
        for e in range(n_et):
            g_s, p_s = src_slot[e]
            z_src = z_src_all[g_s][:, p_s * h_pad:(p_s + 1) * h_pad]  # (n_rows, H)
            g_d, p_d = dst_slot[e]
            z_dst = z_dst_all[g_d][:, p_d * h_pad:(p_d + 1) * h_pad]  # (n_rows, H)

            # GATv2 score: e[i, j] = att . leaky_relu(z_dst[i] + z_src[j], 0.2)
            # Broadcast temp is only (n_rows, n_rows, H) f32 now (~32 vregs).
            s = z_dst[:, None, :] + z_src[None, :, :]
            s = jnp.where(s > 0, s, 0.2 * s)
            att = att_ref[e]                                   # (1, H) f32
            scores = jnp.sum(s * att[None, :, :], axis=-1)     # (n_rows, n_rows)

            # Masked softmax over source nodes.  Row-max is taken over existing
            # edges only (mask BEFORE the max) — matches the reference and keeps
            # exp() well conditioned even if a non-edge score is large.
            adj = adj_ref[e]                                   # (n_rows, n_rows)
            scores = jnp.where(adj > 0.0, scores, -1e30)
            scores = scores - jnp.max(scores, axis=-1, keepdims=True)
            p = jnp.exp(scores) * adj
            denom = jnp.sum(p, axis=-1, keepdims=True)
            inv = pl.reciprocal(denom, approx=True)            # EUP slot
            alpha = p * jnp.where(denom > 0.0, inv, 0.0)

            # Lane-dense 128-wide store; compute stayed at n_rows lanes.
            if alpha_lanes > n_rows:
                alpha_ref[e] = jnp.concatenate(
                    [alpha, jnp.zeros((n_rows, alpha_lanes - n_rows),
                                      jnp.float32)], axis=-1)
            else:
                alpha_ref[e] = alpha

            alphas.append(alpha)
            z_srcs.append(z_src)

        # Message aggregation (HeteroConv aggr='sum'), the chemical_label_task
        # row gather (one-hot matmul) and the prediction Linear only matter on
        # the last layer (x_dict is never fed forward in the reference) ->
        # skip them entirely on non-final grid steps.
        @pl.when(pl.program_id(0) == pl.num_programs(0) - 1)
        def _():
            agg = [None] * n_nt
            for e in range(n_et):
                out_e = jnp.dot(alphas[e].astype(MXU_DTYPE),
                                z_srcs[e].astype(MXU_DTYPE),
                                preferred_element_type=jnp.float32) + bias_ref[e]
                d_i = dst_of[e]
                agg[d_i] = out_e if agg[d_i] is None else agg[d_i] + out_e
            # Norms are overwritten in the reference forward and dropout is
            # identity in eval mode, so h == aggregated conv output.
            gathered = jnp.dot(sel_ref[...].astype(MXU_DTYPE),
                               agg[chem_i].astype(MXU_DTYPE),
                               preferred_element_type=jnp.float32)
            pred_ref[0] = (jnp.dot(gathered.astype(MXU_DTYPE), pw_ref[...],
                                   preferred_element_type=jnp.float32)
                           + pb_ref[...])

    return kernel


# ----------------------------------------------------------------------------
# Forward wrapper: pads/packs operands, launches the single fused pallas_call.
# ----------------------------------------------------------------------------
def hetero_gnn_forward(params, x_dict, adj_dict, chemical_label_task,
                       node_types, edge_types):
    num_layers = len(params["convs"])
    hidden = params["pred_w"].shape[0]
    out_channels = params["pred_w"].shape[1]
    n_nt, n_et = len(node_types), len(edge_types)
    nt_index = {nt: i for i, nt in enumerate(node_types)}
    node_counts = {nt: int(x_dict[nt].shape[0]) for nt in node_types}
    in_dims = {nt: int(x_dict[nt].shape[1]) for nt in node_types}

    # Compute-side padding: sublane / bf16-tile multiples only.  The 128-lane
    # padding is applied ONLY to the alpha output store (lane-dense writeback).
    n_rows = _round_up(max(node_counts.values()), 16)   # node axis (src & dst)
    f_pad = _round_up(max(in_dims.values()), 128)
    h_pad = _round_up(hidden, 128)
    num_tasks = int(chemical_label_task.shape[0])
    t_pad = _round_up(num_tasks, 8)
    out_pad = _round_up(out_channels, 128)
    alpha_lanes = _round_up(n_rows, 128)                # alpha store lanes

    # ---- group edge types sharing a source (resp. destination) node type ----
    src_groups, dst_groups = [], []   # list of [node_type_index, [edge idx...]]
    for e, et in enumerate(edge_types):
        s = nt_index[et[0]]
        for g in src_groups:
            if g[0] == s:
                g[1].append(e)
                break
        else:
            src_groups.append([s, [e]])
        d = nt_index[et[2]]
        for g in dst_groups:
            if g[0] == d:
                g[1].append(e)
                break
        else:
            dst_groups.append([d, [e]])
    src_groups = [(g[0], tuple(g[1])) for g in src_groups]
    dst_groups = [(g[0], tuple(g[1])) for g in dst_groups]

    # ---- pack / zero-pad operands ------------------------------------------
    x_packed = jnp.zeros((n_nt, n_rows, f_pad), MXU_DTYPE)
    for i, nt in enumerate(node_types):
        x = x_dict[nt]
        x_packed = x_packed.at[i, :x.shape[0], :x.shape[1]].set(x.astype(MXU_DTYPE))

    adj_packed = jnp.zeros((n_et, n_rows, n_rows), jnp.float32)
    for e, et in enumerate(edge_types):
        a = adj_dict[et]
        adj_packed = adj_packed.at[e, :a.shape[0], :a.shape[1]].set(
            a.astype(jnp.float32))

    # Stacked Wl (by source type) / Wr (by destination type), per layer.
    wl_groups = []
    for _, members in src_groups:
        w = jnp.zeros((num_layers, f_pad, len(members) * h_pad), MXU_DTYPE)
        for l in range(num_layers):
            for slot, e in enumerate(members):
                wm = params["convs"][l][edge_types[e]]["wl"]
                w = w.at[l, :wm.shape[0],
                         slot * h_pad:slot * h_pad + hidden].set(wm.astype(MXU_DTYPE))
        wl_groups.append(w)
    wr_groups = []
    for _, members in dst_groups:
        w = jnp.zeros((num_layers, f_pad, len(members) * h_pad), MXU_DTYPE)
        for l in range(num_layers):
            for slot, e in enumerate(members):
                wm = params["convs"][l][edge_types[e]]["wr"]
                w = w.at[l, :wm.shape[0],
                         slot * h_pad:slot * h_pad + hidden].set(wm.astype(MXU_DTYPE))
        wr_groups.append(w)

    att = jnp.zeros((num_layers * n_et, 1, h_pad), jnp.float32)
    bias = jnp.zeros((num_layers * n_et, 1, h_pad), jnp.float32)
    for l in range(num_layers):
        for e, et in enumerate(edge_types):
            pr = params["convs"][l][et]
            idx = l * n_et + e
            att = att.at[idx, :, :hidden].set(pr["att"])
            bias = bias.at[idx, :, :hidden].set(pr["bias"])

    sel = jnp.zeros((t_pad, n_rows), jnp.float32)
    sel = sel.at[:num_tasks].set(
        jax.nn.one_hot(chemical_label_task, n_rows, dtype=jnp.float32))

    pred_w = jnp.zeros((h_pad, out_pad), MXU_DTYPE)
    pred_w = pred_w.at[:hidden, :out_channels].set(
        params["pred_w"].astype(MXU_DTYPE))
    pred_b = jnp.zeros((1, out_pad), jnp.float32)
    pred_b = pred_b.at[:, :out_channels].set(params["pred_b"])

    kernel = _make_fused_kernel(node_types, edge_types, src_groups, dst_groups,
                                h_pad, n_rows, alpha_lanes)

    in_specs = [
        pl.BlockSpec((n_nt, n_rows, f_pad), lambda l: (0, 0, 0)),     # x (resident)
        pl.BlockSpec((n_et, n_rows, n_rows), lambda l: (0, 0, 0)),    # adj (resident)
    ]
    for _, members in src_groups:                                     # Wl per layer
        in_specs.append(pl.BlockSpec((1, f_pad, len(members) * h_pad),
                                     lambda l: (l, 0, 0)))
    for _, members in dst_groups:                                     # Wr per layer
        in_specs.append(pl.BlockSpec((1, f_pad, len(members) * h_pad),
                                     lambda l: (l, 0, 0)))
    in_specs += [
        pl.BlockSpec((n_et, 1, h_pad), lambda l: (l, 0, 0)),          # att per layer
        pl.BlockSpec((n_et, 1, h_pad), lambda l: (l, 0, 0)),          # bias per layer
        pl.BlockSpec((t_pad, n_rows), lambda l: (0, 0)),              # one-hot gather
        pl.BlockSpec((h_pad, out_pad), lambda l: (0, 0)),             # pred W
        pl.BlockSpec((1, out_pad), lambda l: (0, 0)),                 # pred b
    ]

    pred_all, alpha_all = pl.pallas_call(
        kernel,
        grid=(num_layers,),
        in_specs=in_specs,
        out_specs=(
            pl.BlockSpec((1, t_pad, out_pad), lambda l: (l, 0, 0)),       # pred
            pl.BlockSpec((n_et, n_rows, alpha_lanes), lambda l: (l, 0, 0)),  # alphas
        ),
        out_shape=(
            jax.ShapeDtypeStruct((num_layers, t_pad, out_pad), jnp.float32),
            jax.ShapeDtypeStruct((num_layers * n_et, n_rows, alpha_lanes),
                                 jnp.float32),
        ),
        compiler_params=pltpu.CompilerParams(
            # Layers are independent.  On v7x swap to pltpu.CORE_PARALLEL (or
            # pl.core_map over create_tensorcore_mesh) to pin the two layers on
            # the two TensorCores; "parallel" is kept here for portability.
            dimension_semantics=("parallel",),
            # Few-MiB live footprint; 32 MiB scoped limit is safe on v5e/v6e
            # (128 MiB physical) and v7x (64 MiB physical).
            vmem_limit_bytes=32 * 1024 * 1024,
        ),
    )(x_packed, adj_packed, *wl_groups, *wr_groups, att, bias, sel,
      pred_w, pred_b)

    # Only the last layer's 'Chemical' output feeds the prediction head
    # (x_dict is never updated in the reference forward).
    pred = pred_all[num_layers - 1, :num_tasks, :out_channels]
    total_att = []
    for l in range(num_layers):
        att_d = {}
        for e, et in enumerate(edge_types):
            nd, ns = node_counts[et[2]], node_counts[et[0]]
            att_d[et] = alpha_all[l * n_et + e, :nd, :ns]
        total_att.append(att_d)
    return pred, total_att


# ----------------------------------------------------------------------------
# Deterministic parameter init (natural, unpadded shapes).
# ----------------------------------------------------------------------------
def init_params(key, in_dims, hidden, out_channels, num_layers, edge_types):
    cnt = [0]

    def normal(shape, scale=0.1):
        cnt[0] += 1
        k = jax.random.fold_in(key, cnt[0])
        return scale * jax.random.normal(k, shape, dtype=jnp.float32)

    params = {"convs": []}
    for _ in range(num_layers):
        layer_p = {}
        for edge_type in edge_types:
            src, _, dst = edge_type
            layer_p[edge_type] = {
                "wl": normal((in_dims[src], hidden)),   # lin_l (source features)
                "wr": normal((in_dims[dst], hidden)),   # lin_r (target features)
                "att": normal((1, hidden)),
                "bias": jnp.zeros((1, hidden), jnp.float32),
            }
        params["convs"].append(layer_p)
    params["pred_w"] = normal((hidden, out_channels))
    params["pred_b"] = jnp.zeros((1, out_channels), jnp.float32)
    return params


# ----------------------------------------------------------------------------
# Pure-JAX f32 reference (mirrors the PyTorch module's forward).
# ----------------------------------------------------------------------------
def reference_forward(params, x_dict, adj_dict, task, edge_types):
    num_layers = len(params["convs"])
    total_att, h = [], None
    for l in range(num_layers):
        outs, att_d = {}, {}
        for et in edge_types:
            src, _, dst = et
            p = params["convs"][l][et]
            zs = x_dict[src] @ p["wl"]
            zd = x_dict[dst] @ p["wr"]
            s = zd[:, None, :] + zs[None, :, :]
            s = jnp.where(s > 0, s, 0.2 * s)
            e = jnp.sum(s * p["att"][None, :, :], axis=-1)
            adj = adj_dict[et]
            e = jnp.where(adj > 0.5, e, -1e30)
            e = e - jnp.max(e, axis=-1, keepdims=True)
            pe = jnp.exp(e) * adj
            den = jnp.sum(pe, axis=-1, keepdims=True)
            alpha = jnp.where(den > 0, pe / den, 0.0)
            att_d[et] = alpha
            outs.setdefault(dst, []).append(alpha @ zs + p["bias"])
        total_att.append(att_d)
        h = {k: sum(v) for k, v in outs.items()}   # x_dict is NOT fed forward
    pred = h["Chemical"][task] @ params["pred_w"] + params["pred_b"]
    return pred, total_att


# ----------------------------------------------------------------------------
if __name__ == "__main__":
    key = jax.random.PRNGKey(0)

    NODE_TYPES = ("Chemical", "Gene", "Assay")
    NODE_COUNTS = {"Chemical": 16, "Gene": 16, "Assay": 8}
    IN_DIMS = {"Chemical": 16, "Gene": 12, "Assay": 8}
    HIDDEN = 32
    OUT_CHANNELS = 8
    NUM_LAYERS = 2
    EDGE_TYPES = (
        ("Chemical", "chem_gene", "Gene"),
        ("Gene", "gene_chem", "Chemical"),
        ("Chemical", "chem_assay", "Assay"),
        ("Assay", "assay_chem", "Chemical"),
    )

    # Node features.
    x_dict = {}
    for i, nt in enumerate(NODE_TYPES):
        x_dict[nt] = jax.random.normal(jax.random.fold_in(key, 100 + i),
                                       (NODE_COUNTS[nt], IN_DIMS[nt]),
                                       dtype=jnp.float32)

    # Dense adjacency masks adj[dst, src].
    adj_dict = {}
    for i, et in enumerate(EDGE_TYPES):
        src, _, dst = et
        adj_dict[et] = jax.random.bernoulli(
            jax.random.fold_in(key, 200 + i), 0.35,
            (NODE_COUNTS[dst], NODE_COUNTS[src])).astype(jnp.float32)

    chemical_label_task = jnp.array([0, 3, 7, 10], dtype=jnp.int32)

    params = init_params(key, IN_DIMS, HIDDEN, OUT_CHANNELS, NUM_LAYERS,
                         EDGE_TYPES)

    pred, total_att = hetero_gnn_forward(params, x_dict, adj_dict,
                                         chemical_label_task,
                                         NODE_TYPES, EDGE_TYPES)
    jax.block_until_ready(pred)
    for att_d in total_att:
        for a in att_d.values():
            jax.block_until_ready(a)

    assert pred.shape == (chemical_label_task.shape[0], OUT_CHANNELS)

    # Sanity check vs a pure-JAX f32 reference (kernel matmuls are bf16,
    # softmax reciprocal is the approx EUP path).
    ref_pred, ref_att = reference_forward(params, x_dict, adj_dict,
                                          chemical_label_task, EDGE_TYPES)
    err_pred = float(jnp.max(jnp.abs(pred - ref_pred)))
    err_att = max(float(jnp.max(jnp.abs(total_att[l][et] - ref_att[l][et])))
                  for l in range(NUM_LAYERS) for et in EDGE_TYPES)
    assert err_pred < 5e-2 and err_att < 5e-2, (err_pred, err_att)

    print("KERNEL_OK")
</pallas_src>

<mosaic_0001>
module attributes {stable_mosaic.version = 11 : i64} {
  func.func @kernel(%arg0: i32, %arg1: memref<3x16x128xbf16, #tpu.memory_space<vmem>>, %arg2: memref<4x16x16xf32, #tpu.memory_space<vmem>>, %arg3: memref<1x128x256xbf16, #tpu.memory_space<vmem>>, %arg4: memref<1x128x128xbf16, #tpu.memory_space<vmem>>, %arg5: memref<1x128x128xbf16, #tpu.memory_space<vmem>>, %arg6: memref<1x128x128xbf16, #tpu.memory_space<vmem>>, %arg7: memref<1x128x256xbf16, #tpu.memory_space<vmem>>, %arg8: memref<1x128x128xbf16, #tpu.memory_space<vmem>>, %arg9: memref<4x1x128xf32, #tpu.memory_space<vmem>>, %arg10: memref<4x1x128xf32, #tpu.memory_space<vmem>>, %arg11: memref<8x16xf32, #tpu.memory_space<vmem>>, %arg12: memref<128x128xbf16, #tpu.memory_space<vmem>>, %arg13: memref<1x128xf32, #tpu.memory_space<vmem>>, %arg14: memref<1x8x128xf32, #tpu.memory_space<vmem>>, %arg15: memref<4x16x128xf32, #tpu.memory_space<vmem>>) attributes {dimension_semantics = [#tpu.dimension_semantics<parallel>], iteration_bounds = array<i64: 2>, scalar_prefetch = 0 : i64, scratch_operands = 0 : i64, tpu.core_type = #tpu.core_type<tc>, window_params = [{pipeline_mode = #tpu.pipeline_mode<synchronous>, transform_indices = @transform_0, window_bounds = array<i64: 3, 16, 128>}, {pipeline_mode = #tpu.pipeline_mode<synchronous>, transform_indices = @transform_1, window_bounds = array<i64: 4, 16, 16>}, {transform_indices = @transform_2, window_bounds = array<i64: 1, 128, 256>}, {transform_indices = @transform_3, window_bounds = array<i64: 1, 128, 128>}, {transform_indices = @transform_4, window_bounds = array<i64: 1, 128, 128>}, {transform_indices = @transform_5, window_bounds = array<i64: 1, 128, 128>}, {transform_indices = @transform_6, window_bounds = array<i64: 1, 128, 256>}, {transform_indices = @transform_7, window_bounds = array<i64: 1, 128, 128>}, {transform_indices = @transform_8, window_bounds = array<i64: 4, 1, 128>}, {transform_indices = @transform_9, window_bounds = array<i64: 4, 1, 128>}, {pipeline_mode = #tpu.pipeline_mode<synchronous>, transform_indices = @transform_10, window_bounds = array<i64: 8, 16>}, {pipeline_mode = #tpu.pipeline_mode<synchronous>, transform_indices = @transform_11, window_bounds = array<i64: 128, 128>}, {pipeline_mode = #tpu.pipeline_mode<synchronous>, transform_indices = @transform_12, window_bounds = array<i64: 1, 128>}, {transform_indices = @transform_13, window_bounds = array<i64: 1, 8, 128>}, {transform_indices = @transform_14, window_bounds = array<i64: 4, 16, 128>}]} {
    %c0 = arith.constant 0 : index
    %c0_0 = arith.constant 0 : index
    %c0_1 = arith.constant 0 : index
    %0 = vector.load %arg1[%c0, %c0_0, %c0_1] : memref<3x16x128xbf16, #tpu.memory_space<vmem>>, vector<1x16x128xbf16>
    %1 = vector.shape_cast %0 : vector<1x16x128xbf16> to vector<16x128xbf16>
    %c0_2 = arith.constant 0 : index
    %c0_3 = arith.constant 0 : index
    %c0_4 = arith.constant 0 : index
    %2 = vector.load %arg3[%c0_2, %c0_3, %c0_4] : memref<1x128x256xbf16, #tpu.memory_space<vmem>>, vector<1x128x256xbf16>
    %3 = vector.shape_cast %2 : vector<1x128x256xbf16> to vector<128x256xbf16>
    %cst = arith.constant dense<0.000000e+00> : vector<16x256xf32>
    %4 = tpu.matmul %1, %3, %cst {dimension_numbers = #tpu.dot_dimension_numbers<[1], [0], [0], [1], [0, 0, 1, 1], [], []>} : vector<16x128xbf16>, vector<128x256xbf16>, vector<16x256xf32> -> vector<16x256xf32>
    %c1 = arith.constant 1 : index
    %c0_5 = arith.constant 0 : index
    %c0_6 = arith.constant 0 : index
    %5 = vector.load %arg1[%c1, %c0_5, %c0_6] : memref<3x16x128xbf16, #tpu.memory_space<vmem>>, vector<1x16x128xbf16>
    %6 = vector.shape_cast %5 : vector<1x16x128xbf16> to vector<16x128xbf16>
    %c0_7 = arith.constant 0 : index
    %c0_8 = arith.constant 0 : index
    %c0_9 = arith.constant 0 : index
    %7 = vector.load %arg4[%c0_7, %c0_8, %c0_9] : memref<1x128x128xbf16, #tpu.memory_space<vmem>>, vector<1x128x128xbf16>
    %8 = vector.shape_cast %7 : vector<1x128x128xbf16> to vector<128x128xbf16>
    %cst_10 = arith.constant dense<0.000000e+00> : vector<16x128xf32>
    %9 = tpu.matmul %6, %8, %cst_10 {dimension_numbers = #tpu.dot_dimension_numbers<[1], [0], [0], [1], [0, 0, 1, 1], [], []>} : vector<16x128xbf16>, vector<128x128xbf16>, vector<16x128xf32> -> vector<16x128xf32>
    %c2 = arith.constant 2 : index
    %c0_11 = arith.constant 0 : index
    %c0_12 = arith.constant 0 : index
    %10 = vector.load %arg1[%c2, %c0_11, %c0_12] : memref<3x16x128xbf16, #tpu.memory_space<vmem>>, vector<1x16x128xbf16>
    %11 = vector.shape_cast %10 : vector<1x16x128xbf16> to vector<16x128xbf16>
    %c0_13 = arith.constant 0 : index
    %c0_14 = arith.constant 0 : index
    %c0_15 = arith.constant 0 : index
    %12 = vector.load %arg5[%c0_13, %c0_14, %c0_15] : memref<1x128x128xbf16, #tpu.memory_space<vmem>>, vector<1x128x128xbf16>
    %13 = vector.shape_cast %12 : vector<1x128x128xbf16> to vector<128x128xbf16>
    %cst_16 = arith.constant dense<0.000000e+00> : vector<16x128xf32>
    %14 = tpu.matmul %11, %13, %cst_16 {dimension_numbers = #tpu.dot_dimension_numbers<[1], [0], [0], [1], [0, 0, 1, 1], [], []>} : vector<16x128xbf16>, vector<128x128xbf16>, vector<16x128xf32> -> vector<16x128xf32>
    %c1_17 = arith.constant 1 : index
    %c0_18 = arith.constant 0 : index
    %c0_19 = arith.constant 0 : index
    %15 = vector.load %arg1[%c1_17, %c0_18, %c0_19] : memref<3x16x128xbf16, #tpu.memory_space<vmem>>, vector<1x16x128xbf16>
    %16 = vector.shape_cast %15 : vector<1x16x128xbf16> to vector<16x128xbf16>
    %c0_20 = arith.constant 0 : index
    %c0_21 = arith.constant 0 : index
    %c0_22 = arith.constant 0 : index
    %17 = vector.load %arg6[%c0_20, %c0_21, %c0_22] : memref<1x128x128xbf16, #tpu.memory_space<vmem>>, vector<1x128x128xbf16>
    %18 = vector.shape_cast %17 : vector<1x128x128xbf16> to vector<128x128xbf16>
    %cst_23 = arith.constant dense<0.000000e+00> : vector<16x128xf32>
    %19 = tpu.matmul %16, %18, %cst_23 {dimension_numbers = #tpu.dot_dimension_numbers<[1], [0], [0], [1], [0, 0, 1, 1], [], []>} : vector<16x128xbf16>, vector<128x128xbf16>, vector<16x128xf32> -> vector<16x128xf32>
    %c0_24 = arith.constant 0 : index
    %c0_25 = arith.constant 0 : index
    %c0_26 = arith.constant 0 : index
    %20 = vector.load %arg1[%c0_24, %c0_25, %c0_26] : memref<3x16x128xbf16, #tpu.memory_space<vmem>>, vector<1x16x128xbf16>
    %21 = vector.shape_cast %20 : vector<1x16x128xbf16> to vector<16x128xbf16>
    %c0_27 = arith.constant 0 : index
    %c0_28 = arith.constant 0 : index
    %c0_29 = arith.constant 0 : index
    %22 = vector.load %arg7[%c0_27, %c0_28, %c0_29] : memref<1x128x256xbf16, #tpu.memory_space<vmem>>, vector<1x128x256xbf16>
    %23 = vector.shape_cast %22 : vector<1x128x256xbf16> to vector<128x256xbf16>
    %cst_30 = arith.constant dense<0.000000e+00> : vector<16x256xf32>
    %24 = tpu.matmul %21, %23, %cst_30 {dimension_numbers = #tpu.dot_dimension_numbers<[1], [0], [0], [1], [0, 0, 1, 1], [], []>} : vector<16x128xbf16>, vector<128x256xbf16>, vector<16x256xf32> -> vector<16x256xf32>
    %c2_31 = arith.constant 2 : index
    %c0_32 = arith.constant 0 : index
    %c0_33 = arith.constant 0 : index
    %25 = vector.load %arg1[%c2_31, %c0_32, %c0_33] : memref<3x16x128xbf16, #tpu.memory_space<vmem>>, vector<1x16x128xbf16>
    %26 = vector.shape_cast %25 : vector<1x16x128xbf16> to vector<16x128xbf16>
    %c0_34 = arith.constant 0 : index
    %c0_35 = arith.constant 0 : index
    %c0_36 = arith.constant 0 : index
    %27 = vector.load %arg8[%c0_34, %c0_35, %c0_36] : memref<1x128x128xbf16, #tpu.memory_space<vmem>>, vector<1x128x128xbf16>
    %28 = vector.shape_cast %27 : vector<1x128x128xbf16> to vector<128x128xbf16>
    %cst_37 = arith.constant dense<0.000000e+00> : vector<16x128xf32>
    %29 = tpu.matmul %26, %28, %cst_37 {dimension_numbers = #tpu.dot_dimension_numbers<[1], [0], [0], [1], [0, 0, 1, 1], [], []>} : vector<16x128xbf16>, vector<128x128xbf16>, vector<16x128xf32> -> vector<16x128xf32>
    %30 = vector.extract_strided_slice %4 {offsets = [0, 0], sizes = [16, 128], strides = [1, 1]} : vector<16x256xf32> to vector<16x128xf32>
    %31 = vector.shape_cast %19 : vector<16x128xf32> to vector<16x1x128xf32>
    %32 = vector.shape_cast %30 : vector<16x128xf32> to vector<1x16x128xf32>
    %33 = vector.broadcast %31 : vector<16x1x128xf32> to vector<16x16x128xf32>
    %34 = vector.broadcast %32 : vector<1x16x128xf32> to vector<16x16x128xf32>
    %35 = arith.addf %33, %34 : vector<16x16x128xf32>
    %cst_38 = arith.constant 0.000000e+00 : f32
    %36 = vector.broadcast %cst_38 : f32 to vector<16x16x128xf32>
    %37 = arith.cmpf ogt, %35, %36 : vector<16x16x128xf32>
    %cst_39 = arith.constant 2.000000e-01 : f32
    %38 = vector.broadcast %cst_39 : f32 to vector<16x16x128xf32>
    %39 = arith.mulf %38, %35 : vector<16x16x128xf32>
    %40 = arith.select %37, %35, %39 : vector<16x16x128xi1>, vector<16x16x128xf32>
    %c0_40 = arith.constant 0 : index
    %c0_41 = arith.constant 0 : index
    %c0_42 = arith.constant 0 : index
    %41 = vector.load %arg9[%c0_40, %c0_41, %c0_42] : memref<4x1x128xf32, #tpu.memory_space<vmem>>, vector<1x1x128xf32>
    %42 = vector.shape_cast %41 : vector<1x1x128xf32> to vector<1x128xf32>
    %43 = vector.shape_cast %42 : vector<1x128xf32> to vector<1x1x128xf32>
    %44 = vector.broadcast %43 : vector<1x1x128xf32> to vector<16x16x128xf32>
    %45 = arith.mulf %40, %44 : vector<16x16x128xf32>
    %cst_43 = arith.constant dense<0.000000e+00> : vector<16x16xf32>
    %46 = vector.multi_reduction <add>, %45, %cst_43 [2] : vector<16x16x128xf32> to vector<16x16xf32>
    %c0_44 = arith.constant 0 : index
    %c0_45 = arith.constant 0 : index
    %c0_46 = arith.constant 0 : index
    %47 = vector.load %arg2[%c0_44, %c0_45, %c0_46] : memref<4x16x16xf32, #tpu.memory_space<vmem>>, vector<1x16x16xf32>
    %48 = vector.shape_cast %47 : vector<1x16x16xf32> to vector<16x16xf32>
    %cst_47 = arith.constant 0.000000e+00 : f32
    %49 = vector.broadcast %cst_47 : f32 to vector<16x16xf32>
    %50 = arith.cmpf ogt, %48, %49 : vector<16x16xf32>
    %cst_48 = arith.constant -1.000000e+30 : f32
    %51 = vector.broadcast %cst_48 : f32 to vector<16x16xf32>
    %52 = arith.select %50, %46, %51 : vector<16x16xi1>, vector<16x16xf32>
    %cst_49 = arith.constant dense<0xFF800000> : vector<16xf32>
    %53 = vector.multi_reduction <maximumf>, %52, %cst_49 [1] : vector<16x16xf32> to vector<16xf32>
    %54 = vector.shape_cast %53 : vector<16xf32> to vector<16x1xf32>
    %55 = vector.broadcast %54 : vector<16x1xf32> to vector<16x16xf32>
    %56 = arith.subf %52, %55 : vector<16x16xf32>
    %57 = math.exp %56 : vector<16x16xf32>
    %58 = arith.mulf %57, %48 : vector<16x16xf32>
    %cst_50 = arith.constant dense<0.000000e+00> : vector<16xf32>
    %59 = vector.multi_reduction <add>, %58, %cst_50 [1] : vector<16x16xf32> to vector<16xf32>
    %60 = vector.shape_cast %59 : vector<16xf32> to vector<16x1xf32>
    %61 = tpu.reciprocal %60 {approx = true} : vector<16x1xf32> -> vector<16x1xf32>
    %cst_51 = arith.constant 0.000000e+00 : f32
    %62 = vector.broadcast %cst_51 : f32 to vector<16x1xf32>
    %63 = arith.cmpf ogt, %60, %62 : vector<16x1xf32>
    %cst_52 = arith.constant 0.000000e+00 : f32
    %64 = vector.broadcast %cst_52 : f32 to vector<16x1xf32>
    %65 = arith.select %63, %61, %64 : vector<16x1xi1>, vector<16x1xf32>
    %66 = vector.broadcast %65 : vector<16x1xf32> to vector<16x16xf32>
    %67 = arith.mulf %58, %66 : vector<16x16xf32>
    %cst_53 = arith.constant 0.000000e+00 : f32
    %68 = vector.broadcast %cst_53 : f32 to vector<16x112xf32>
    %69 = tpu.concatenate %67, %68 in 1 : vector<16x16xf32>, vector<16x112xf32> -> vector<16x128xf32>
    %c0_54 = arith.constant 0 : index
    %c0_55 = arith.constant 0 : index
    %c0_56 = arith.constant 0 : index
    %70 = vector.load %arg15[%c0_54, %c0_55, %c0_56] : memref<4x16x128xf32, #tpu.memory_space<vmem>>, vector<1x16x128xf32>
    %71 = vector.shape_cast %70 : vector<1x16x128xf32> to vector<16x128xf32>
    %72 = vector.shape_cast %69 : vector<16x128xf32> to vector<1x16x128xf32>
    tpu.vector_store %arg15[%c0_54, %c0_55, %c0_56], %72 {strides = array<i32>} : memref<4x16x128xf32, #tpu.memory_space<vmem>>, vector<1x16x128xf32>,
    %73 = vector.extract_strided_slice %24 {offsets = [0, 0], sizes = [16, 128], strides = [1, 1]} : vector<16x256xf32> to vector<16x128xf32>
    %74 = vector.shape_cast %73 : vector<16x128xf32> to vector<16x1x128xf32>
    %75 = vector.shape_cast %9 : vector<16x128xf32> to vector<1x16x128xf32>
    %76 = vector.broadcast %74 : vector<16x1x128xf32> to vector<16x16x128xf32>
    %77 = vector.broadcast %75 : vector<1x16x128xf32> to vector<16x16x128xf32>
    %78 = arith.addf %76, %77 : vector<16x16x128xf32>
    %cst_57 = arith.constant 0.000000e+00 : f32
    %79 = vector.broadcast %cst_57 : f32 to vector<16x16x128xf32>
    %80 = arith.cmpf ogt, %78, %79 : vector<16x16x128xf32>
    %cst_58 = arith.constant 2.000000e-01 : f32
    %81 = vector.broadcast %cst_58 : f32 to vector<16x16x128xf32>
    %82 = arith.mulf %81, %78 : vector<16x16x128xf32>
    %83 = arith.select %80, %78, %82 : vector<16x16x128xi1>, vector<16x16x128xf32>
    %c1_59 = arith.constant 1 : index
    %c0_60 = arith.constant 0 : index
    %c0_61 = arith.constant 0 : index
    %84 = vector.load %arg9[%c1_59, %c0_60, %c0_61] : memref<4x1x128xf32, #tpu.memory_space<vmem>>, vector<1x1x128xf32>
    %85 = vector.shape_cast %84 : vector<1x1x128xf32> to vector<1x128xf32>
    %86 = vector.shape_cast %85 : vector<1x128xf32> to vector<1x1x128xf32>
    %87 = vector.broadcast %86 : vector<1x1x128xf32> to vector<16x16x128xf32>
    %88 = arith.mulf %83, %87 : vector<16x16x128xf32>
    %cst_62 = arith.constant dense<0.000000e+00> : vector<16x16xf32>
    %89 = vector.multi_reduction <add>, %88, %cst_62 [2] : vector<16x16x128xf32> to vector<16x16xf32>
    %c1_63 = arith.constant 1 : index
    %c0_64 = arith.constant 0 : index
    %c0_65 = arith.constant 0 : index
    %90 = vector.load %arg2[%c1_63, %c0_64, %c0_65] : memref<4x16x16xf32, #tpu.memory_space<vmem>>, vector<1x16x16xf32>
    %91 = vector.shape_cast %90 : vector<1x16x16xf32> to vector<16x16xf32>
    %cst_66 = arith.constant 0.000000e+00 : f32
    %92 = vector.broadcast %cst_66 : f32 to vector<16x16xf32>
    %93 = arith.cmpf ogt, %91, %92 : vector<16x16xf32>
    %cst_67 = arith.constant -1.000000e+30 : f32
    %94 = vector.broadcast %cst_67 : f32 to vector<16x16xf32>
    %95 = arith.select %93, %89, %94 : vector<16x16xi1>, vector<16x16xf32>
    %cst_68 = arith.constant dense<0xFF800000> : vector<16xf32>
    %96 = vector.multi_reduction <maximumf>, %95, %cst_68 [1] : vector<16x16xf32> to vector<16xf32>
    %97 = vector.shape_cast %96 : vector<16xf32> to vector<16x1xf32>
    %98 = vector.broadcast %97 : vector<16x1xf32> to vector<16x16xf32>
    %99 = arith.subf %95, %98 : vector<16x16xf32>
    %100 = math.exp %99 : vector<16x16xf32>
    %101 = arith.mulf %100, %91 : vector<16x16xf32>
    %cst_69 = arith.constant dense<0.000000e+00> : vector<16xf32>
    %102 = vector.multi_reduction <add>, %101, %cst_69 [1] : vector<16x16xf32> to vector<16xf32>
    %103 = vector.shape_cast %102 : vector<16xf32> to vector<16x1xf32>
    %104 = tpu.reciprocal %103 {approx = true} : vector<16x1xf32> -> vector<16x1xf32>
    %cst_70 = arith.constant 0.000000e+00 : f32
    %105 = vector.broadcast %cst_70 : f32 to vector<16x1xf32>
    %106 = arith.cmpf ogt, %103, %105 : vector<16x1xf32>
    %cst_71 = arith.constant 0.000000e+00 : f32
    %107 = vector.broadcast %cst_71 : f32 to vector<16x1xf32>
    %108 = arith.select %106, %104, %107 : vector<16x1xi1>, vector<16x1xf32>
    %109 = vector.broadcast %108 : vector<16x1xf32> to vector<16x16xf32>
    %110 = arith.mulf %101, %109 : vector<16x16xf32>
    %cst_72 = arith.constant 0.000000e+00 : f32
    %111 = vector.broadcast %cst_72 : f32 to vector<16x112xf32>
    %112 = tpu.concatenate %110, %111 in 1 : vector<16x16xf32>, vector<16x112xf32> -> vector<16x128xf32>
    %c1_73 = arith.constant 1 : index
    %c0_74 = arith.constant 0 : index
    %c0_75 = arith.constant 0 : index
    %113 = vector.load %arg15[%c1_73, %c0_74, %c0_75] : memref<4x16x128xf32, #tpu.memory_space<vmem>>, vector<1x16x128xf32>
    %114 = vector.shape_cast %113 : vector<1x16x128xf32> to vector<16x128xf32>
    %115 = vector.shape_cast %112 : vector<16x128xf32> to vector<1x16x128xf32>
    tpu.vector_store %arg15[%c1_73, %c0_74, %c0_75], %115 {strides = array<i32>} : memref<4x16x128xf32, #tpu.memory_space<vmem>>, vector<1x16x128xf32>,
    %116 = vector.extract_strided_slice %4 {offsets = [0, 128], sizes = [16, 128], strides = [1, 1]} : vector<16x256xf32> to vector<16x128xf32>
    %117 = vector.shape_cast %29 : vector<16x128xf32> to vector<16x1x128xf32>
    %118 = vector.shape_cast %116 : vector<16x128xf32> to vector<1x16x128xf32>
    %119 = vector.broadcast %117 : vector<16x1x128xf32> to vector<16x16x128xf32>
    %120 = vector.broadcast %118 : vector<1x16x128xf32> to vector<16x16x128xf32>
    %121 = arith.addf %119, %120 : vector<16x16x128xf32>
    %cst_76 = arith.constant 0.000000e+00 : f32
    %122 = vector.broadcast %cst_76 : f32 to vector<16x16x128xf32>
    %123 = arith.cmpf ogt, %121, %122 : vector<16x16x128xf32>
    %cst_77 = arith.constant 2.000000e-01 : f32
    %124 = vector.broadcast %cst_77 : f32 to vector<16x16x128xf32>
    %125 = arith.mulf %124, %121 : vector<16x16x128xf32>
    %126 = arith.select %123, %121, %125 : vector<16x16x128xi1>, vector<16x16x128xf32>
    %c2_78 = arith.constant 2 : index
    %c0_79 = arith.constant 0 : index
    %c0_80 = arith.constant 0 : index
    %127 = vector.load %arg9[%c2_78, %c0_79, %c0_80] : memref<4x1x128xf32, #tpu.memory_space<vmem>>, vector<1x1x128xf32>
    %128 = vector.shape_cast %127 : vector<1x1x128xf32> to vector<1x128xf32>
    %129 = vector.shape_cast %128 : vector<1x128xf32> to vector<1x1x128xf32>
    %130 = vector.broadcast %129 : vector<1x1x128xf32> to vector<16x16x128xf32>
    %131 = arith.mulf %126, %130 : vector<16x16x128xf32>
    %cst_81 = arith.constant dense<0.000000e+00> : vector<16x16xf32>
    %132 = vector.multi_reduction <add>, %131, %cst_81 [2] : vector<16x16x128xf32> to vector<16x16xf32>
    %c2_82 = arith.constant 2 : index
    %c0_83 = arith.constant 0 : index
    %c0_84 = arith.constant 0 : index
    %133 = vector.load %arg2[%c2_82, %c0_83, %c0_84] : memref<4x16x16xf32, #tpu.memory_space<vmem>>, vector<1x16x16xf32>
    %134 = vector.shape_cast %133 : vector<1x16x16xf32> to vector<16x16xf32>
    %cst_85 = arith.constant 0.000000e+00 : f32
    %135 = vector.broadcast %cst_85 : f32 to vector<16x16xf32>
    %136 = arith.cmpf ogt, %134, %135 : vector<16x16xf32>
    %cst_86 = arith.constant -1.000000e+30 : f32
    %137 = vector.broadcast %cst_86 : f32 to vector<16x16xf32>
    %138 = arith.select %136, %132, %137 : vector<16x16xi1>, vector<16x16xf32>
    %cst_87 = arith.constant dense<0xFF800000> : vector<16xf32>
    %139 = vector.multi_reduction <maximumf>, %138, %cst_87 [1] : vector<16x16xf32> to vector<16xf32>
    %140 = vector.shape_cast %139 : vector<16xf32> to vector<16x1xf32>
    %141 = vector.broadcast %140 : vector<16x1xf32> to vector<16x16xf32>
    %142 = arith.subf %138, %141 : vector<16x16xf32>
    %143 = math.exp %142 : vector<16x16xf32>
    %144 = arith.mulf %143, %134 : vector<16x16xf32>
    %cst_88 = arith.constant dense<0.000000e+00> : vector<16xf32>
    %145 = vector.multi_reduction <add>, %144, %cst_88 [1] : vector<16x16xf32> to vector<16xf32>
    %146 = vector.shape_cast %145 : vector<16xf32> to vector<16x1xf32>
    %147 = tpu.reciprocal %146 {approx = true} : vector<16x1xf32> -> vector<16x1xf32>
    %cst_89 = arith.constant 0.000000e+00 : f32
    %148 = vector.broadcast %cst_89 : f32 to vector<16x1xf32>
    %149 = arith.cmpf ogt, %146, %148 : vector<16x1xf32>
    %cst_90 = arith.constant 0.000000e+00 : f32
    %150 = vector.broadcast %cst_90 : f32 to vector<16x1xf32>
    %151 = arith.select %149, %147, %150 : vector<16x1xi1>, vector<16x1xf32>
    %152 = vector.broadcast %151 : vector<16x1xf32> to vector<16x16xf32>
    %153 = arith.mulf %144, %152 : vector<16x16xf32>
    %cst_91 = arith.constant 0.000000e+00 : f32
    %154 = vector.broadcast %cst_91 : f32 to vector<16x112xf32>
    %155 = tpu.concatenate %153, %154 in 1 : vector<16x16xf32>, vector<16x112xf32> -> vector<16x128xf32>
    %c2_92 = arith.constant 2 : index
    %c0_93 = arith.constant 0 : index
    %c0_94 = arith.constant 0 : index
    %156 = vector.load %arg15[%c2_92, %c0_93, %c0_94] : memref<4x16x128xf32, #tpu.memory_space<vmem>>, vector<1x16x128xf32>
    %157 = vector.shape_cast %156 : vector<1x16x128xf32> to vector<16x128xf32>
    %158 = vector.shape_cast %155 : vector<16x128xf32> to vector<1x16x128xf32>
    tpu.vector_store %arg15[%c2_92, %c0_93, %c0_94], %158 {strides = array<i32>} : memref<4x16x128xf32, #tpu.memory_space<vmem>>, vector<1x16x128xf32>,
    %159 = vector.extract_strided_slice %24 {offsets = [0, 128], sizes = [16, 128], strides = [1, 1]} : vector<16x256xf32> to vector<16x128xf32>
    %160 = vector.shape_cast %159 : vector<16x128xf32> to vector<16x1x128xf32>
    %161 = vector.shape_cast %14 : vector<16x128xf32> to vector<1x16x128xf32>
    %162 = vector.broadcast %160 : vector<16x1x128xf32> to vector<16x16x128xf32>
    %163 = vector.broadcast %161 : vector<1x16x128xf32> to vector<16x16x128xf32>
    %164 = arith.addf %162, %163 : vector<16x16x128xf32>
    %cst_95 = arith.constant 0.000000e+00 : f32
    %165 = vector.broadcast %cst_95 : f32 to vector<16x16x128xf32>
    %166 = arith.cmpf ogt, %164, %165 : vector<16x16x128xf32>
    %cst_96 = arith.constant 2.000000e-01 : f32
    %167 = vector.broadcast %cst_96 : f32 to vector<16x16x128xf32>
    %168 = arith.mulf %167, %164 : vector<16x16x128xf32>
    %169 = arith.select %166, %164, %168 : vector<16x16x128xi1>, vector<16x16x128xf32>
    %c3 = arith.constant 3 : index
    %c0_97 = arith.constant 0 : index
    %c0_98 = arith.constant 0 : index
    %170 = vector.load %arg9[%c3, %c0_97, %c0_98] : memref<4x1x128xf32, #tpu.memory_space<vmem>>, vector<1x1x128xf32>
    %171 = vector.shape_cast %170 : vector<1x1x128xf32> to vector<1x128xf32>
    %172 = vector.shape_cast %171 : vector<1x128xf32> to vector<1x1x128xf32>
    %173 = vector.broadcast %172 : vector<1x1x128xf32> to vector<16x16x128xf32>
    %174 = arith.mulf %169, %173 : vector<16x16x128xf32>
    %cst_99 = arith.constant dense<0.000000e+00> : vector<16x16xf32>
    %175 = vector.multi_reduction <add>, %174, %cst_99 [2] : vector<16x16x128xf32> to vector<16x16xf32>
    %c3_100 = arith.constant 3 : index
    %c0_101 = arith.constant 0 : index
    %c0_102 = arith.constant 0 : index
    %176 = vector.load %arg2[%c3_100, %c0_101, %c0_102] : memref<4x16x16xf32, #tpu.memory_space<vmem>>, vector<1x16x16xf32>
    %177 = vector.shape_cast %176 : vector<1x16x16xf32> to vector<16x16xf32>
    %cst_103 = arith.constant 0.000000e+00 : f32
    %178 = vector.broadcast %cst_103 : f32 to vector<16x16xf32>
    %179 = arith.cmpf ogt, %177, %178 : vector<16x16xf32>
    %cst_104 = arith.constant -1.000000e+30 : f32
    %180 = vector.broadcast %cst_104 : f32 to vector<16x16xf32>
    %181 = arith.select %179, %175, %180 : vector<16x16xi1>, vector<16x16xf32>
    %cst_105 = arith.constant dense<0xFF800000> : vector<16xf32>
    %182 = vector.multi_reduction <maximumf>, %181, %cst_105 [1] : vector<16x16xf32> to vector<16xf32>
    %183 = vector.shape_cast %182 : vector<16xf32> to vector<16x1xf32>
    %184 = vector.broadcast %183 : vector<16x1xf32> to vector<16x16xf32>
    %185 = arith.subf %181, %184 : vector<16x16xf32>
    %186 = math.exp %185 : vector<16x16xf32>
    %187 = arith.mulf %186, %177 : vector<16x16xf32>
    %cst_106 = arith.constant dense<0.000000e+00> : vector<16xf32>
    %188 = vector.multi_reduction <add>, %187, %cst_106 [1] : vector<16x16xf32> to vector<16xf32>
    %189 = vector.shape_cast %188 : vector<16xf32> to vector<16x1xf32>
    %190 = tpu.reciprocal %189 {approx = true} : vector<16x1xf32> -> vector<16x1xf32>
    %cst_107 = arith.constant 0.000000e+00 : f32
    %191 = vector.broadcast %cst_107 : f32 to vector<16x1xf32>
    %192 = arith.cmpf ogt, %189, %191 : vector<16x1xf32>
    %cst_108 = arith.constant 0.000000e+00 : f32
    %193 = vector.broadcast %cst_108 : f32 to vector<16x1xf32>
    %194 = arith.select %192, %190, %193 : vector<16x1xi1>, vector<16x1xf32>
    %195 = vector.broadcast %194 : vector<16x1xf32> to vector<16x16xf32>
    %196 = arith.mulf %187, %195 : vector<16x16xf32>
    %cst_109 = arith.constant 0.000000e+00 : f32
    %197 = vector.broadcast %cst_109 : f32 to vector<16x112xf32>
    %198 = tpu.concatenate %196, %197 in 1 : vector<16x16xf32>, vector<16x112xf32> -> vector<16x128xf32>
    %c3_110 = arith.constant 3 : index
    %c0_111 = arith.constant 0 : index
    %c0_112 = arith.constant 0 : index
    %199 = vector.load %arg15[%c3_110, %c0_111, %c0_112] : memref<4x16x128xf32, #tpu.memory_space<vmem>>, vector<1x16x128xf32>
    %200 = vector.shape_cast %199 : vector<1x16x128xf32> to vector<16x128xf32>
    %201 = vector.shape_cast %198 : vector<16x128xf32> to vector<1x16x128xf32>
    tpu.vector_store %arg15[%c3_110, %c0_111, %c0_112], %201 {strides = array<i32>} : memref<4x16x128xf32, #tpu.memory_space<vmem>>, vector<1x16x128xf32>,
    %c1_i32 = arith.constant 1 : i32
    %202 = arith.cmpi eq, %arg0, %c1_i32 : i32
    %203 = arith.extui %202 : i1 to i32
    %c0_i32 = arith.constant 0 : i32
    %204 = arith.cmpi ne, %203, %c0_i32 : i32
    scf.if %204 {
      %205 = arith.truncf %110 : vector<16x16xf32> to vector<16x16xbf16>
      %206 = arith.truncf %9 : vector<16x128xf32> to vector<16x128xbf16>
      %cst_113 = arith.constant dense<0.000000e+00> : vector<16x128xf32>
      %207 = tpu.matmul %205, %206, %cst_113 {dimension_numbers = #tpu.dot_dimension_numbers<[1], [0], [0], [1], [0, 0, 1, 1], [], []>} : vector<16x16xbf16>, vector<16x128xbf16>, vector<16x128xf32> -> vector<16x128xf32>
      %c1_114 = arith.constant 1 : index
      %c0_115 = arith.constant 0 : index
      %c0_116 = arith.constant 0 : index
      %208 = vector.load %arg10[%c1_114, %c0_115, %c0_116] : memref<4x1x128xf32, #tpu.memory_space<vmem>>, vector<1x1x128xf32>
      %209 = vector.shape_cast %208 : vector<1x1x128xf32> to vector<1x128xf32>
      %210 = vector.broadcast %209 : vector<1x128xf32> to vector<16x128xf32>
      %211 = arith.addf %207, %210 : vector<16x128xf32>
      %212 = arith.truncf %196 : vector<16x16xf32> to vector<16x16xbf16>
      %213 = arith.truncf %14 : vector<16x128xf32> to vector<16x128xbf16>
      %cst_117 = arith.constant dense<0.000000e+00> : vector<16x128xf32>
      %214 = tpu.matmul %212, %213, %cst_117 {dimension_numbers = #tpu.dot_dimension_numbers<[1], [0], [0], [1], [0, 0, 1, 1], [], []>} : vector<16x16xbf16>, vector<16x128xbf16>, vector<16x128xf32> -> vector<16x128xf32>
      %c3_118 = arith.constant 3 : index
      %c0_119 = arith.constant 0 : index
      %c0_120 = arith.constant 0 : index
      %215 = vector.load %arg10[%c3_118, %c0_119, %c0_120] : memref<4x1x128xf32, #tpu.memory_space<vmem>>, vector<1x1x128xf32>
      %216 = vector.shape_cast %215 : vector<1x1x128xf32> to vector<1x128xf32>
      %217 = vector.broadcast %216 : vector<1x128xf32> to vector<16x128xf32>
      %218 = arith.addf %214, %217 : vector<16x128xf32>
      %219 = arith.addf %211, %218 : vector<16x128xf32>
      %c0_121 = arith.constant 0 : index
      %c0_122 = arith.constant 0 : index
      %220 = vector.load %arg11[%c0_121, %c0_122] : memref<8x16xf32, #tpu.memory_space<vmem>>, vector<8x16xf32>
      %221 = arith.truncf %220 : vector<8x16xf32> to vector<8x16xbf16>
      %222 = arith.truncf %219 : vector<16x128xf32> to vector<16x128xbf16>
      %cst_123 = arith.constant dense<0.000000e+00> : vector<8x128xf32>
      %223 = tpu.matmul %221, %222, %cst_123 {dimension_numbers = #tpu.dot_dimension_numbers<[1], [0], [0], [1], [0, 0, 1, 1], [], []>} : vector<8x16xbf16>, vector<16x128xbf16>, vector<8x128xf32> -> vector<8x128xf32>
      %224 = arith.truncf %223 : vector<8x128xf32> to vector<8x128xbf16>
      %c0_124 = arith.constant 0 : index
      %c0_125 = arith.constant 0 : index
      %225 = vector.load %arg12[%c0_124, %c0_125] : memref<128x128xbf16, #tpu.memory_space<vmem>>, vector<128x128xbf16>
      %cst_126 = arith.constant dense<0.000000e+00> : vector<8x128xf32>
      %226 = tpu.matmul %224, %225, %cst_126 {dimension_numbers = #tpu.dot_dimension_numbers<[1], [0], [0], [1], [0, 0, 1, 1], [], []>} : vector<8x128xbf16>, vector<128x128xbf16>, vector<8x128xf32> -> vector<8x128xf32>
      %c0_127 = arith.constant 0 : index
      %c0_128 = arith.constant 0 : index
      %227 = vector.load %arg13[%c0_127, %c0_128] : memref<1x128xf32, #tpu.memory_space<vmem>>, vector<1x128xf32>
      %228 = vector.broadcast %227 : vector<1x128xf32> to vector<8x128xf32>
      %229 = arith.addf %226, %228 : vector<8x128xf32>
      %c0_129 = arith.constant 0 : index
      %c0_130 = arith.constant 0 : index
      %c0_131 = arith.constant 0 : index
      %230 = vector.load %arg14[%c0_129, %c0_130, %c0_131] : memref<1x8x128xf32, #tpu.memory_space<vmem>>, vector<1x8x128xf32>
      %231 = vector.shape_cast %230 : vector<1x8x128xf32> to vector<8x128xf32>
      %232 = vector.shape_cast %229 : vector<8x128xf32> to vector<1x8x128xf32>
      tpu.vector_store %arg14[%c0_129, %c0_130, %c0_131], %232 {strides = array<i32>} : memref<1x8x128xf32, #tpu.memory_space<vmem>>, vector<1x8x128xf32>,
    } else {
    }
    return
  }
  func.func @transform_0(%arg0: i32) -> (i32, i32, i32) {
    %c0_i32 = arith.constant 0 : i32
    %c0_i32_0 = arith.constant 0 : i32
    %c0_i32_1 = arith.constant 0 : i32
    %c0_i32_2 = arith.constant 0 : i32
    return %c0_i32, %c0_i32_0, %c0_i32_1 : i32, i32, i32
  }
  func.func @transform_1(%arg0: i32) -> (i32, i32, i32) {
    %c0_i32 = arith.constant 0 : i32
    %c0_i32_0 = arith.constant 0 : i32
    %c0_i32_1 = arith.constant 0 : i32
    %c0_i32_2 = arith.constant 0 : i32
    return %c0_i32, %c0_i32_0, %c0_i32_1 : i32, i32, i32
  }
  func.func @transform_2(%arg0: i32) -> (i32, i32, i32) {
    %c0_i32 = arith.constant 0 : i32
    %c0_i32_0 = arith.constant 0 : i32
    %c0_i32_1 = arith.constant 0 : i32
    return %arg0, %c0_i32, %c0_i32_0 : i32, i32, i32
  }
  func.func @transform_3(%arg0: i32) -> (i32, i32, i32) {
    %c0_i32 = arith.constant 0 : i32
    %c0_i32_0 = arith.constant 0 : i32
    %c0_i32_1 = arith.constant 0 : i32
    return %arg0, %c0_i32, %c0_i32_0 : i32, i32, i32
  }
  func.func @transform_4(%arg0: i32) -> (i32, i32, i32) {
    %c0_i32 = arith.constant 0 : i32
    %c0_i32_0 = arith.constant 0 : i32
    %c0_i32_1 = arith.constant 0 : i32
    return %arg0, %c0_i32, %c0_i32_0 : i32, i32, i32
  }
  func.func @transform_5(%arg0: i32) -> (i32, i32, i32) {
    %c0_i32 = arith.constant 0 : i32
    %c0_i32_0 = arith.constant 0 : i32
    %c0_i32_1 = arith.constant 0 : i32
    return %arg0, %c0_i32, %c0_i32_0 : i32, i32, i32
  }
  func.func @transform_6(%arg0: i32) -> (i32, i32, i32) {
    %c0_i32 = arith.constant 0 : i32
    %c0_i32_0 = arith.constant 0 : i32
    %c0_i32_1 = arith.constant 0 : i32
    return %arg0, %c0_i32, %c0_i32_0 : i32, i32, i32
  }
  func.func @transform_7(%arg0: i32) -> (i32, i32, i32) {
    %c0_i32 = arith.constant 0 : i32
    %c0_i32_0 = arith.constant 0 : i32
    %c0_i32_1 = arith.constant 0 : i32
    return %arg0, %c0_i32, %c0_i32_0 : i32, i32, i32
  }
  func.func @transform_8(%arg0: i32) -> (i32, i32, i32) {
    %c0_i32 = arith.constant 0 : i32
    %c0_i32_0 = arith.constant 0 : i32
    %c0_i32_1 = arith.constant 0 : i32
    return %arg0, %c0_i32, %c0_i32_0 : i32, i32, i32
  }
  func.func @transform_9(%arg0: i32) -> (i32, i32, i32) {
    %c0_i32 = arith.constant 0 : i32
    %c0_i32_0 = arith.constant 0 : i32
    %c0_i32_1 = arith.constant 0 : i32
    return %arg0, %c0_i32, %c0_i32_0 : i32, i32, i32
  }
  func.func @transform_10(%arg0: i32) -> (i32, i32) {
    %c0_i32 = arith.constant 0 : i32
    %c0_i32_0 = arith.constant 0 : i32
    %c0_i32_1 = arith.constant 0 : i32
    return %c0_i32, %c0_i32_0 : i32, i32
  }
  func.func @transform_11(%arg0: i32) -> (i32, i32) {
    %c0_i32 = arith.constant 0 : i32
    %c0_i32_0 = arith.constant 0 : i32
    %c0_i32_1 = arith.constant 0 : i32
    return %c0_i32, %c0_i32_0 : i32, i32
  }
  func.func @transform_12(%arg0: i32) -> (i32, i32) {
    %c0_i32 = arith.constant 0 : i32
    %c0_i32_0 = arith.constant 0 : i32
    %c0_i32_1 = arith.constant 0 : i32
    return %c0_i32, %c0_i32_0 : i32, i32
  }
  func.func @transform_13(%arg0: i32) -> (i32, i32, i32) {
    %c0_i32 = arith.constant 0 : i32
    %c0_i32_0 = arith.constant 0 : i32
    %c0_i32_1 = arith.constant 0 : i32
    return %arg0, %c0_i32, %c0_i32_0 : i32, i32, i32
  }
  func.func @transform_14(%arg0: i32) -> (i32, i32, i32) {
    %c0_i32 = arith.constant 0 : i32
    %c0_i32_0 = arith.constant 0 : i32
    %c0_i32_1 = arith.constant 0 : i32
    return %arg0, %c0_i32, %c0_i32_0 : i32, i32, i32
  }
}

</mosaic_0001>

<bundles_post_ra>
// kernel: tpu_custom_call.1
= control target key start
LH: loop header
LB: loop body
LE: loop exit
PB: predicated region body
PF: predicated region fallthrough
CT: control target
= control target key end

     0   :  { %s6145_s0 = inlined_call_operand.hbm [shape: bf16[3,16,128], index: 0, kind: input, shape index: {}]   ;;  %s6146_s1 = inlined_call_operand.hbm [shape: f32[4,16,16], index: 1, kind: input, shape index: {}]   ;;  %s6147_s2 = inlined_call_operand.hbm [shape: bf16[2,128,256], index: 2, kind: input, shape index: {}]   ;;  %s6148_s3 = inlined_call_operand.hbm [shape: bf16[2,128,128], index: 3, kind: input, shape index: {}]   ;;  %s6149_s4 = inlined_call_operand.hbm [shape: bf16[2,128,128], index: 4, kind: input, shape index: {}]   ;;  %s6150_s5 = inlined_call_operand.hbm [shape: bf16[2,128,128], index: 5, kind: input, shape index: {}]   ;;  %s6151_s6 = inlined_call_operand.hbm [shape: bf16[2,128,256], index: 6, kind: input, shape index: {}]   ;;  %s6152_s7 = inlined_call_operand.hbm [shape: bf16[2,128,128], index: 7, kind: input, shape index: {}]   ;;  %s6153_s8 = inlined_call_operand.hbm [shape: f32[8,1,128], index: 8, kind: input, shape index: {}]   ;;  %s6154_s9 = inlined_call_operand.vmem [shape: f32[8,1,128], index: 9, kind: input, shape index: {}]   ;;  %s6155_s10 = inlined_call_operand.hbm [shape: f32[8,16], index: 10, kind: input, shape index: {}]   ;;  %s6156_s11 = inlined_call_operand.hbm [shape: bf16[128,128], index: 11, kind: input, shape index: {}]   ;;  %s6157_s12 = inlined_call_operand.vmem [shape: f32[1,128], index: 12, kind: input, shape index: {}]   ;;  %s6158_s13 = inlined_call_operand.hbm [shape: f32[2,8,128], index: 13, kind: output, shape index: {0}]   ;;  %s6159_s14 = inlined_call_operand.hbm [shape: f32[8,16,128], index: 14, kind: output, shape index: {1}]  }
   0x1   :  { %6187 = sst [smem:[#allocation37_spill]] %s6145_s0 }
   0x2   :  { %6188 = sst [smem:[#allocation38_spill]] %s6147_s2 }
   0x3   :  { %6189 = sst [smem:[#allocation39_spill]] %s6148_s3 }
   0x4   :  { %6190 = sst [smem:[#allocation40_spill]] %s6149_s4 }
   0x5   :  { %6191 = sst [smem:[#allocation41_spill]] %s6150_s5 }
   0x6   :  { %6192 = sst [smem:[#allocation42_spill]] %s6154_s9 }
   0x7   :  { %6193 = sst [smem:[#allocation43_spill]] %s6157_s12 }
   0x8   :  { %6194 = sst [smem:[#allocation44_spill]] %s6158_s13 }
   0x9   :  { %6195 = sst [smem:[#allocation45_spill]] %s6159_s14 }
   0xa   :  { %20 = vsyncpa [#allocation3], 0 }
   0xb   :  { %21 = vsyncpa [#allocation6], 0 }
   0xc   :  { %22 = vsyncpa [#allocation16], 0 }
   0xd   :  { %23 = vsyncpa [#allocation4], 0 }
   0xe   :  { %25 = vsyncpa [#allocation4 + $0x1], 0 }
   0xf   :  { %26 = vsyncpa [#allocation19], 0 }
  0x10   :  { %28 = vsyncpa [#allocation19 + $0x1], 0  ;;  %s4681_s29 = smov 0   ;;  %s4683_s30 = smov 0  }
  0x11   :  { %s4685_s15 = smov 0   ;;  %s4687_s16 = smov 0  }
  0x12 LB: > { %6196 = sst [smem:[#allocation27_spill]] %s4580_s29  ;;  %s4702_s17 = sadd.s32 4294967295, %s4592_s16   ;;  %s4592_s16 = sphi %s4687_s16, %s6246_s16   ;;  %s4588_s15 = sphi %s4685_s15, %s6249_s15   ;;  %s4584_s30 = sphi %s4683_s30, %s6248_s30   ;;  %s4580_s29 = sphi %s4681_s29, %s6247_s29  }
  0x13   : > { %6197 = sst [smem:[#allocation28_spill]] %s4584_s30  ;;  %s3528_s18 = sadd.s32 4294967294, %s4592_s16  }
  0x14   : > { %6198 = sst [smem:[#allocation29_spill]] %s4588_s15  ;;  %p96_p0 = scmp.ne.s32.totalorder %s4584_s30, %s4580_s29 }
  0x15   : > { %6199 = sst [smem:[#allocation30_spill]] %s4702_s17  ;;  %p6175_p1 = scmp.eq.s32.totalorder %s4702_s17, 0 }
  0x16   : > { %p365_p2 = scmp.eq.s32.totalorder %s4702_s17, 1  ;;  %p371_p3 = scmp.eq.s32.totalorder %s3528_s18, 1 }
  0x17   : > { %p4711_p4 = por %p6175_p1, %p96_p0  ;;  %p3529_p5 = scmp.ge.s32.totalorder %s4592_s16, 1 }
  0x18   : > { %p4716_p6 = por %p371_p3, %p96_p0  ;;  %p404_p7 = scmp.lt.s32.totalorder %s4592_s16, 3 }
  0x19   : > { %s6200_s19 = scalar_select %p4711_p4, 1, 0 }
  0x1a   : > { %s6202_s20 = scalar_select %p4716_p6, 1, 0 }
  0x1b   : > { %6201 = sst [smem:[#allocation31_spill]] %s6200_s19  ;;  %p4724_p8 = pnand %p3529_p5, %p404_p7 }
  0x1c   : > { %6203 = sst [smem:[#allocation32_spill]] %s6202_s20  ;;  %s4594_s25 = smov [#allocation2]  }
  0x1d   : > { %s6204_s0 = sld [smem:[#allocation37_spill]]  ;;  %p4010_p9 = pneg %p4724_p8 }
  0x1e   : > { %s6205_s24 = scalar_select %p4724_p8, 1, 0 }
  0x1f   : > { %s417_s26 = sshll.u32 %s4594_s25, 4  ;;  %p4732_p10 = pnand %p4010_p9, %p6175_p1  ;;  %s418_s26 = int_to_ptr.vmem [resolvable:$true] %s417_s26 }
  0x20   : > { %6206 = sst [smem:[#allocation33_spill]] %s6205_s24  ;;  %s4738_s28 = sadd.s32 1, %s4592_s16  }
  0x21   : > { %6208 = sst [smem:[#allocation34_spill]] %s4738_s28  ;;  %s6162_s18 = smov 64  }
  0x22   : > { %s6164_s21 = smov 4   ;;  %s80_s22 = ssub.s32 %s4592_s16, %s4738_s28 }
  0x23   : > { %s415_s23 = sshll.u32 %s6204_s0, 4  ;;  %s83_s25 = sadd.s32 1, %s4588_s15  ;;  %s416_s23 = int_to_ptr.hbm [resolvable:$true] %s415_s23 }
  0x24   : > { %4013 = dma.hbm_to_vmem [thread:$0]  (!%p4732_p10), %s416_s23, 384, %s418_s26, [#allocation3], %s6162_s18, %s6162_s18, %s6164_s21  }
  0x25   : > { %p81_p12 = scmp.eq.s32.totalorder %s80_s22, 0  ;;  %p90_p13 = scmp.ne.s32.totalorder %s4588_s15, %s4584_s30 }
  0x26   : > { %p91_p0 = scmp.eq.s32.totalorder %s4592_s16, 0  ;;  %p4056_p7 = scmp.lt.s32.totalorder %s4592_s16, 2 }
  0x27   : > { %s4752_s0 = scalar_select %p81_p12, %s4588_s15, %s83_s25  }
  0x28   : > { %p4754_p3 = por %p91_p0, %p90_p13  ;;  %p4760_p5 = por %p365_p2, %p90_p13 }
  0x29   : > { %6209 = sst [smem:[#allocation35_spill]] %s4752_s0  ;;  %s474_s23 = sand.u32 1, %s4592_s16  }
  0x2a   : > { %s6211_s29 = scalar_select %p4760_p5, 1, 0 }
  0x2b   : > { %s4767_s26 = sand.u32 1, %s4588_s15   ;;  %s6174_s25 = sshll.u32 %s4592_s16, 7 }
  0x2c   : > { %6212 = sst [smem:[#allocation36_spill]] %s6211_s29  ;;  %s6173_s22 = sshll.u32 %s4767_s26, 7 }
  0x2d   : > { %s6213_s2 = sld [smem:[#allocation38_spill]]  ;;  %s478_s28 = scalar_lea.vmem [#allocation7], %s6173_s22 }
  0x2e   : > { %s486_s14 = sshll.u32 %s478_s28, 4  ;;  %p4780_p2 = pnand %p4056_p7, %p4754_p3  ;;  %s487_s14 = int_to_ptr.vmem [resolvable:$true] %s486_s14 }
  0x2f   : > { %s4785_s29 = sshll.u32 %s4767_s26, 6  ;;  %s4788_s12 = sshll.u32 %s4592_s16, 6 }
  0x30   : > { %s4790_s9 = scalar_lea.sflag [#allocation3], %s474_s23  ;;  %p4794_p12 = pneg %p4780_p2 }
  0x33   : > { %s483_s0 = scalar_lea.hbm %s6213_s2, %s6174_s25  ;;  %s4185_s22 = scalar_lea.hbm %s6213_s2, 256 }
  0x34   : > { %s484_s13 = sshll.u32 %s483_s0, 4  ;;  %s485_s13 = int_to_ptr.hbm [resolvable:$true] %s484_s13 }
  0x35   : > { %s4178_s18 = sshra.s32 %s485_s13, 4  ;;  %s4179_s18 = int_to_ptr.hbm [resolvable:$true] %s4178_s18 }
  0x36   : > { %s4180_s21 = scalar_lea.hbm %s4179_s18, 128  ;;  %p4186_p3 = scmp.lt.s32.totalorder %s4179_s18, %s6213_s2 }
  0x37   : > { %p4181_p9 = scmp.ne.s32.totalorder %s4179_s18, %s4180_s21  ;;  %p4187_p7 = scmp.lt.s32.totalorder %s4185_s22, %s4180_s21 }
  0x39   : > { %p4183_p13 = pnand %p4794_p12, %p4181_p9  ;;  %p4188_p11 = por %p4187_p7, %p4186_p3 }
  0x3b   : > { %p4184_p0 = pneg %p4183_p13 }
  0x3d   : > { %p4189_p1 = pnand %p4188_p11, %p4184_p0 }
  0x3f   : > { %4192 = shalt.err (!%p4189_p1)
}
  0x40   : > { %s6183_s19 = smov 128   ;;  %s6185_s30 = smov 8  }
  0x41   : > { %4026 = dma.hbm_to_vmem [thread:$0]  (!%p4780_p2), %s485_s13, 2048, %s487_s14, %s4790_s9, %s6183_s19, %s6183_s19, %s6185_s30  }
  0x42   : > { %s6216_s3 = sld [smem:[#allocation39_spill]]  ;;  %s500_s22 = scalar_lea.vmem [#allocation8], %s4785_s29 }
  0x43   : > { %s508_s18 = sshll.u32 %s500_s22, 4  ;;  %s509_s18 = int_to_ptr.vmem [resolvable:$true] %s508_s18 }
  0x48   : > { %s505_s25 = scalar_lea.hbm %s6216_s3, %s4788_s12  ;;  %s4215_s13 = scalar_lea.hbm %s6216_s3, 128 }
  0x49   : > { %s506_s21 = sshll.u32 %s505_s25, 4  ;;  %s507_s21 = int_to_ptr.hbm [resolvable:$true] %s506_s21 }
  0x4a   : > { %s4208_s23 = sshra.s32 %s507_s21, 4  ;;  %s4209_s23 = int_to_ptr.hbm [resolvable:$true] %s4208_s23 }
  0x4b   : > { %s4210_s2 = scalar_lea.hbm %s4209_s23, 64  ;;  %p4216_p13 = scmp.lt.s32.totalorder %s4209_s23, %s6216_s3 }
  0x4c   : > { %p4211_p1 = scmp.ne.s32.totalorder %s4209_s23, %s4210_s2  ;;  %p4217_p0 = scmp.lt.s32.totalorder %s4215_s13, %s4210_s2 }
  0x4e   : > { %p4213_p11 = pnand %p4211_p1, %p4794_p12  ;;  %p4218_p3 = por %p4217_p0, %p4216_p13 }
  0x50   : > { %p4214_p9 = pneg %p4213_p11 }
  0x52   : > { %p4219_p7 = pnand %p4218_p3, %p4214_p9 }
  0x54   : > { %4222 = shalt.err (!%p4219_p7)
}
  0x55   : > { %s6217_s20 = smov 4   ;;  %s6218_s28 = smov 64  }
  0x56   : > { %4029 = dma.hbm_to_vmem [thread:$0]  (!%p4780_p2), %s507_s21, 1024, %s509_s18, %s4790_s9, %s6218_s28, %s6218_s28, %s6217_s20  }
  0x57   : > { %s6219_s4 = sld [smem:[#allocation40_spill]]  ;;  %s522_s19 = scalar_lea.vmem [#allocation9], %s4785_s29 }
  0x58   : > { %s530_s22 = sshll.u32 %s522_s19, 4  ;;  %s531_s22 = int_to_ptr.vmem [resolvable:$true] %s530_s22 }
  0x5d   : > { %s527_s25 = scalar_lea.hbm %s6219_s4, %s4788_s12  ;;  %s4245_s18 = scalar_lea.hbm %s6219_s4, 128 }
  0x5e   : > { %s528_s2 = sshll.u32 %s527_s25, 4  ;;  %s529_s2 = int_to_ptr.hbm [resolvable:$true] %s528_s2 }
  0x5f   : > { %s4238_s23 = sshra.s32 %s529_s2, 4  ;;  %s4239_s23 = int_to_ptr.hbm [resolvable:$true] %s4238_s23 }
  0x60   : > { %s4240_s13 = scalar_lea.hbm %s4239_s23, 64  ;;  %p4246_p13 = scmp.lt.s32.totalorder %s4239_s23, %s6219_s4 }
  0x61   : > { %p4241_p1 = scmp.ne.s32.totalorder %s4239_s23, %s4240_s13  ;;  %p4247_p0 = scmp.lt.s32.totalorder %s4245_s18, %s4240_s13 }
  0x63   : > { %p4243_p11 = pnand %p4241_p1, %p4794_p12  ;;  %p4248_p3 = por %p4247_p0, %p4246_p13 }
  0x65   : > { %p4244_p9 = pneg %p4243_p11 }
  0x67   : > { %p4249_p7 = pnand %p4248_p3, %p4244_p9 }
  0x69   : > { %4252 = shalt.err (!%p4249_p7)
}
  0x6a   : > { %4032 = dma.hbm_to_vmem [thread:$0]  (!%p4780_p2), %s529_s2, 1024, %s531_s22, %s4790_s9, %s6218_s28, %s6218_s28, %s6217_s20  }
  0x6b   : > { %s6220_s5 = sld [smem:[#allocation41_spill]]  ;;  %s544_s3 = scalar_lea.vmem [#allocation10], %s4785_s29 }
  0x6c   : > { %s552_s25 = sshll.u32 %s544_s3, 4  ;;  %s553_s25 = int_to_ptr.vmem [resolvable:$true] %s552_s25 }
  0x71   : > { %s549_s24 = scalar_lea.hbm %s6220_s5, %s4788_s12  ;;  %s4275_s22 = scalar_lea.hbm %s6220_s5, 128 }
  0x72   : > { %s550_s19 = sshll.u32 %s549_s24, 4  ;;  %s551_s19 = int_to_ptr.hbm [resolvable:$true] %s550_s19 }
  0x73   : > { %s4268_s23 = sshra.s32 %s551_s19, 4  ;;  %s4269_s23 = int_to_ptr.hbm [resolvable:$true] %s4268_s23 }
  0x74   : > { %s4270_s13 = scalar_lea.hbm %s4269_s23, 64  ;;  %p4276_p13 = scmp.lt.s32.totalorder %s4269_s23, %s6220_s5 }
  0x75   : > { %p4271_p1 = scmp.ne.s32.totalorder %s4269_s23, %s4270_s13  ;;  %p4277_p0 = scmp.lt.s32.totalorder %s4275_s22, %s4270_s13 }
  0x77   : > { %p4273_p11 = pnand %p4271_p1, %p4794_p12  ;;  %p4278_p3 = por %p4277_p0, %p4276_p13 }
  0x79   : > { %p4274_p9 = pneg %p4273_p11 }
  0x7b   : > { %p4279_p7 = pnand %p4278_p3, %p4274_p9 }
  0x7d   : > { %4282 = shalt.err (!%p4279_p7)
}
  0x7e   : > { %4035 = dma.hbm_to_vmem [thread:$0]  (!%p4780_p2), %s551_s19, 1024, %s553_s25, %s4790_s9, %s6218_s28, %s6218_s28, %s6217_s20  }
  0x7f   : > { %s6221_s30 = sshll.u32 %s4592_s16, 7  ;;  %s6222_s23 = sshll.u32 %s4767_s26, 7 }
  0x80   : > { %s571_s3 = scalar_lea.hbm %s6151_s6, %s6221_s30  ;;  %s566_s13 = scalar_lea.vmem [#allocation11], %s6222_s23 }
  0x81   : > { %s574_s14 = sshll.u32 %s566_s13, 4  ;;  %s572_s18 = sshll.u32 %s571_s3, 4  ;;  %s575_s14 = int_to_ptr.vmem [resolvable:$true] %s574_s14  ;;  %s573_s18 = int_to_ptr.hbm [resolvable:$true] %s572_s18 }
  0x82   : > { %s429_s21 = sshll.u32 %s6146_s1, 4  ;;  %s4298_s4 = sshra.s32 %s573_s18, 4  ;;  %s4299_s4 = int_to_ptr.hbm [resolvable:$true] %s4298_s4  ;;  %s430_s21 = int_to_ptr.hbm [resolvable:$true] %s429_s21 }
  0x83   : > { %s4300_s5 = scalar_lea.hbm %s4299_s4, 128  ;;  %s4305_s30 = scalar_lea.hbm %s6151_s6, 256 }
  0x84   : > { %p4301_p1 = scmp.ne.s32.totalorder %s4299_s4, %s4300_s5  ;;  %p4306_p13 = scmp.lt.s32.totalorder %s4299_s4, %s6151_s6 }
  0x85   : > { %p4307_p0 = scmp.lt.s32.totalorder %s4305_s30, %s4300_s5 }
  0x86   : > { %p4303_p11 = pnand %p4301_p1, %p4794_p12 }
  0x87   : > { %p4308_p3 = por %p4307_p0, %p4306_p13 }
  0x88   : > { %p4304_p9 = pneg %p4303_p11 }
  0x8a   : > { %p4309_p7 = pnand %p4308_p3, %p4304_p9 }
  0x8c   : > { %4312 = shalt.err (!%p4309_p7)
}
  0x8d   : > { %s6223_s3 = smov 8   ;;  %s6224_s23 = smov 128  }
  0x8e   : > { %4038 = dma.hbm_to_vmem [thread:$0]  (!%p4780_p2), %s573_s18, 2048, %s575_s14, %s4790_s9, %s6224_s23, %s6224_s23, %s6223_s3  }
  0x8f   : > { %s4599_s13 = smov [#allocation5]   ;;  %s593_s2 = scalar_lea.hbm %s6152_s7, %s4788_s12 }
  0x90   : > { %s431_s22 = sshll.u32 %s4599_s13, 4  ;;  %s594_s25 = sshll.u32 %s593_s2, 4  ;;  %s432_s22 = int_to_ptr.vmem [resolvable:$true] %s431_s22  ;;  %s595_s25 = int_to_ptr.hbm [resolvable:$true] %s594_s25 }
  0x91   : > { %4016 = dma.hbm_to_vmem [thread:$0]  (!%p4732_p10), %s430_s21, 1024, %s432_s22, [#allocation6], %s6224_s23, %s6224_s23, %s6223_s3  }
  0x92   : > { %s588_s19 = scalar_lea.vmem [#allocation12], %s4785_s29  ;;  %s4358_s14 = sshra.s32 %s595_s25, 4  ;;  %s4359_s14 = int_to_ptr.hbm [resolvable:$true] %s4358_s14 }
  0x93   : > { %s596_s30 = sshll.u32 %s588_s19, 4  ;;  %s4360_s18 = scalar_lea.hbm %s4359_s14, 64  ;;  %s597_s30 = int_to_ptr.vmem [resolvable:$true] %s596_s30 }
  0x94   : > { %p4361_p1 = scmp.ne.s32.totalorder %s4359_s14, %s4360_s18  ;;  %s4365_s12 = scalar_lea.hbm %s6152_s7, 128 }
  0x95   : > { %p4366_p13 = scmp.lt.s32.totalorder %s4359_s14, %s6152_s7  ;;  %p4367_p0 = scmp.lt.s32.totalorder %s4365_s12, %s4360_s18 }
  0x96   : > { %p4363_p11 = pnand %p4361_p1, %p4794_p12 }
  0x97   : > { %p4368_p3 = por %p4367_p0, %p4366_p13 }
  0x98   : > { %p4364_p9 = pneg %p4363_p11 }
  0x9a   : > { %p4369_p7 = pnand %p4368_p3, %p4364_p9 }
  0x9c   : > { %4372 = shalt.err (!%p4369_p7)
}
  0x9d   : > { %4041 = dma.hbm_to_vmem [thread:$0]  (!%p4780_p2), %s595_s25, 1024, %s597_s30, %s4790_s9, %s6218_s28, %s6218_s28, %s6217_s20  }
  0x9e   : > { %s444_s3 = sshll.u32 %s6155_s10, 4  ;;  %s4600_s23 = smov [#allocation14]   ;;  %s445_s3 = int_to_ptr.hbm [resolvable:$true] %s444_s3 }
  0x9f   : > { %s446_s22 = sshll.u32 %s4600_s23, 4  ;;  %s455_s19 = sshll.u32 %s6156_s11, 4  ;;  %s447_s22 = int_to_ptr.vmem [resolvable:$true] %s446_s22  ;;  %s456_s19 = int_to_ptr.hbm [resolvable:$true] %s455_s19 }
  0xa0   : > { %4019 = dma.hbm_to_vmem [thread:$0]  (!%p4732_p10), %s445_s3, 128, %s447_s22, [#allocation6]  }
  0xa1   : > { %s4601_s14 = smov [#allocation15]   ;;  %s3553_s17 = sshll.u32 %s4767_s26, 2 }
  0xa2   : > { %s457_s18 = sshll.u32 %s4601_s14, 4  ;;  %s3554_s25 = sshll.u32 %s4592_s16, 2  ;;  %s458_s18 = int_to_ptr.vmem [resolvable:$true] %s457_s18 }
  0xa3   : > { %4022 = dma.hbm_to_vmem [thread:$0]  (!%p4732_p10), %s456_s19, 1024, %s458_s18, [#allocation16], %s6218_s28, %s6218_s28, %s6217_s20  }
  0xa4   : > { %s610_s30 = scalar_lea.vmem [#allocation13], %s3553_s17  ;;  %s614_s4 = scalar_lea.hbm %s6153_s8, %s3554_s25 }
  0xa5   : > { %s617_s24 = sshll.u32 %s610_s30, 4  ;;  %s615_s29 = sshll.u32 %s614_s4, 4  ;;  %s618_s24 = int_to_ptr.vmem [resolvable:$true] %s617_s24  ;;  %s616_s29 = int_to_ptr.hbm [resolvable:$true] %s615_s29 }
  0xa6   : > { %s4448_s21 = sshra.s32 %s616_s29, 4  ;;  %s4455_s20 = scalar_lea.hbm %s6153_s8, 8  ;;  %s4449_s21 = int_to_ptr.hbm [resolvable:$true] %s4448_s21 }
  0xa7   : > { %s4450_s3 = scalar_lea.hbm %s4449_s21, 4  ;;  %p4456_p10 = scmp.lt.s32.totalorder %s4449_s21, %s6153_s8 }
  0xa8   : > { %p4451_p1 = scmp.ne.s32.totalorder %s4449_s21, %s4450_s3  ;;  %p4457_p13 = scmp.lt.s32.totalorder %s4455_s20, %s4450_s3 }
  0xaa   : > { %p4453_p11 = pnand %p4451_p1, %p4794_p12  ;;  %p4458_p0 = por %p4457_p13, %p4456_p10 }
  0xac   : > { %p4454_p9 = pneg %p4453_p11 }
  0xae   : > { %p4459_p3 = pnand %p4458_p0, %p4454_p9 }
  0xb0   : > { %4462 = shalt.err (!%p4459_p3)
}
  0xb1   : > { %s4602_s22 = smov 16   ;;  %s4603_s5 = smov 1  }
  0xb2   : > { %4044 = dma.hbm_to_vmem [thread:$0]  (!%p4780_p2), %s616_s29, 64, %s618_s24, %s4790_s9, %s4602_s22, %s4602_s22, %s4603_s5  }
  0xb3   : > { %637 = sbr.rel (%p4724_p8) target bundleno = 1619 (0x653), region = 72  ;;  %s6226_s2 = sld [smem:[#allocation30_spill]] (!%p4724_p8) }
  0xb9   : > { %p6227_p12 = scmp.eq.s32.totalorder %s6226_s2, 0 }
  0xbb   : > { %4551 = dma.done.wait (%p6227_p12), [#allocation3], 384   ;;  %p6228_p7 = pmov %p6227_p12 }
  0xbd   : > { %4553 = vsyncadd (%p6228_p7), [#allocation3], 4294966912  ;;  %p6229_p1 = pmov %p6228_p7 }
  0xbf   : > { %4555 = dma.done.wait (%p6229_p1), [#allocation6], 1024   ;;  %p6230_p11 = pmov %p6229_p1 }
  0xc0   : > { %s6231_s19 = sld [smem:[#allocation28_spill]]  ;;  %s649_s15 = sand.u32 1, %s6226_s2  }
  0xc1   : > { %4557 = vsyncadd (%p6230_p11), [#allocation6], 4294966272  ;;  %s650_s17 = scalar_lea.sflag [#allocation3], %s649_s15 }
  0xc6   : > { %s4958_s9 = sand.u32 1, %s6231_s19  }
  0xc7   : > { %s3558_s18 = sshll.u32 %s4958_s9, 7 }
  0xc8   : > { %s4961_s25 = scalar_lea.vmem [#allocation7], %s3558_s18 }
  0xc9   : > { %4559 = dma.done.wait (%p4711_p4), %s650_s17, 8256  }
  0xca   : > { %4561 = vsyncadd (%p4711_p4), %s650_s17, 4294959040  ;;  %s4968_s30 = sshll.u32 %s4958_s9, 6  ;;  %s3564_s24 = sshll.u32 %s4958_s9, 2 }
  0xcb   : > { %s4972_s12 = scalar_lea.vmem [#allocation8], %s4968_s30  ;;  %s4975_s13 = scalar_lea.vmem [#allocation9], %s4968_s30 }
  0xcc   : > { %s4978_s4 = scalar_lea.vmem [#allocation10], %s4968_s30  ;;  %s4980_s29 = scalar_lea.vmem [#allocation11], %s3558_s18 }
  0xcd   : > { %s4983_s21 = scalar_lea.vmem [#allocation12], %s4968_s30  ;;  %s4985_s3 = scalar_lea.vmem [#allocation13], %s3564_s24 }
  0xce   : > { %p6233_p4 = pmov %p6229_p1 }
  0xcf   : > { %p6234_p8 = pmov %p6229_p1 }
  0xd0   : > { %4563 = dma.done.wait (%p6233_p4), [#allocation6], 128  }
  0xd1   : > { %4565 = vsyncadd (%p6234_p8), [#allocation6], 4294967168  ;;  %p6235_p2 = pmov %p6229_p1 }
  0xd2   : > { %p6236_p9 = pmov %p6229_p1 }
  0xd3   : > { %4567 = dma.done.wait (%p6235_p2), [#allocation16], 1024  }
  0xd4   : > { %4569 = vsyncadd (%p6236_p9), [#allocation16], 4294966272  ;;  %s3567_s27 = sshll.u32 %s4958_s9, 3  ;;  %s3569_s26 = sshll.u32 %s6226_s2, 2  ;;  %v3632_v0 = vld [vmem:[%s4961_s25 + $0x70] sm:$0xf] }
  0xd5   : > { %p810_p10 = scmp.lt.s32.totalorder %s3569_s26, 7  ;;  %s6237_s23 = sld [smem:[#allocation42_spill]]  ;;  %v3915_v1 = vld [vmem:[%s4961_s25 + $0x74] sm:$0xf0]  ;;  %v3914_v2 = vld [vmem:[%s4961_s25 + $0x74] sm:$0xf] }
  0xd6   : > { %v3633_v3 = vor.u32 %v3915_v1, %v3632_v0  ;;  %v3634_v4 = vld [vmem:[%s4961_s25 + $0x78] sm:$0xf0]  ;;  %v3624_v6 = vld [vmem:[%s4961_s25 + $0x60] sm:$0xf]  ;;  %v3913_v8 = vld [vmem:[%s4961_s25 + $0x64] sm:$0xf0] }
  0xd7   : > { %s6251_s26 = smov (!%p810_p10, %s3569_s26), 7  ;;  %v3933_v5 = vld [vmem:[%s4975_s13 + $0x38] sm:$0xff]  ;;  %v3637_v7 = vor.u32 %v3914_v2, %v3634_v4  ;;  %v3912_v9 = vld [vmem:[%s4961_s25 + $0x64] sm:$0xf]  ;;  %v3626_v10 = vld [vmem:[%s4961_s25 + $0x68] sm:$0xf0]  ;;  %v3625_v11 = vor.u32 %v3913_v8, %v3624_v6 }
  0xd8   : > { %920 = vmatpush.bf16.msra.mxu0 %v3633_v3  ;;  %1108 = vmatpush.bf16.msra.mxu3 %v3933_v5  ;;  %v3932_v12 = vld [vmem:[%s4975_s13 + $0x30] sm:$0xff]  ;;  %v3629_v13 = vor.u32 %v3912_v9, %v3626_v10  ;;  %v3911_v15 = vld [vmem:[%s4961_s25 + $0x54] sm:$0xf0]  ;;  %v3618_v17 = vld [vmem:[%s4961_s25 + $0x58] sm:$0xf0]  ;;  %s6054_s5 = scalar_lea.vmem [#allocation18], %s4968_s30 }
  0xd9   : > { %934 = vmatpush.bf16.msra.mxu1 %v3637_v7  ;;  %v3616_v14 = vld [vmem:[%s4961_s25 + $0x50] sm:$0xf]  ;;  %v3910_v16 = vld [vmem:[%s4961_s25 + $0x54] sm:$0xf]  ;;  %v3924_v18 = vld [vmem:[%s4972_s12 + $0x38] sm:$0xff]  ;;  %s6079_s0 = scalar_lea.vmem [#allocation17], %s3567_s27 }
  0xda   : > { %v3617_v19 = vor.u32 %v3911_v15, %v3616_v14  ;;  %v3931_v20 = vld [vmem:[%s4975_s13 + $0x28] sm:$0xff]  ;;  %v3621_v21 = vor.u32 %v3910_v16, %v3618_v17  ;;  %v3608_v22 = vld [vmem:[%s4961_s25 + $0x40] sm:$0xf]  ;;  %1021 = vmatpush.bf16.msra.mxu2 %v3924_v18  ;;  %v3923_v24 = vld [vmem:[%s4972_s12 + $0x30] sm:$0xff]  ;;  %p3847_p13 = scmp.ne.s32.totalorder %s6226_s2, 1 }
  0xdb   : > { %s5000_s22 = scalar_lea.vmem %s6237_s23, %s6251_s26  ;;  %v3909_v23 = vld [vmem:[%s4961_s25 + $0x44] sm:$0xf0]  ;;  %v3908_v25 = vld [vmem:[%s4961_s25 + $0x44] sm:$0xf]  ;;  %v3610_v26 = vld [vmem:[%s4961_s25 + $0x48] sm:$0xf0] }
  0xdc   : > { %921 = vmatpush.bf16.msra.mxu0 %v3625_v11  ;;  %1109 = vmatpush.bf16.msra.mxu3 %v3932_v12  ;;  %v3609_v27 = vor.u32 %v3909_v23, %v3608_v22  ;;  %v3930_v28 = vld [vmem:[%s4975_s13 + $0x20] sm:$0xff]  ;;  %v3613_v29 = vor.u32 %v3908_v25, %v3610_v26  ;;  %v3600_v30 = vld [vmem:[%s4961_s25 + $0x30] sm:$0xf]  ;;  %v3907_v31 = vld [vmem:[%s4961_s25 + $0x34] sm:$0xf0]  ;;  %s6238_s14 = sld [smem:[#allocation43_spill]] (!%p3847_p13) }
  0xdd   : > { %935 = vmatpush.bf16.msra.mxu1 %v3629_v13  ;;  %v3922_v32 = vld [vmem:[%s4972_s12 + $0x28] sm:$0xff]  ;;  %v3906_v33 = vld [vmem:[%s4961_s25 + $0x34] sm:$0xf]  ;;  %v3602_v34 = vld [vmem:[%s4961_s25 + $0x38] sm:$0xf0]  ;;  %v3601_v35 = vor.u32 %v3907_v31, %v3600_v30 }
  0xde   : > { %1022 = vmatpush.bf16.msra.mxu2 %v3923_v24  ;;  %v3929_v36 = vld [vmem:[%s4975_s13 + $0x18] sm:$0xff]  ;;  %v3605_v37 = vor.u32 %v3906_v33, %v3602_v34  ;;  %v3592_v38 = vld [vmem:[%s4961_s25 + $0x20] sm:$0xf]  ;;  %v3905_v39 = vld [vmem:[%s4961_s25 + $0x24] sm:$0xf0] }
  0xdf   : > { %v3921_v40 = vld [vmem:[%s4972_s12 + $0x20] sm:$0xff]  ;;  %v3594_v42 = vld [vmem:[%s4961_s25 + $0x28] sm:$0xf0]  ;;  %v3593_v43 = vor.u32 %v3905_v39, %v3592_v38  ;;  %v3928_v44 = vld [vmem:[%s4975_s13 + $0x10] sm:$0xff] }
  0xe0   : > { %922 = vmatpush.bf16.msra.mxu0 %v3617_v19  ;;  %1110 = vmatpush.bf16.msra.mxu3 %v3931_v20  ;;  %v3904_v41 = vld [vmem:[%s4961_s25 + $0x24] sm:$0xf]  ;;  %v3584_v46 = vld [vmem:[%s4961_s25 + $0x10] sm:$0xf]  ;;  %v3903_v47 = vld [vmem:[%s4961_s25 + $0x14] sm:$0xf0] }
  0xe1   : > { %936 = vmatpush.bf16.msra.mxu1 %v3621_v21  ;;  %v3597_v45 = vor.u32 %v3904_v41, %v3594_v42  ;;  %v3920_v48 = vld [vmem:[%s4972_s12 + $0x18] sm:$0xff]  ;;  %v3902_v49 = vld [vmem:[%s4961_s25 + $0x14] sm:$0xf]  ;;  %v3585_v51 = vor.u32 %v3903_v47, %v3584_v46  ;;  %v3927_v52 = vld [vmem:[%s4975_s13 + $0x8] sm:$0xff] }
  0xe2   : > { %1023 = vmatpush.bf16.msra.mxu2 %v3922_v32  ;;  %v3586_v50 = vld [vmem:[%s4961_s25 + $0x18] sm:$0xf0]  ;;  %v3576_v54 = vld [vmem:[%s4961_s25] sm:$0xf]  ;;  %v3901_v55 = vld [vmem:[%s4961_s25 + $0x4] sm:$0xf0] }
  0xe3   : > { %v3589_v53 = vor.u32 %v3902_v49, %v3586_v50  ;;  %v3919_v56 = vld [vmem:[%s4972_s12 + $0x10] sm:$0xff]  ;;  %v3900_v57 = vld [vmem:[%s4961_s25 + $0x4] sm:$0xf]  ;;  %v3578_v58 = vld [vmem:[%s4961_s25 + $0x8] sm:$0xf0]  ;;  %v3577_v61 = vor.u32 %v3901_v55, %v3576_v54 }
  0xe4   : > { %923 = vmatpush.bf16.msra.mxu0 %v3609_v27  ;;  %1111 = vmatpush.bf16.msra.mxu3 %v3930_v28  ;;  %v3800_v59 = vld [vmem:[%s4980_s29 + $0x70] sm:$0xf]  ;;  %v3957_v60 = vld [vmem:[%s4980_s29 + $0x74] sm:$0xf0]  ;;  %v3926_v62 = vld [vmem:[%s4975_s13] sm:$0xff]  ;;  %v3581_v0 = vor.u32 %v3900_v57, %v3578_v58 }
  0xe5   : > { %937 = vmatpush.bf16.msra.mxu1 %v3613_v29  ;;  %v3941_v63 = vld [vmem:[%s4978_s4 + $0x38] sm:$0xff]  ;;  %v3801_v1 = vor.u32 %v3957_v60, %v3800_v59  ;;  %v3792_v3 = vld [vmem:[%s4980_s29 + $0x60] sm:$0xf]  ;;  %v3955_v4 = vld [vmem:[%s4980_s29 + $0x64] sm:$0xf0] }
  0xe6   : > { %1024 = vmatpush.bf16.msra.mxu2 %v3921_v40  ;;  %v3965_v2 = vld [vmem:[%s4983_s21 + $0x38] sm:$0xff]  ;;  %v5054_v5 = vld [vmem:[#allocation2] sm:$0xff]  ;;  %v3940_v8 = vld [vmem:[%s4978_s4 + $0x30] sm:$0xff]  ;;  %v3793_v11 = vor.u32 %v3955_v4, %v3792_v3 }
  0xe7   : > { %v3918_v6 = vld [vmem:[%s4972_s12 + $0x8] sm:$0xff]  ;;  %v5057_v7 = vld [vmem:[#allocation2 + $0x10] sm:$0xff]  ;;  %v3956_v9 = vld [vmem:[%s4980_s29 + $0x74] sm:$0xf] }
  0xe8   : > { %924 = vmatpush.bf16.msra.mxu0 %v3601_v35  ;;  %1112 = vmatpush.bf16.msra.mxu3 %v3929_v36  ;;  %v3802_v10 = vld [vmem:[%s4980_s29 + $0x78] sm:$0xf0]  ;;  %v3964_v12 = vld [vmem:[%s4983_s21 + $0x30] sm:$0xff]  ;;  %v3953_v14 = vld [vmem:[%s4980_s29 + $0x54] sm:$0xf0] }
  0xe9   : > { %938 = vmatpush.bf16.msra.mxu1 %v3605_v37  ;;  %v3784_v13 = vld [vmem:[%s4980_s29 + $0x50] sm:$0xf]  ;;  %v3917_v15 = vld [vmem:[%s4972_s12] sm:$0xff]  ;;  %v3805_v16 = vor.u32 %v3956_v9, %v3802_v10  ;;  %v3939_v17 = vld [vmem:[%s4978_s4 + $0x28] sm:$0xff] }
  0xea   : > { %1025 = vmatpush.bf16.msra.mxu2 %v3920_v48  ;;  %v3954_v18 = vld [vmem:[%s4980_s29 + $0x64] sm:$0xf]  ;;  %v3794_v19 = vld [vmem:[%s4980_s29 + $0x68] sm:$0xf0]  ;;  %v3785_v20 = vor.u32 %v3953_v14, %v3784_v13  ;;  %v3776_v22 = vld [vmem:[%s4980_s29 + $0x40] sm:$0xf] }
  0xeb   : > { %v3963_v21 = vld [vmem:[%s4983_s21 + $0x28] sm:$0xff]  ;;  %v5075_v24 = vld [vmem:[#allocation2 + $0x8] sm:$0xff]  ;;  %v3797_v25 = vor.u32 %v3954_v18, %v3794_v19  ;;  %v3938_v26 = vld [vmem:[%s4978_s4 + $0x20] sm:$0xff] }
  0xec   : > { %925 = vmatpush.bf16.msra.mxu0 %v3593_v43  ;;  %1113 = vmatpush.bf16.msra.mxu3 %v3928_v44  ;;  %v3951_v23 = vld [vmem:[%s4980_s29 + $0x44] sm:$0xf0]  ;;  %v3952_v27 = vld [vmem:[%s4980_s29 + $0x54] sm:$0xf]  ;;  %v3786_v28 = vld [vmem:[%s4980_s29 + $0x58] sm:$0xf0] }
  0xed   : > { %939 = vmatpush.bf16.msra.mxu1 %v3597_v45  ;;  %v3777_v29 = vor.u32 %v3951_v23, %v3776_v22  ;;  %v3962_v30 = vld [vmem:[%s4983_s21 + $0x20] sm:$0xff]  ;;  %v3768_v31 = vld [vmem:[%s4980_s29 + $0x30] sm:$0xf]  ;;  %v3949_v32 = vld [vmem:[%s4980_s29 + $0x34] sm:$0xf0]  ;;  %v3789_v33 = vor.u32 %v3952_v27, %v3786_v28 }
  0xee   : > { %1026 = vmatpush.bf16.msra.mxu2 %v3919_v56  ;;  %v3937_v34 = vld [vmem:[%s4978_s4 + $0x18] sm:$0xff]  ;;  %v3950_v35 = vld [vmem:[%s4980_s29 + $0x44] sm:$0xf]  ;;  %v3778_v36 = vld [vmem:[%s4980_s29 + $0x48] sm:$0xf0]  ;;  %v3769_v37 = vor.u32 %v3949_v32, %v3768_v31 }
  0xef   : > { %v3961_v38 = vld [vmem:[%s4983_s21 + $0x18] sm:$0xff]  ;;  %v3760_v39 = vld [vmem:[%s4980_s29 + $0x20] sm:$0xf]  ;;  %v3947_v40 = vld [vmem:[%s4980_s29 + $0x24] sm:$0xf0]  ;;  %v3781_v41 = vor.u32 %v3950_v35, %v3778_v36 }
  0xf0   : > { %926 = vmatpush.bf16.msra.mxu0 %v3585_v51  ;;  %1114 = vmatpush.bf16.msra.mxu3 %v3927_v52  ;;  %v3936_v42 = vld [vmem:[%s4978_s4 + $0x10] sm:$0xff]  ;;  %v3770_v44 = vld [vmem:[%s4980_s29 + $0x38] sm:$0xf0]  ;;  %v3761_v45 = vor.u32 %v3947_v40, %v3760_v39  ;;  %v3945_v48 = vld [vmem:[%s4980_s29 + $0x14] sm:$0xf0] }
  0xf1   : > { %940 = vmatpush.bf16.msra.mxu1 %v3589_v53  ;;  %v3948_v43 = vld [vmem:[%s4980_s29 + $0x34] sm:$0xf]  ;;  %v3752_v47 = vld [vmem:[%s4980_s29 + $0x10] sm:$0xf]  ;;  %v3935_v50 = vld [vmem:[%s4978_s4 + $0x8] sm:$0xff] }
  0xf2   : > { %1027 = vmatpush.bf16.msra.mxu2 %v3918_v6  ;;  %v3960_v46 = vld [vmem:[%s4983_s21 + $0x10] sm:$0xff]  ;;  %v3773_v49 = vor.u32 %v3948_v43, %v3770_v44  ;;  %v3946_v51 = vld [vmem:[%s4980_s29 + $0x24] sm:$0xf]  ;;  %v3762_v52 = vld [vmem:[%s4980_s29 + $0x28] sm:$0xf0]  ;;  %v3753_v53 = vor.u32 %v3945_v48, %v3752_v47 }
  0xf3   : > { %v3959_v54 = vld [vmem:[%s4983_s21 + $0x8] sm:$0xff]  ;;  %v3744_v55 = vld [vmem:[%s4980_s29] sm:$0xf]  ;;  %v3765_v57 = vor.u32 %v3946_v51, %v3762_v52  ;;  %v3944_v59 = vld [vmem:[%s4980_s29 + $0x14] sm:$0xf] }
  0xf4   : > { %927 = vmatpush.bf16.msra.mxu0 %v3577_v61  ;;  %1115 = vmatpush.bf16.msra.mxu3 %v3926_v62  ;;  %v3943_v56 = vld [vmem:[%s4980_s29 + $0x4] sm:$0xf0]  ;;  %v3934_v58 = vld [vmem:[%s4978_s4] sm:$0xff]  ;;  %v3754_v60 = vld [vmem:[%s4980_s29 + $0x18] sm:$0xf0] }
  0xf5   : > { %941 = vmatpush.bf16.msra.mxu1 %v3581_v0  ;;  %v3745_v61 = vor.u32 %v3943_v56, %v3744_v55  ;;  %v3958_v62 = vld [vmem:[%s4983_s21] sm:$0xff] }
  0xf6   : > { %1028 = vmatpush.bf16.msra.mxu2 %v3917_v15  ;;  %v3942_v0 = vld [vmem:[%s4980_s29 + $0x4] sm:$0xf] }
  0xf7   : > { %928 = vmatmul.bf16.vlgmr.msra.gmra.mxu0 %v5054_v5  ;;  %1116 = vmatmul.bf16.vlgmr.msra.gmra.mxu3 %v5057_v7  ;;  %v5135_v19 = vld [vmem:[%s4985_s3] ss:$0 sm:$0xff] }
  0xf8   : > { %1186 = vmatpush.bf16.msrb.mxu0 %v3941_v63  ;;  %1388 = vmatpush.bf16.msrb.mxu3 %v3965_v2  ;;  %v3757_v63 = vor.u32 %v3944_v59, %v3754_v60 }
  0xf9   : > { %1296 = vmatpush.bf16.msrb.mxu1 %v3801_v1  ;;  %1029 = vmatmul.bf16.vlgmr.msra.gmra.mxu2 %v5075_v24  ;;  %v3746_v1 = vld [vmem:[%s4980_s29 + $0x8] sm:$0xf0] }
  0xfa   : > { %942 = vmatmul.bf16.vlgmr.msra.gmra.mxu1 %v5054_v5  ;;  %1310 = vmatpush.bf16.msrb.mxu2 %v3805_v16  ;;  %v3749_v2 = vor.u32 %v3942_v0, %v3746_v1 }
  0xfc   : > { %1187 = vmatpush.bf16.msrb.mxu0 %v3940_v8  ;;  %1389 = vmatpush.bf16.msrb.mxu3 %v3964_v12 }
  0xfd   : > { %1297 = vmatpush.bf16.msrb.mxu1 %v3793_v11 }
  0xfe   : > { %1311 = vmatpush.bf16.msrb.mxu2 %v3797_v25 }
 0x100   : > { %1188 = vmatpush.bf16.msrb.mxu0 %v3939_v17  ;;  %1390 = vmatpush.bf16.msrb.mxu3 %v3963_v21 }
 0x101   : > { %1298 = vmatpush.bf16.msrb.mxu1 %v3785_v20  ;;  %v5138_v20 = vld [vmem:[%s4985_s3 + $0x1] ss:$0 sm:$0xff] }
 0x102   : > { %1312 = vmatpush.bf16.msrb.mxu2 %v3789_v33 }
 0x104   : > { %1189 = vmatpush.bf16.msrb.mxu0 %v3938_v26  ;;  %1391 = vmatpush.bf16.msrb.mxu3 %v3962_v30 }
 0x105   : > { %1299 = vmatpush.bf16.msrb.mxu1 %v3777_v29 }
 0x106   : > { %1313 = vmatpush.bf16.msrb.mxu2 %v3781_v41 }
 0x108   : > { %1190 = vmatpush.bf16.msrb.mxu0 %v3937_v34  ;;  %1392 = vmatpush.bf16.msrb.mxu3 %v3961_v38 }
 0x109   : > { %1300 = vmatpush.bf16.msrb.mxu1 %v3769_v37 }
 0x10a   : > { %1314 = vmatpush.bf16.msrb.mxu2 %v3773_v49 }
 0x10c   : > { %1191 = vmatpush.bf16.msrb.mxu0 %v3936_v42  ;;  %1393 = vmatpush.bf16.msrb.mxu3 %v3960_v46 }
 0x10d   : > { %1301 = vmatpush.bf16.msrb.mxu1 %v3761_v45 }
 0x10e   : > { %1315 = vmatpush.bf16.msrb.mxu2 %v3765_v57 }
 0x110   : > { %1192 = vmatpush.bf16.msrb.mxu0 %v3935_v50  ;;  %1394 = vmatpush.bf16.msrb.mxu3 %v3959_v54 }
 0x111   : > { %1302 = vmatpush.bf16.msrb.mxu1 %v3753_v53 }
 0x112   : > { %1316 = vmatpush.bf16.msrb.mxu2 %v3757_v63 }
 0x114   : > { %1193 = vmatpush.bf16.msrb.mxu0 %v3934_v58  ;;  %1395 = vmatpush.bf16.msrb.mxu3 %v3958_v62 }
 0x115   : > { %1303 = vmatpush.bf16.msrb.mxu1 %v3745_v61 }
 0x116   : > { %1317 = vmatpush.bf16.msrb.mxu2 %v3749_v2 }
 0x117   : > { %1194 = vmatmul.bf16.vlgmr.msrb.gmra.mxu0 %v5075_v24  ;;  %1396 = vmatmul.bf16.vlgmr.msrb.gmra.mxu3 %v5057_v7 }
 0x118   : > { %1304 = vmatmul.bf16.vlgmr.msrb.gmra.mxu1 %v5054_v5 }
 0x119   : > { %1318 = vmatmul.bf16.vlgmr.msrb.gmra.mxu2 %v5054_v5 }
 0x174   : > { %v5112_v3 = vpop.f32.mrf.mxu0 }
 0x177   : > { %v5114_v4 = vpop.f32.mrf.mxu1 }
 0x17c   : > { %v5116_v6 = vpop.f32.mrf.mxu0  ;;  %v5120_v9 = vpop.f32.mrf.mxu2 }
 0x17f   : > { %v5118_v8 = vpop.f32.mrf.mxu1 }
 0x184   : > { %v5130_v14 = vpop.f32.mrf.mxu2 }
 0x194   : > { %v5122_v10 = vpop.f32.mrf.mxu0 }
 0x195   : > { %v5124_v11 = vpop.f32.mrf.mxu1  ;;  %v1418_v7 = vperm.slane %v5122_v10, 0  ;;  %v1405_v5 = vrot.slane %v5122_v10, 2  ;;  %v1404_v12 = vrot.slane %v5122_v10, 1  ;;  %v1407_v26 = vrot.slane %v5122_v10, 4 }
 0x196   : > { %v1840_v13 = vperm.slane %v5124_v11, 0  ;;  %v1406_v41 = vrot.slane %v5122_v10, 3  ;;  %v1408_v46 = vrot.slane %v5122_v10, 5  ;;  %v1410_v61 = vrot.slane %v5122_v10, 7 }
 0x197   : > { %v1450_v15 = vadd.f32 %v1418_v7, %v5112_v3  ;;  %v1420_v16 = vperm.slane %v1405_v5, 0  ;;  %v1419_v17 = vperm.slane %v1404_v12, 0  ;;  %v1451_v23 = vadd.f32 %v1418_v7, %v5116_v6 }
 0x198   : > { %v1873_v18 = vadd.f32 %v1840_v13, %v5130_v14  ;;  %v1422_v38 = vperm.slane %v1407_v26, 0  ;;  %v1872_v40 = vadd.f32 %v1840_v13, %v5120_v9  ;;  %v1421_v50 = vperm.slane %v1406_v41, 0 }
 0x199   : > { %vm1482_vm0 = vcmp.gt.f32.partialorder %v1450_v15, 0.0  ;;  %v1514_v21 = vmul.f32 0.2, %v1450_v15  ;;  %v1454_v22 = vadd.f32 %v1420_v16, %v5112_v3  ;;  %v1452_v25 = vadd.f32 %v1419_v17, %v5112_v3 }
 0x19a   : > { %vm1905_vm1 = vcmp.gt.f32.partialorder %v1873_v18, 0.0  ;;  %v1937_v24 = vmul.f32 0.2, %v1873_v18  ;;  %v1455_v29 = vadd.f32 %v1420_v16, %v5116_v6  ;;  %v1515_v34 = vmul.f32 0.2, %v1451_v23 }
 0x19b   : > { %v1546_v27 = vsel %vm1482_vm0, %v1450_v15, %v1514_v21  ;;  %vm1486_vm2 = vcmp.gt.f32.partialorder %v1454_v22, 0.0  ;;  %v1518_v28 = vmul.f32 0.2, %v1454_v22  ;;  %vm1483_vm3 = vcmp.gt.f32.partialorder %v1451_v23, 0.0 }
 0x19c   : > { %v1969_v30 = vsel %vm1905_vm1, %v1873_v18, %v1937_v24  ;;  %v1582_v31 = vmul.f32 %v5135_v19, %v1546_v27  ;;  %v1516_v36 = vmul.f32 0.2, %v1452_v25  ;;  %vm1484_vm4 = vcmp.gt.f32.partialorder %v1452_v25, 0.0 }
 0x19d   : > { %v2006_v32 = vmul.f32 %v5138_v20, %v1969_v30  ;;  %v1550_v33 = vsel %vm1486_vm2, %v1454_v22, %v1518_v28  ;;  %v1519_v37 = vmul.f32 0.2, %v1455_v29  ;;  %vm1487_vm5 = vcmp.gt.f32.partialorder %v1455_v29, 0.0 }
 0x19e   : > { %1614 = vadd.xlane.f32.xlu0 %v1582_v31  ;;  %v1586_v35 = vmul.f32 %v5135_v19, %v1550_v33  ;;  %v1547_v39 = vsel %vm1483_vm3, %v1451_v23, %v1515_v34  ;;  %v1548_v42 = vsel %vm1484_vm4, %v1452_v25, %v1516_v36  ;;  %v1453_v43 = vadd.f32 %v1419_v17, %v5116_v6 }
 0x19f   : > { %2039 = vadd.xlane.f32.xlu1 %v2006_v32  ;;  %v1551_v44 = vsel %vm1487_vm5, %v1455_v29, %v1519_v37  ;;  %v1458_v45 = vadd.f32 %v1422_v38, %v5112_v3  ;;  %v1583_v47 = vmul.f32 %v5135_v19, %v1547_v39  ;;  %v1584_v48 = vmul.f32 %v5135_v19, %v1548_v42 }
 0x1a0   : > { %1622 = vadd.xlane.f32.xlu2 %v1586_v35  ;;  %v1936_v49 = vmul.f32 0.2, %v1872_v40  ;;  %v1587_v51 = vmul.f32 %v5135_v19, %v1551_v44  ;;  %vm1904_vm6 = vcmp.gt.f32.partialorder %v1872_v40, 0.0  ;;  %v1517_v52 = vmul.f32 0.2, %v1453_v43 }
 0x1a1   : > { %vm1485_vm7 = vcmp.gt.f32.partialorder %v1453_v43, 0.0  ;;  %v1522_v53 = vmul.f32 0.2, %v1458_v45  ;;  %v1423_v54 = vperm.slane %v1408_v46, 0  ;;  %vm1490_vm8 = vcmp.gt.f32.partialorder %v1458_v45, 0.0 }
 0x1a2   : > { %v1968_v55 = vsel %vm1904_vm6, %v1872_v40, %v1936_v49  ;;  %v1456_v56 = vadd.f32 %v1421_v50, %v5112_v3  ;;  %v1549_v57 = vsel %vm1485_vm7, %v1453_v43, %v1517_v52  ;;  %v1457_v58 = vadd.f32 %v1421_v50, %v5116_v6 }
 0x1a3   : > { %v1554_v59 = vsel %vm1490_vm8, %v1458_v45, %v1522_v53  ;;  %v1461_v60 = vadd.f32 %v1423_v54, %v5116_v6  ;;  %v2005_v62 = vmul.f32 %v5138_v20, %v1968_v55  ;;  %v1585_v63 = vmul.f32 %v5135_v19, %v1549_v57 }
 0x1a4   : > { %v1520_v0 = vmul.f32 0.2, %v1456_v56  ;;  %v1590_v1 = vmul.f32 %v5135_v19, %v1554_v59  ;;  %vm1488_vm9 = vcmp.gt.f32.partialorder %v1456_v56, 0.0  ;;  %v1521_v2 = vmul.f32 0.2, %v1457_v58 }
 0x1a5   : > { %vm1489_vm10 = vcmp.gt.f32.partialorder %v1457_v58, 0.0  ;;  %v1525_v7 = vmul.f32 0.2, %v1461_v60  ;;  %v1425_v5 = vperm.slane %v1410_v61, 0  ;;  %vm1493_vm11 = vcmp.gt.f32.partialorder %v1461_v60, 0.0 }
 0x1a6   : > { %1616 = vadd.xlane.f32.xlu0 %v1583_v47  ;;  %v1552_v12 = vsel %vm1488_vm9, %v1456_v56, %v1520_v0  ;;  %v1459_v13 = vadd.f32 %v1422_v38, %v5116_v6  ;;  %v1409_v15 = vrot.slane %v5122_v10, 6  ;;  %v1553_v16 = vsel %vm1489_vm10, %v1457_v58, %v1521_v2  ;;  %v5186_v58 = vpop.f32.mrf.mxu3 }
 0x1a7   : > { %1618 = vadd.xlane.f32.xlu1 %v1584_v48  ;;  %v1460_v17 = vadd.f32 %v1423_v54, %v5112_v3  ;;  %v1557_v18 = vsel %vm1493_vm11, %v1461_v60, %v1525_v7  ;;  %v1464_v21 = vadd.f32 %v1425_v5, %v5112_v3  ;;  %v1826_v22 = vrot.slane %v5124_v11, 1 }
 0x1a8   : > { %1624 = vadd.xlane.f32.xlu2 %v1587_v51  ;;  %v1588_v23 = vmul.f32 %v5135_v19, %v1552_v12  ;;  %v1589_v24 = vmul.f32 %v5135_v19, %v1553_v16  ;;  %v1523_v25 = vmul.f32 0.2, %v1459_v13  ;;  %v1424_v26 = vperm.slane %v1409_v15, 0 }
 0x1a9   : > { %v1593_v27 = vmul.f32 %v5135_v19, %v1557_v18  ;;  %vm1491_vm12 = vcmp.gt.f32.partialorder %v1459_v13, 0.0  ;;  %v1524_v28 = vmul.f32 0.2, %v1460_v17  ;;  %vm1492_vm13 = vcmp.gt.f32.partialorder %v1460_v17, 0.0 }
 0x1aa   : > { %v1528_v10 = vmul.f32 0.2, %v1464_v21  ;;  %v1841_v29 = vperm.slane %v1826_v22, 0  ;;  %vm1496_vm14 = vcmp.gt.f32.partialorder %v1464_v21, 0.0  ;;  %v1555_v30 = vsel %vm1491_vm12, %v1459_v13, %v1523_v25 }
 0x1ab   : > { %v1462_v31 = vadd.f32 %v1424_v26, %v5112_v3  ;;  %v1556_v32 = vsel %vm1492_vm13, %v1460_v17, %v1524_v28  ;;  %v1463_v33 = vadd.f32 %v1424_v26, %v5116_v6  ;;  %v1827_v34 = vrot.slane %v5124_v11, 2 }
 0x1ac   : > { %v1560_v35 = vsel %vm1496_vm14, %v1464_v21, %v1528_v10  ;;  %v1874_v36 = vadd.f32 %v1841_v29, %v5120_v9  ;;  %v1591_v37 = vmul.f32 %v5135_v19, %v1555_v30  ;;  %v1592_v38 = vmul.f32 %v5135_v19, %v1556_v32 }
 0x1ad   : > { %v1526_v39 = vmul.f32 0.2, %v1462_v31  ;;  %v1596_v40 = vmul.f32 %v5135_v19, %v1560_v35  ;;  %vm1494_vm15 = vcmp.gt.f32.partialorder %v1462_v31, 0.0  ;;  %v1527_v41 = vmul.f32 0.2, %v1463_v33 }
 0x1ae   : > { %2037 = vadd.xlane.f32.xlu0 %v2005_v62  ;;  %v1842_v42 = vperm.slane %v1827_v34, 0  ;;  %vm1495_vm0 = vcmp.gt.f32.partialorder %v1463_v33, 0.0  ;;  %v1938_v43 = vmul.f32 0.2, %v1874_v36  ;;  %vm1906_vm1 = vcmp.gt.f32.partialorder %v1874_v36, 0.0  ;;  %v5195_v21 = vpop.f32.mrf.mxu3 }
 0x1af   : > { %1620 = vadd.xlane.f32.xlu1 %v1585_v63  ;;  %v1558_v44 = vsel %vm1494_vm15, %v1462_v31, %v1526_v39  ;;  %v1465_v45 = vadd.f32 %v1425_v5, %v5116_v6  ;;  %v1559_v46 = vsel %vm1495_vm0, %v1463_v33, %v1527_v41  ;;  %v1828_v48 = vrot.slane %v5124_v11, 3 }
 0x1b0   : > { %1630 = vadd.xlane.f32.xlu2 %v1590_v1  ;;  %v1876_v47 = vadd.f32 %v1842_v42, %v5120_v9  ;;  %v1970_v49 = vsel %vm1906_vm1, %v1874_v36, %v1938_v43  ;;  %v1877_v50 = vadd.f32 %v1842_v42, %v5130_v14  ;;  %v1829_v51 = vrot.slane %v5124_v11, 4  ;;  %v5210_v43 = vpop.f32.mrf.mxu0 }
 0x1b1   : > { %v1594_v52 = vmul.f32 %v5135_v19, %v1558_v44  ;;  %v1595_v53 = vmul.f32 %v5135_v19, %v1559_v46  ;;  %v1529_v54 = vmul.f32 0.2, %v1465_v45  ;;  %v2007_v55 = vmul.f32 %v5138_v20, %v1970_v49 }
 0x1b2   : > { %vm1497_vm2 = vcmp.gt.f32.partialorder %v1465_v45, 0.0  ;;  %v1940_v56 = vmul.f32 0.2, %v1876_v47  ;;  %v1843_v57 = vperm.slane %v1828_v48, 0  ;;  %vm1908_vm3 = vcmp.gt.f32.partialorder %v1876_v47, 0.0 }
 0x1b3   : > { %v1941_v59 = vmul.f32 0.2, %v1877_v50  ;;  %v1844_v60 = vperm.slane %v1829_v51, 0  ;;  %vm1909_vm4 = vcmp.gt.f32.partialorder %v1877_v50, 0.0  ;;  %v1561_v61 = vsel %vm1497_vm2, %v1465_v45, %v1529_v54 }
 0x1b4   : > { %v1875_v62 = vadd.f32 %v1841_v29, %v5130_v14  ;;  %v1972_v63 = vsel %vm1908_vm3, %v1876_v47, %v1940_v56  ;;  %v1879_v0 = vadd.f32 %v1843_v57, %v5130_v14  ;;  %v1830_v1 = vrot.slane %v5124_v11, 5 }
 0x1b5   : > { %v1973_v2 = vsel %vm1909_vm4, %v1877_v50, %v1941_v59  ;;  %v1880_v7 = vadd.f32 %v1844_v60, %v5120_v9  ;;  %v1597_v5 = vmul.f32 %v5135_v19, %v1561_v61  ;;  %v2009_v12 = vmul.f32 %v5138_v20, %v1972_v63  ;;  %v5220_v59 = vpop.f32.mrf.mxu1 }
 0x1b6   : > { %1626 = vadd.xlane.f32.xlu0 %v1588_v23  ;;  %v1939_v13 = vmul.f32 0.2, %v1875_v62  ;;  %v2010_v15 = vmul.f32 %v5138_v20, %v1973_v2  ;;  %vm1907_vm5 = vcmp.gt.f32.partialorder %v1875_v62, 0.0  ;;  %v1943_v16 = vmul.f32 0.2, %v1879_v0 }
 0x1b7   : > { %1628 = vadd.xlane.f32.xlu1 %v1589_v24  ;;  %v1845_v17 = vperm.slane %v1830_v1, 0  ;;  %vm1911_vm6 = vcmp.gt.f32.partialorder %v1879_v0, 0.0  ;;  %v1944_v18 = vmul.f32 0.2, %v1880_v7  ;;  %vm1912_vm7 = vcmp.gt.f32.partialorder %v1880_v7, 0.0 }
 0x1b8   : > { %1636 = vadd.xlane.f32.xlu2 %v1593_v27  ;;  %v1971_v22 = vsel %vm1907_vm5, %v1875_v62, %v1939_v13  ;;  %v1878_v23 = vadd.f32 %v1843_v57, %v5120_v9  ;;  %v1975_v24 = vsel %vm1911_vm6, %v1879_v0, %v1943_v16  ;;  %v1831_v26 = vrot.slane %v5124_v11, 6 }
 0x1b9   : > { %v1882_v25 = vadd.f32 %v1845_v17, %v5120_v9  ;;  %v1976_v27 = vsel %vm1912_vm7, %v1880_v7, %v1944_v18  ;;  %v1883_v28 = vadd.f32 %v1845_v17, %v5130_v14  ;;  %v1832_v10 = vrot.slane %v5124_v11, 7 }
 0x1ba   : > { %v2008_v29 = vmul.f32 %v5138_v20, %v1971_v22  ;;  %v2012_v30 = vmul.f32 %v5138_v20, %v1975_v24  ;;  %v1942_v31 = vmul.f32 0.2, %v1878_v23  ;;  %v2013_v32 = vmul.f32 %v5138_v20, %v1976_v27 }
 0x1bb   : > { %vm1910_vm8 = vcmp.gt.f32.partialorder %v1878_v23, 0.0  ;;  %v1946_v33 = vmul.f32 0.2, %v1882_v25  ;;  %v1846_v34 = vperm.slane %v1831_v26, 0  ;;  %vm1914_vm9 = vcmp.gt.f32.partialorder %v1882_v25, 0.0 }
 0x1bc   : > { %v1947_v35 = vmul.f32 0.2, %v1883_v28  ;;  %v1847_v36 = vperm.slane %v1832_v10, 0  ;;  %vm1915_vm10 = vcmp.gt.f32.partialorder %v1883_v28, 0.0  ;;  %v1881_v11 = vadd.f32 %v1844_v60, %v5130_v14 }
 0x1bd   : > { %v1885_v39 = vadd.f32 %v1846_v34, %v5130_v14  ;;  %v1426_v51 = vperm.slane %v5210_v43, 0  ;;  %v1848_v2 = vperm.slane %v5220_v59, 0 }
 0x1be   : > { %1632 = vadd.xlane.f32.xlu0 %v1591_v37  ;;  %v1974_v37 = vsel %vm1910_vm8, %v1878_v23, %v1942_v31  ;;  %v1979_v41 = vsel %vm1915_vm10, %v1883_v28, %v1947_v35  ;;  %v1886_v42 = vadd.f32 %v1847_v36, %v5120_v9  ;;  %v1945_v46 = vmul.f32 0.2, %v1881_v11 }
 0x1bf   : > { %1634 = vadd.xlane.f32.xlu1 %v1592_v38  ;;  %v1978_v38 = vsel %vm1914_vm9, %v1882_v25, %v1946_v33  ;;  %v2011_v44 = vmul.f32 %v5138_v20, %v1974_v37  ;;  %v2016_v47 = vmul.f32 %v5138_v20, %v1979_v41  ;;  %vm1913_vm11 = vcmp.gt.f32.partialorder %v1881_v11, 0.0 }
 0x1c0   : > { %1642 = vadd.xlane.f32.xlu2 %v1596_v40  ;;  %v5207_v40 = vpop.f32.mrf.mxu3  ;;  %v2015_v45 = vmul.f32 %v5138_v20, %v1978_v38  ;;  %v1949_v48 = vmul.f32 0.2, %v1885_v39  ;;  %vm1917_vm12 = vcmp.gt.f32.partialorder %v1885_v39, 0.0  ;;  %v1950_v50 = vmul.f32 0.2, %v1886_v42 }
 0x1c1   : > { %v2253_v49 = vperm.slane %v5207_v40, 0  ;;  %vm1918_vm13 = vcmp.gt.f32.partialorder %v1886_v42, 0.0  ;;  %v1467_v57 = vadd.f32 %v1426_v51, %v5116_v6  ;;  %v1889_v17 = vadd.f32 %v1848_v2, %v5130_v14 }
 0x1c2   : > { %v1981_v54 = vsel %vm1917_vm12, %v1885_v39, %v1949_v48  ;;  %v1982_v56 = vsel %vm1918_vm13, %v1886_v42, %v1950_v50  ;;  %v2239_v18 = vrot.slane %v5207_v40, 1  ;;  %v1888_v31 = vadd.f32 %v1848_v2, %v5120_v9 }
 0x1c3   : > { %v2018_v61 = vmul.f32 %v5138_v20, %v1981_v54  ;;  %v2019_v63 = vmul.f32 %v5138_v20, %v1982_v56  ;;  %v1531_v1 = vmul.f32 0.2, %v1467_v57  ;;  %vm1499_vm0 = vcmp.gt.f32.partialorder %v1467_v57, 0.0 }
 0x1c4   : > { %v1953_v27 = vmul.f32 0.2, %v1889_v17  ;;  %v2254_v28 = vperm.slane %v2239_v18, 0  ;;  %vm1921_vm3 = vcmp.gt.f32.partialorder %v1889_v17, 0.0  ;;  %v1952_v38 = vmul.f32 0.2, %v1888_v31 }
 0x1c5   : > { %v1563_v16 = vsel %vm1499_vm0, %v1467_v57, %v1531_v1  ;;  %vm1920_vm5 = vcmp.gt.f32.partialorder %v1888_v31, 0.0  ;;  %v2242_v50 = vrot.slane %v5207_v40, 4  ;;  %v2243_v1 = vrot.slane %v5207_v40, 5 }
 0x1c6   : > { %1638 = vadd.xlane.f32.xlu0 %v1594_v52  ;;  %v1977_v52 = vsel %vm1913_vm11, %v1881_v11, %v1945_v46  ;;  %v1599_v25 = vmul.f32 %v5135_v19, %v1563_v16  ;;  %v1985_v33 = vsel %vm1921_vm3, %v1889_v17, %v1953_v27  ;;  %v1984_v46 = vsel %vm1920_vm5, %v1888_v31, %v1952_v38 }
 0x1c7   : > { %1640 = vadd.xlane.f32.xlu1 %v1595_v53  ;;  %v1884_v53 = vadd.f32 %v1846_v34, %v5120_v9  ;;  %v2014_v60 = vmul.f32 %v5138_v20, %v1977_v52  ;;  %v2287_v34 = vadd.f32 %v2254_v28, %v5114_v4  ;;  %v2022_v11 = vmul.f32 %v5138_v20, %v1985_v33 }
 0x1c8   : > { %2041 = vadd.xlane.f32.xlu2 %v2007_v55  ;;  %v2286_v55 = vadd.f32 %v2253_v49, %v5118_v8  ;;  %v2021_v52 = vmul.f32 %v5138_v20, %v1984_v46  ;;  %v2258_v18 = vperm.slane %v2243_v1, 0  ;;  %vm1719_vm3 = vcmask 130112  }
 0x1c9   : > { %v1948_v62 = vmul.f32 0.2, %v1884_v53  ;;  %vm1916_vm14 = vcmp.gt.f32.partialorder %v1884_v53, 0.0  ;;  %v2351_v41 = vmul.f32 0.2, %v2287_v34  ;;  %vm2319_vm6 = vcmp.gt.f32.partialorder %v2287_v34, 0.0 }
 0x1ca   : > { %v2350_v0 = vmul.f32 0.2, %v2286_v55  ;;  %vm2318_vm15 = vcmp.gt.f32.partialorder %v2286_v55, 0.0  ;;  %v2295_v27 = vadd.f32 %v2258_v18, %v5114_v4 }
 0x1cb   : > { %v1980_v7 = vsel %vm1916_vm14, %v1884_v53, %v1948_v62  ;;  %v2383_v48 = vsel %vm2319_vm6, %v2287_v34, %v2351_v41 }
 0x1cc   : > { %v2382_v13 = vsel %vm2318_vm15, %v2286_v55, %v2350_v0  ;;  %v2017_v22 = vmul.f32 %v5138_v20, %v1980_v7  ;;  %vm2327_vm14 = vcmp.gt.f32.partialorder %v2295_v27, 0.0 }
 0x1ce   : > { %1644 = vadd.xlane.f32.xlu0 %v1597_v5  ;;  %v5227_v5 = vld [vmem:[%s4985_s3 + $0x2] ss:$0 sm:$0xff] }
 0x1cf   : > { %2045 = vadd.xlane.f32.xlu1 %v2009_v12  ;;  %v1887_v12 = vadd.f32 %v1847_v36, %v5130_v14  ;;  %v2419_v23 = vmul.f32 %v5227_v5, %v2382_v13  ;;  %v2420_v55 = vmul.f32 %v5227_v5, %v2383_v48 }
 0x1d0   : > { %2047 = vadd.xlane.f32.xlu2 %v2010_v15  ;;  %v1466_v15 = vadd.f32 %v1426_v51, %v5112_v3 }
 0x1d1   : > { %v1951_v24 = vmul.f32 0.2, %v1887_v12  ;;  %vm1919_vm1 = vcmp.gt.f32.partialorder %v1887_v12, 0.0 }
 0x1d2   : > { %v1530_v26 = vmul.f32 0.2, %v1466_v15  ;;  %vm1498_vm2 = vcmp.gt.f32.partialorder %v1466_v15, 0.0 }
 0x1d3   : > { %v1983_v10 = vsel %vm1919_vm1, %v1887_v12, %v1951_v24 }
 0x1d4   : > { %v2020_v35 = vmul.f32 %v5138_v20, %v1983_v10 }
 0x1d6   : > { %2043 = vadd.xlane.f32.xlu0 %v2008_v29  ;;  %v2285_v29 = vadd.f32 %v2253_v49, %v5114_v4 }
 0x1d7   : > { %2051 = vadd.xlane.f32.xlu1 %v2012_v30  ;;  %v1562_v30 = vsel %vm1498_vm2, %v1466_v15, %v1530_v26 }
 0x1d8   : > { %2053 = vadd.xlane.f32.xlu2 %v2013_v32  ;;  %v2240_v32 = vrot.slane %v5207_v40, 2  ;;  %v1598_v36 = vmul.f32 %v5135_v19, %v1562_v30  ;;  %v2349_v37 = vmul.f32 0.2, %v2285_v29  ;;  %vm2317_vm4 = vcmp.gt.f32.partialorder %v2285_v29, 0.0 }
 0x1da   : > { %v2255_v39 = vperm.slane %v2240_v32, 0  ;;  %v2381_v42 = vsel %vm2317_vm4, %v2285_v29, %v2349_v37  ;;  %v2296_v29 = vadd.f32 %v2258_v18, %v5118_v8 }
 0x1db   : > { %v2418_v51 = vmul.f32 %v5227_v5, %v2381_v42 }
 0x1dc   : > { %v2290_v49 = vadd.f32 %v2255_v39, %v5118_v8  ;;  %v2360_v37 = vmul.f32 0.2, %v2296_v29  ;;  %vm2328_vm15 = vcmp.gt.f32.partialorder %v2296_v29, 0.0 }
 0x1de   : > { %2049 = vadd.xlane.f32.xlu0 %v2011_v44  ;;  %v2288_v44 = vadd.f32 %v2254_v28, %v5118_v8  ;;  %v2354_v57 = vmul.f32 0.2, %v2290_v49  ;;  %vm2322_vm9 = vcmp.gt.f32.partialorder %v2290_v49, 0.0  ;;  %v1412_v28 = vrot.slane %v5210_v43, 2 }
 0x1df   : > { %2057 = vadd.xlane.f32.xlu1 %v2015_v45  ;;  %v2241_v45 = vrot.slane %v5207_v40, 3 }
 0x1e0   : > { %2059 = vadd.xlane.f32.xlu2 %v2016_v47  ;;  %v2289_v47 = vadd.f32 %v2255_v39, %v5114_v4  ;;  %v2352_v53 = vmul.f32 0.2, %v2288_v44  ;;  %vm2320_vm7 = vcmp.gt.f32.partialorder %v2288_v44, 0.0  ;;  %v2386_v2 = vsel %vm2322_vm9, %v2290_v49, %v2354_v57 }
 0x1e1   : > { %v2256_v54 = vperm.slane %v2241_v45, 0  ;;  %v2423_v16 = vmul.f32 %v5227_v5, %v2386_v2  ;;  %v2392_v49 = vsel %vm2328_vm15, %v2296_v29, %v2360_v37  ;;  %v1414_v2 = vrot.slane %v5210_v43, 4 }
 0x1e2   : > { %v2353_v56 = vmul.f32 0.2, %v2289_v47  ;;  %vm2321_vm8 = vcmp.gt.f32.partialorder %v2289_v47, 0.0 }
 0x1e3   : > { %v2291_v62 = vadd.f32 %v2256_v54, %v5114_v4  ;;  %v2292_v0 = vadd.f32 %v2256_v54, %v5118_v8  ;;  %v1430_v29 = vperm.slane %v1414_v2, 0 }
 0x1e5   : > { %v2355_v15 = vmul.f32 0.2, %v2291_v62  ;;  %vm2323_vm10 = vcmp.gt.f32.partialorder %v2291_v62, 0.0  ;;  %v2356_v17 = vmul.f32 0.2, %v2292_v0  ;;  %vm2324_vm11 = vcmp.gt.f32.partialorder %v2292_v0, 0.0 }
 0x1e6   : > { %2055 = vadd.xlane.f32.xlu0 %v2014_v60  ;;  %v2257_v60 = vperm.slane %v2242_v50, 0  ;;  %v1474_v37 = vadd.f32 %v1430_v29, %v5112_v3 }
 0x1e7   : > { %2063 = vadd.xlane.f32.xlu1 %v2018_v61  ;;  %v2384_v61 = vsel %vm2320_vm7, %v2288_v44, %v2352_v53  ;;  %v2387_v24 = vsel %vm2323_vm10, %v2291_v62, %v2355_v15  ;;  %v2388_v26 = vsel %vm2324_vm11, %v2292_v0, %v2356_v17  ;;  %v1413_v44 = vrot.slane %v5210_v43, 3 }
 0x1e8   : > { %2065 = vadd.xlane.f32.xlu2 %v2019_v63  ;;  %v2385_v63 = vsel %vm2321_vm8, %v2289_v47, %v2353_v56  ;;  %v2293_v7 = vadd.f32 %v2257_v60, %v5114_v4  ;;  %v2421_v12 = vmul.f32 %v5227_v5, %v2384_v61  ;;  %v2424_v30 = vmul.f32 %v5227_v5, %v2387_v24 }
 0x1e9   : > { %v2422_v13 = vmul.f32 %v5227_v5, %v2385_v63  ;;  %v2425_v32 = vmul.f32 %v5227_v5, %v2388_v26  ;;  %v2429_v56 = vmul.f32 %v5227_v5, %v2392_v49  ;;  %vm1766_vm7 = vcmask 1041409  }
 0x1ea   : > { %vm2325_vm12 = vcmp.gt.f32.partialorder %v2293_v7, 0.0  ;;  %vm1768_vm8 = vcmask 1042434   ;;  %vm1506_vm9 = vcmp.gt.f32.partialorder %v1474_v37, 0.0 }
 0x1ee   : > { %2061 = vadd.xlane.f32.xlu0 %v2017_v22  ;;  %v2357_v22 = vmul.f32 0.2, %v2293_v7 }
 0x1ef   : > { %2452 = vadd.xlane.f32.xlu1 %v2419_v23  ;;  %v1411_v23 = vrot.slane %v5210_v43, 1 }
 0x1f0   : > { %1648 = vadd.xlane.f32.xlu2 %v1599_v25  ;;  %v2294_v25 = vadd.f32 %v2257_v60, %v5118_v8  ;;  %v2389_v10 = vsel %vm2325_vm12, %v2293_v7, %v2357_v22  ;;  %v1415_v22 = vrot.slane %v5210_v43, 5  ;;  %vm1770_vm12 = vcmask 1043459  }
 0x1f1   : > { %v1427_v31 = vperm.slane %v1411_v23, 0  ;;  %v2426_v34 = vmul.f32 %v5227_v5, %v2389_v10 }
 0x1f2   : > { %v2358_v33 = vmul.f32 0.2, %v2294_v25  ;;  %vm2326_vm13 = vcmp.gt.f32.partialorder %v2294_v25, 0.0 }
 0x1f3   : > { %v1469_v38 = vadd.f32 %v1427_v31, %v5116_v6  ;;  %v1468_v39 = vadd.f32 %v1427_v31, %v5112_v3 }
 0x1f4   : > { %v2390_v42 = vsel %vm2326_vm13, %v2294_v25, %v2358_v33  ;;  %v1416_v33 = vrot.slane %v5210_v43, 6 }
 0x1f5   : > { %v1532_v53 = vmul.f32 0.2, %v1468_v39  ;;  %vm1501_vm0 = vcmp.gt.f32.partialorder %v1469_v38, 0.0  ;;  %vm1500_vm1 = vcmp.gt.f32.partialorder %v1468_v39, 0.0 }
 0x1f6   : > { %2067 = vadd.xlane.f32.xlu0 %v2020_v35  ;;  %v2359_v35 = vmul.f32 0.2, %v2295_v27 }
 0x1f7   : > { %1646 = vadd.xlane.f32.xlu1 %v1598_v36  ;;  %v1428_v36 = vperm.slane %v1412_v28, 0  ;;  %v1564_v62 = vsel %vm1500_vm1, %v1468_v39, %v1532_v53 }
 0x1f8   : > { %2071 = vadd.xlane.f32.xlu2 %v2022_v11  ;;  %v1714_v11 = vlaneseq  ;;  %v2391_v46 = vsel %vm2327_vm14, %v2295_v27, %v2359_v35  ;;  %v1600_v26 = vmul.f32 %v5135_v19, %v1564_v62 }
 0x1f9   : > { %v1470_v47 = vadd.f32 %v1428_v36, %v5112_v3  ;;  %v2428_v54 = vmul.f32 %v5227_v5, %v2391_v46  ;;  %v1471_v1 = vadd.f32 %v1428_v36, %v5116_v6 }
 0x1fa   : > { %v5272_v50 = vand.u32 127, %v1714_v11 }
 0x1fb   : > { %v1534_v57 = vmul.f32 0.2, %v1470_v47  ;;  %vm1502_vm2 = vcmp.gt.f32.partialorder %v1470_v47, 0.0  ;;  %v1535_v10 = vmul.f32 0.2, %v1471_v1  ;;  %vm1503_vm5 = vcmp.gt.f32.partialorder %v1471_v1, 0.0 }
 0x1fc   : > { %v5278_v60 = vadd.s32 4294967288, %v5272_v50 }
 0x1fd   : > { %v1566_v15 = vsel %vm1502_vm2, %v1470_v47, %v1534_v57  ;;  %v1567_v36 = vsel %vm1503_vm5, %v1471_v1, %v1535_v10 }
 0x1fe   : > { %2450 = vadd.xlane.f32.xlu0 %v2418_v51  ;;  %v2427_v51 = vmul.f32 %v5227_v5, %v2390_v42  ;;  %v1602_v27 = vmul.f32 %v5135_v19, %v1566_v15  ;;  %v1475_v42 = vadd.f32 %v1430_v29, %v5116_v6 }
 0x1ff   : > { %2069 = vadd.xlane.f32.xlu1 %v2021_v52  ;;  %v1533_v52 = vmul.f32 0.2, %v1469_v38 }
 0x200   : > { %2454 = vadd.xlane.f32.xlu2 %v2420_v55  ;;  %v1429_v55 = vperm.slane %v1413_v44, 0  ;;  %v1539_v57 = vmul.f32 0.2, %v1475_v42  ;;  %vm1507_vm10 = vcmp.gt.f32.partialorder %v1475_v42, 0.0 }
 0x201   : > { %v1565_v61 = vsel %vm1501_vm0, %v1469_v38, %v1533_v52  ;;  %vm1772_vm0 = vcmask 1044484  }
 0x202   : > { %v1472_v0 = vadd.f32 %v1429_v55, %v5112_v3  ;;  %v1601_v18 = vmul.f32 %v5135_v19, %v1565_v61  ;;  %v1571_v15 = vsel %vm1507_vm10, %v1475_v42, %v1539_v57 }
 0x204   : > { %v1536_v28 = vmul.f32 0.2, %v1472_v0  ;;  %vm1504_vm4 = vcmp.gt.f32.partialorder %v1472_v0, 0.0 }
 0x206   : > { %2456 = vadd.xlane.f32.xlu0 %v2421_v12  ;;  %v1568_v35 = vsel %vm1504_vm4, %v1472_v0, %v1536_v28 }
 0x207   : > { %2458 = vadd.xlane.f32.xlu1 %v2422_v13  ;;  %v1604_v53 = vmul.f32 %v5135_v19, %v1568_v35 }
 0x208   : > { %2460 = vadd.xlane.f32.xlu2 %v2423_v16  ;;  %v1473_v16 = vadd.f32 %v1429_v55, %v5116_v6 }
 0x20a   : > { %v1537_v31 = vmul.f32 0.2, %v1473_v16  ;;  %vm1505_vm6 = vcmp.gt.f32.partialorder %v1473_v16, 0.0 }
 0x20e   : > { %2462 = vadd.xlane.f32.xlu0 %v2424_v30 }
 0x20f   : > { %2464 = vadd.xlane.f32.xlu1 %v2425_v32  ;;  %v1431_v32 = vperm.slane %v1415_v22, 0 }
 0x210   : > { %2466 = vadd.xlane.f32.xlu2 %v2426_v34 }
 0x211   : > { %v1615_v41 = vpop.xlane.xlu0 %1614  ;;  %v1477_v2 = vadd.f32 %v1431_v32, %v5116_v6 }
 0x212   : > { %v5269_v45 = vpop.xlane.xlu1 %2039  ;;  %v1716_v7 = vperm.slane %v1615_v41, %v5272_v50  ;;  %v1569_v41 = vsel %vm1505_vm6, %v1473_v16, %v1537_v31 }
 0x213   : > { %v1623_v48 = vpop.xlane.xlu2 %1622  ;;  %v2139_v11 = vperm.slane %v5269_v45, %v5278_v60  ;;  %v1603_v45 = vmul.f32 %v5135_v19, %v1567_v36  ;;  %vm1509_vm14 = vcmp.gt.f32.partialorder %v1477_v2, 0.0  ;;  %v1833_v36 = vrot.slane %v5220_v59, 1 }
 0x214   : > { %v1724_v23 = vperm.slane %v1623_v48, %v5272_v50  ;;  %v1476_v48 = vadd.f32 %v1431_v32, %v5112_v3 }
 0x216   : > { %2468 = vadd.xlane.f32.xlu0 %v2427_v51  ;;  %v1432_v51 = vperm.slane %v1416_v33, 0  ;;  %v1540_v62 = vmul.f32 0.2, %v1476_v48  ;;  %vm1508_vm11 = vcmp.gt.f32.partialorder %v1476_v48, 0.0 }
 0x217   : > { %2470 = vadd.xlane.f32.xlu1 %v2428_v54  ;;  %v1538_v54 = vmul.f32 0.2, %v1474_v37 }
 0x218   : > { %2472 = vadd.xlane.f32.xlu2 %v2429_v56  ;;  %v1605_v56 = vmul.f32 %v5135_v19, %v1569_v41  ;;  %v1479_v16 = vadd.f32 %v1432_v51, %v5116_v6  ;;  %v1572_v22 = vsel %vm1508_vm11, %v1476_v48, %v1540_v62 }
 0x219   : > { %v1617_v63 = vpop.xlane.xlu0 %1616  ;;  %v1570_v1 = vsel %vm1506_vm9, %v1474_v37, %v1538_v54  ;;  %v1608_v29 = vmul.f32 %v5135_v19, %v1572_v22  ;;  %v1835_v37 = vrot.slane %v5220_v59, 3  ;;  %v1849_v54 = vperm.slane %v1833_v36, 0 }
 0x21a   : > { %v1718_v12 = vperm.slane %v1617_v63, %v5278_v60  ;;  %v1619_v13 = vpop.xlane.xlu1 %1618  ;;  %v1478_v63 = vadd.f32 %v1432_v51, %v5112_v3  ;;  %vm1511_vm15 = vcmp.gt.f32.partialorder %v1479_v16, 0.0 }
 0x21b   : > { %v1625_v17 = vpop.xlane.xlu2 %1624  ;;  %v1721_v44 = vperm.slane %v1619_v13, %v5272_v50 }
 0x21c   : > { %v1720_v24 = vsel %vm1719_vm3, %v1718_v12, %v1716_v7  ;;  %v1725_v25 = vperm.slane %v1625_v17, %v5278_v60  ;;  %v1417_v7 = vrot.slane %v5210_v43, 7  ;;  %vm1510_vm13 = vcmp.gt.f32.partialorder %v1478_v63, 0.0 }
 0x21d   : > { %v1607_v43 = vmul.f32 %v5135_v19, %v1571_v15 }
 0x21e   : > { %v1726_v30 = vsel %vm1719_vm3, %v1725_v25, %v1724_v23  ;;  %1650 = vadd.xlane.f32.xlu0 %v1600_v26  ;;  %v1834_v23 = vrot.slane %v5220_v59, 2  ;;  %v1542_v25 = vmul.f32 0.2, %v1478_v63  ;;  %v1433_v28 = vperm.slane %v1417_v7, 0 }
 0x21f   : > { %1652 = vadd.xlane.f32.xlu1 %v1601_v18 }
 0x220   : > { %1654 = vadd.xlane.f32.xlu2 %v1602_v27  ;;  %v1541_v27 = vmul.f32 0.2, %v1477_v2  ;;  %v5326_v31 = vperm.slane %v1834_v23, 0  ;;  %v1574_v32 = vsel %vm1510_vm13, %v1478_v63, %v1542_v25  ;;  %v1480_v35 = vadd.f32 %v1433_v28, %v5112_v3 }
 0x221   : > { %v2038_v34 = vpop.xlane.xlu0 %2037  ;;  %v1481_v41 = vadd.f32 %v1433_v28, %v5116_v6 }
 0x222   : > { %v2138_v38 = vperm.slane %v2038_v34, %v5272_v50  ;;  %v1621_v39 = vpop.xlane.xlu1 %1620  ;;  %v1573_v34 = vsel %vm1509_vm14, %v1477_v2, %v1541_v27  ;;  %v1892_v48 = vadd.f32 %v5326_v31, %v5120_v9  ;;  %vm1512_vm1 = vcmp.gt.f32.partialorder %v1480_v35, 0.0 }
 0x223   : > { %v1722_v46 = vperm.slane %v1621_v39, %v5278_v60  ;;  %v5302_v47 = vpop.xlane.xlu2 %1630  ;;  %v1609_v51 = vmul.f32 %v5135_v19, %v1573_v34  ;;  %vm1513_vm2 = vcmp.gt.f32.partialorder %v1481_v41, 0.0 }
 0x224   : > { %v5306_v49 = vsel %vm1719_vm3, %v2139_v11, %v2138_v38  ;;  %v1730_v11 = vperm.slane %v5302_v47, %v5272_v50  ;;  %v1610_v47 = vmul.f32 %v5135_v19, %v1574_v32  ;;  %v1956_v57 = vmul.f32 0.2, %v1892_v48 }
 0x225   : > { %v1723_v52 = vsel %vm1719_vm3, %v1722_v46, %v1721_v44  ;;  %vm1924_vm4 = vcmp.gt.f32.partialorder %v1892_v48, 0.0 }
 0x226   : > { %v1767_v55 = vsel %vm1766_vm7, %v1723_v52, %v1720_v24  ;;  %1656 = vadd.xlane.f32.xlu0 %v1603_v45  ;;  %v1606_v24 = vmul.f32 %v5135_v19, %v1570_v1 }
 0x227   : > { %1658 = vadd.xlane.f32.xlu1 %v1604_v53  ;;  %v1769_v61 = vsel %vm1768_vm8, %v1726_v30, %v1767_v55  ;;  %v1543_v30 = vmul.f32 0.2, %v1479_v16  ;;  %v1544_v53 = vmul.f32 0.2, %v1480_v35 }
 0x228   : > { %1660 = vadd.xlane.f32.xlu2 %v1605_v56  ;;  %v1545_v56 = vmul.f32 0.2, %v1481_v41 }
 0x229   : > { %v1627_v0 = vpop.xlane.xlu0 %1626  ;;  %v1575_v3 = vsel %vm1511_vm15, %v1479_v16, %v1543_v30  ;;  %v1576_v63 = vsel %vm1512_vm1, %v1480_v35, %v1544_v53  ;;  %v1988_v16 = vsel %vm1924_vm4, %v1892_v48, %v1956_v57  ;;  %v1836_v30 = vrot.slane %v5220_v59, 4 }
 0x22a   : > { %v1727_v12 = vperm.slane %v1627_v0, %v5272_v50  ;;  %v1629_v13 = vpop.xlane.xlu1 %1628  ;;  %v1611_v55 = vmul.f32 %v5135_v19, %v1575_v3  ;;  %v1890_v0 = vadd.f32 %v1849_v54, %v5120_v9  ;;  %v1577_v7 = vsel %vm1513_vm2, %v1481_v41, %v1545_v56 }
 0x22b   : > { %v1728_v17 = vperm.slane %v1629_v13, %v5278_v60  ;;  %v1637_v18 = vpop.xlane.xlu2 %1636  ;;  %v1612_v22 = vmul.f32 %v5135_v19, %v1576_v63 }
 0x22c   : > { %v1734_v42 = vperm.slane %v1637_v18, %v5278_v60  ;;  %v1837_v18 = vrot.slane %v5220_v59, 5  ;;  %v1954_v25 = vmul.f32 0.2, %v1890_v0  ;;  %vm1922_vm5 = vcmp.gt.f32.partialorder %v1890_v0, 0.0 }
 0x22d   : > { %v1729_v26 = vsel %vm1719_vm3, %v1728_v17, %v1727_v12  ;;  %v1891_v12 = vadd.f32 %v1849_v54, %v5130_v14 }
 0x22e   : > { %v1771_v10 = vsel %vm1770_vm12, %v1729_v26, %v1769_v61  ;;  %1662 = vadd.xlane.f32.xlu0 %v1606_v24  ;;  %v1851_v61 = vperm.slane %v1835_v37, 0  ;;  %v1613_v24 = vmul.f32 %v5135_v19, %v1577_v7  ;;  %v2025_v26 = vmul.f32 %v5138_v20, %v1988_v16 }
 0x22f   : > { %1664 = vadd.xlane.f32.xlu1 %v1607_v43  ;;  %v1955_v43 = vmul.f32 0.2, %v1891_v12  ;;  %vm1923_vm6 = vcmp.gt.f32.partialorder %v1891_v12, 0.0  ;;  %v5363_v28 = vperm.slane %v1837_v18, 0  ;;  %v1893_v19 = vadd.f32 %v5326_v31, %v5130_v14 }
 0x230   : > { %1666 = vadd.xlane.f32.xlu2 %v1608_v29  ;;  %v1895_v17 = vadd.f32 %v1851_v61, %v5130_v14  ;;  %v1986_v29 = vsel %vm1922_vm5, %v1890_v0, %v1954_v25  ;;  %v1838_v37 = vrot.slane %v5220_v59, 6  ;;  %v2245_v7 = vrot.slane %v5207_v40, 7 }
 0x231   : > { %v1633_v33 = vpop.xlane.xlu0 %1632  ;;  %v1987_v20 = vsel %vm1923_vm6, %v1891_v12, %v1955_v43  ;;  %v1898_v36 = vadd.f32 %v5363_v28, %v5120_v9  ;;  %vm1925_vm10 = vcmp.gt.f32.partialorder %v1893_v19, 0.0 }
 0x232   : > { %v1731_v38 = vperm.slane %v1633_v33, %v5278_v60  ;;  %v1635_v39 = vpop.xlane.xlu1 %1634  ;;  %v1959_v27 = vmul.f32 0.2, %v1895_v17  ;;  %vm1927_vm9 = vcmp.gt.f32.partialorder %v1895_v17, 0.0  ;;  %v1894_v33 = vadd.f32 %v1851_v61, %v5120_v9 }
 0x233   : > { %v1733_v44 = vperm.slane %v1635_v39, %v5272_v50  ;;  %v5337_v46 = vpop.xlane.xlu2 %1642  ;;  %v5377_v39 = vld [vmem:[%s4985_s3 + $0x1] ss:$0 sm:$0xff]  ;;  %vm1930_vm13 = vcmp.gt.f32.partialorder %v1898_v36, 0.0 }
 0x234   : > { %v1732_v45 = vsel %vm1719_vm3, %v1731_v38, %v1730_v11  ;;  %v1991_v35 = vsel %vm1927_vm9, %v1895_v17, %v1959_v27  ;;  %v2023_v31 = vmul.f32 %v5377_v39, %v1986_v29  ;;  %v2024_v41 = vmul.f32 %v5377_v39, %v1987_v20 }
 0x235   : > { %v5345_v52 = vsel %vm1772_vm0, %v1732_v45, %v1771_v10  ;;  %v5348_v6 = vsel %vm1719_vm3, %v1734_v42, %v1733_v44  ;;  %v1957_v42 = vmul.f32 0.2, %v1893_v19  ;;  %v1852_v44 = vperm.slane %v1836_v30, 0 }
 0x236   : > { %1668 = vadd.xlane.f32.xlu0 %v1609_v51  ;;  %v2028_v48 = vmul.f32 %v5377_v39, %v1991_v35  ;;  %v1958_v45 = vmul.f32 0.2, %v1894_v33  ;;  %vm1926_vm11 = vcmp.gt.f32.partialorder %v1894_v33, 0.0  ;;  %v1854_v51 = vperm.slane %v1838_v37, 0  ;;  %v5408_v37 = vpop.f32.mrf.mxu3 }
 0x237   : > { %1670 = vadd.xlane.f32.xlu1 %v1610_v47  ;;  %v1962_v47 = vmul.f32 0.2, %v1898_v36  ;;  %v1989_v54 = vsel %vm1925_vm10, %v1893_v19, %v1957_v42  ;;  %v1897_v63 = vadd.f32 %v1852_v44, %v5130_v14  ;;  %v1839_v29 = vrot.slane %v5220_v59, 7 }
 0x238   : > { %1672 = vadd.xlane.f32.xlu2 %v1611_v55  ;;  %v1896_v55 = vadd.f32 %v1852_v44, %v5120_v9 }
 0x239   : > { %v1639_v62 = vpop.xlane.xlu0 %1638  ;;  %vm1929_vm15 = vcmp.gt.f32.partialorder %v1897_v63, 0.0  ;;  %v1855_v44 = vperm.slane %v1839_v29, 0 }
 0x23a   : > { %v1736_v1 = vperm.slane %v1639_v62, %v5272_v50  ;;  %v1641_v2 = vpop.xlane.xlu1 %1640  ;;  %v1990_v62 = vsel %vm1926_vm11, %v1894_v33, %v1958_v45  ;;  %v1960_v17 = vmul.f32 0.2, %v1896_v55  ;;  %vm1928_vm14 = vcmp.gt.f32.partialorder %v1896_v55, 0.0 }
 0x23b   : > { %v1737_v13 = vperm.slane %v1641_v2, %v5278_v60  ;;  %v2042_v15 = vpop.xlane.xlu2 %2041  ;;  %v1901_v2 = vadd.f32 %v1854_v51, %v5130_v14  ;;  %v2027_v16 = vmul.f32 %v5377_v39, %v1990_v62  ;;  %v1900_v33 = vadd.f32 %v1854_v51, %v5120_v9 }
 0x23c   : > { %v2141_v56 = vperm.slane %v2042_v15, %v5272_v50  ;;  %v1992_v27 = vsel %vm1928_vm14, %v1896_v55, %v1960_v17  ;;  %v2261_v51 = vperm.slane %v5408_v37, 0  ;;  %v1902_v55 = vadd.f32 %v1855_v44, %v5120_v9 }
 0x23d   : > { %v5359_v23 = vsel %vm1719_vm3, %v1737_v13, %v1736_v1  ;;  %v1994_v1 = vsel %vm1930_vm13, %v1898_v36, %v1962_v47  ;;  %v2026_v13 = vmul.f32 %v5377_v39, %v1989_v54  ;;  %v1965_v25 = vmul.f32 0.2, %v1901_v2 }
 0x23e   : > { %1674 = vadd.xlane.f32.xlu0 %v1612_v22  ;;  %v2031_v18 = vmul.f32 %v5377_v39, %v1994_v1  ;;  %vm1933_vm1 = vcmp.gt.f32.partialorder %v1901_v2, 0.0  ;;  %v1964_v45 = vmul.f32 0.2, %v1900_v33  ;;  %vm1932_vm4 = vcmp.gt.f32.partialorder %v1900_v33, 0.0 }
 0x23f   : > { %1676 = vadd.xlane.f32.xlu1 %v1613_v24  ;;  %v1961_v24 = vmul.f32 0.2, %v1897_v63  ;;  %v1997_v35 = vsel %vm1933_vm1, %v1901_v2, %v1965_v25  ;;  %v1903_v1 = vadd.f32 %v1855_v44, %v5130_v14  ;;  %v1966_v17 = vmul.f32 0.2, %v1902_v55 }
 0x240   : > { %2077 = vadd.xlane.f32.xlu2 %v2025_v26  ;;  %v5398_v26 = vperm.slane %v2245_v7, 0  ;;  %vm1934_vm6 = vcmp.gt.f32.partialorder %v1902_v55, 0.0 }
 0x241   : > { %v5365_v10 = vpop.xlane.xlu0 %1644  ;;  %v1993_v20 = vsel %vm1929_vm15, %v1897_v63, %v1961_v24  ;;  %v1996_v63 = vsel %vm1932_vm4, %v1900_v33, %v1964_v45  ;;  %v1967_v24 = vmul.f32 0.2, %v1903_v1  ;;  %vm1935_vm9 = vcmp.gt.f32.partialorder %v1903_v1, 0.0 }
 0x242   : > { %v2046_v32 = vpop.xlane.xlu1 %2045  ;;  %v2299_v36 = vadd.f32 %v5398_v26, %v5114_v4 }
 0x243   : > { %v2048_v34 = vpop.xlane.xlu2 %2047  ;;  %v2144_v11 = vperm.slane %v2046_v32, %v5272_v50 }
 0x244   : > { %v2145_v38 = vperm.slane %v2048_v34, %v5278_v60  ;;  %v2363_v47 = vmul.f32 0.2, %v2299_v36  ;;  %vm2331_vm5 = vcmp.gt.f32.partialorder %v2299_v36, 0.0 }
 0x246   : > { %v2146_v3 = vsel %vm1719_vm3, %v2145_v38, %v2144_v11  ;;  %2073 = vadd.xlane.f32.xlu0 %v2023_v31  ;;  %v2029_v38 = vmul.f32 %v5377_v39, %v1992_v27  ;;  %v2395_v7 = vsel %vm2331_vm5, %v2299_v36, %v2363_v47  ;;  %v2301_v47 = vadd.f32 %v2261_v51, %v5114_v4 }
 0x247   : > { %2075 = vadd.xlane.f32.xlu1 %v2024_v41  ;;  %v2030_v41 = vmul.f32 %v5377_v39, %v1993_v20  ;;  %v1999_v20 = vsel %vm1935_vm9, %v1903_v1, %v1967_v24 }
 0x248   : > { %2083 = vadd.xlane.f32.xlu2 %v2028_v48  ;;  %v2034_v48 = vmul.f32 %v5377_v39, %v1997_v35  ;;  %vm2333_vm15 = vcmp.gt.f32.partialorder %v2301_v47, 0.0 }
 0x249   : > { %v2044_v53 = vpop.xlane.xlu0 %2043 }
 0x24a   : > { %v2142_v57 = vperm.slane %v2044_v53, %v5278_v60  ;;  %v2052_v61 = vpop.xlane.xlu1 %2051 }
 0x24b   : > { %v5387_v0 = vpop.xlane.xlu2 %2053  ;;  %v2148_v19 = vperm.slane %v2052_v61, %v5278_v60 }
 0x24c   : > { %v2143_v12 = vsel %vm1719_vm3, %v2142_v57, %v2141_v56  ;;  %v2244_v56 = vrot.slane %v5207_v40, 6  ;;  %v2150_v57 = vperm.slane %v5387_v0, %v5272_v50  ;;  %v2033_v0 = vmul.f32 %v5377_v39, %v1996_v63 }
 0x24d   : > { %v2186_v15 = vsel %vm1766_vm7, %v2143_v12, %v5306_v49  ;;  %v1899_v49 = vadd.f32 %v5363_v28, %v5130_v14  ;;  %v2302_v12 = vadd.f32 %v2261_v51, %v5118_v8 }
 0x24e   : > { %2079 = vadd.xlane.f32.xlu0 %v2026_v13  ;;  %v2187_v22 = vsel %vm1768_vm8, %v2146_v3, %v2186_v15 }
 0x24f   : > { %2081 = vadd.xlane.f32.xlu1 %v2027_v16  ;;  %v1963_v42 = vmul.f32 0.2, %v1899_v49  ;;  %vm1931_vm2 = vcmp.gt.f32.partialorder %v1899_v49, 0.0  ;;  %v5432_v16 = vpop.f32.mrf.mxu2  ;;  %v2366_v25 = vmul.f32 0.2, %v2302_v12  ;;  %vm2334_vm10 = vcmp.gt.f32.partialorder %v2302_v12, 0.0 }
 0x250   : > { %2089 = vadd.xlane.f32.xlu2 %v2031_v18  ;;  %v2259_v18 = vperm.slane %v2244_v56, 0 }
 0x251   : > { %v2050_v43 = vpop.xlane.xlu0 %2049  ;;  %v1995_v54 = vsel %vm1931_vm2, %v1899_v49, %v1963_v42  ;;  %v1998_v49 = vsel %vm1934_vm6, %v1902_v55, %v1966_v17  ;;  %v2398_v35 = vsel %vm2334_vm10, %v2302_v12, %v2366_v25  ;;  %v2246_v55 = vrot.slane %v5408_v37, 1 }
 0x252   : > { %v2147_v30 = vperm.slane %v2050_v43, %v5272_v50  ;;  %v2058_v32 = vpop.xlane.xlu1 %2057  ;;  %v2032_v15 = vmul.f32 %v5377_v39, %v1995_v54  ;;  %v2666_v43 = vperm.slane %v5432_v16, 0  ;;  %v2297_v29 = vadd.f32 %v2259_v18, %v5114_v4 }
 0x253   : > { %v2060_v34 = vpop.xlane.xlu2 %2059  ;;  %v2153_v28 = vperm.slane %v2058_v32, %v5272_v50  ;;  %v2298_v33 = vadd.f32 %v2259_v18, %v5118_v8  ;;  %v2300_v54 = vadd.f32 %v5398_v26, %v5118_v8  ;;  %v2365_v26 = vmul.f32 0.2, %v2301_v47 }
 0x254   : > { %v2149_v11 = vsel %vm1719_vm3, %v2148_v19, %v2147_v30  ;;  %v2154_v59 = vperm.slane %v2060_v34, %v5278_v60  ;;  %v2698_v36 = vadd.f32 %v2666_v43, %v5186_v58  ;;  %vm2329_vm11 = vcmp.gt.f32.partialorder %v2297_v29, 0.0 }
 0x255   : > { %v2188_v31 = vsel %vm1770_vm12, %v2149_v11, %v2187_v22  ;;  %v2432_v22 = vmul.f32 %v5227_v5, %v2395_v7  ;;  %v2652_v11 = vrot.slane %v5432_v16, 1  ;;  %v2362_v42 = vmul.f32 0.2, %v2298_v33 }
 0x256   : > { %v5417_v3 = vsel %vm1719_vm3, %v2154_v59, %v2153_v28  ;;  %2085 = vadd.xlane.f32.xlu0 %v2029_v38  ;;  %v2035_v59 = vmul.f32 %v5377_v39, %v1998_v49  ;;  %v2036_v38 = vmul.f32 %v5377_v39, %v1999_v20  ;;  %vm2330_vm13 = vcmp.gt.f32.partialorder %v2298_v33, 0.0 }
 0x257   : > { %2087 = vadd.xlane.f32.xlu1 %v2030_v41  ;;  %v2435_v41 = vmul.f32 %v5227_v5, %v2398_v35  ;;  %v5456_v44 = vpop.f32.mrf.mxu2  ;;  %v5458_v45 = vperm.slane %v2652_v11, 0  ;;  %vm2730_vm14 = vcmp.gt.f32.partialorder %v2698_v36, 0.0  ;;  %v2364_v17 = vmul.f32 0.2, %v2300_v54 }
 0x258   : > { %2095 = vadd.xlane.f32.xlu2 %v2034_v48  ;;  %v2762_v48 = vmul.f32 0.2, %v2698_v36  ;;  %v2262_v18 = vperm.slane %v2246_v55, 0  ;;  %vm2332_vm1 = vcmp.gt.f32.partialorder %v2300_v54, 0.0  ;;  %v2397_v49 = vsel %vm2333_vm15, %v2301_v47, %v2365_v26 }
 0x259   : > { %v2056_v53 = vpop.xlane.xlu0 %2055  ;;  %v2701_v12 = vadd.f32 %v5458_v45, %v5195_v21  ;;  %v2247_v35 = vrot.slane %v5408_v37, 2 }
 0x25a   : > { %v2151_v61 = vperm.slane %v2056_v53, %v5278_v60  ;;  %v2064_v62 = vpop.xlane.xlu1 %2063  ;;  %v2794_v51 = vsel %vm2730_vm14, %v2698_v36, %v2762_v48  ;;  %v2434_v48 = vmul.f32 %v5227_v5, %v2397_v49 }
 0x25b   : > { %v5427_v2 = vpop.xlane.xlu2 %2065  ;;  %v2157_v19 = vperm.slane %v2064_v62, %v5278_v60  ;;  %v2659_v62 = vrot.slane %v5456_v44, 1  ;;  %v2765_v24 = vmul.f32 0.2, %v2701_v12  ;;  %vm2733_vm2 = vcmp.gt.f32.partialorder %v2701_v12, 0.0 }
 0x25c   : > { %v2152_v13 = vsel %vm1719_vm3, %v2151_v61, %v2150_v57  ;;  %v2394_v57 = vsel %vm2330_vm13, %v2298_v33, %v2362_v42  ;;  %v5467_v61 = vld [vmem:[%s4985_s3 + $0x3] ss:$0 sm:$0xff] }
 0x25d   : > { %v5435_v40 = vsel %vm1772_vm0, %v2152_v13, %v2188_v31  ;;  %v2361_v31 = vmul.f32 0.2, %v2297_v29  ;;  %v5480_v25 = vperm.slane %v2659_v62, 0 }
 0x25e   : > { %2091 = vadd.xlane.f32.xlu0 %v2032_v15 }
 0x25f   : > { %2093 = vadd.xlane.f32.xlu1 %v2033_v0  ;;  %v2393_v39 = vsel %vm2329_vm11, %v2297_v29, %v2361_v31  ;;  %v2431_v0 = vmul.f32 %v5227_v5, %v2394_v57  ;;  %v2396_v29 = vsel %vm2332_vm1, %v2300_v54, %v2364_v17  ;;  %v2716_v31 = vadd.f32 %v5480_v25, %v5186_v58 }
 0x260   : > { %2478 = vadd.xlane.f32.xlu2 %v2432_v22  ;;  %v2430_v13 = vmul.f32 %v5227_v5, %v2393_v39  ;;  %v2831_v22 = vmul.f32 %v5467_v61, %v2794_v51 }
 0x261   : > { %v2062_v27 = vpop.xlane.xlu0 %2061  ;;  %v2780_v55 = vmul.f32 0.2, %v2716_v31  ;;  %vm2748_vm6 = vcmp.gt.f32.partialorder %v2716_v31, 0.0 }
 0x262   : > { %v2156_v30 = vperm.slane %v2062_v27, %v5272_v50  ;;  %v5443_v32 = vpop.xlane.xlu1 %2452 }
 0x263   : > { %v1649_v34 = vpop.xlane.xlu2 %1648 }
 0x264   : > { %v5451_v28 = vsel %vm1719_vm3, %v2157_v19, %v2156_v30  ;;  %v1743_v63 = vperm.slane %v1649_v34, %v5278_v60  ;;  %v2303_v19 = vadd.f32 %v2262_v18, %v5114_v4  ;;  %v2552_v30 = vperm.slane %v5443_v32, %v5278_v60 }
 0x265   : > { %v2304_v34 = vadd.f32 %v2262_v18, %v5118_v8  ;;  %v2433_v32 = vmul.f32 %v5227_v5, %v2396_v29  ;;  %v2660_v18 = vrot.slane %v5456_v44, 2 }
 0x266   : > { %2097 = vadd.xlane.f32.xlu0 %v2035_v59  ;;  %v2367_v47 = vmul.f32 0.2, %v2303_v19  ;;  %vm2335_vm4 = vcmp.gt.f32.partialorder %v2303_v19, 0.0 }
 0x267   : > { %2099 = vadd.xlane.f32.xlu1 %v2036_v38  ;;  %v2797_v38 = vsel %vm2733_vm2, %v2701_v12, %v2765_v24  ;;  %v2368_v54 = vmul.f32 0.2, %v2304_v34  ;;  %vm2336_vm5 = vcmp.gt.f32.partialorder %v2304_v34, 0.0 }
 0x268   : > { %2484 = vadd.xlane.f32.xlu2 %v2435_v41  ;;  %v2834_v39 = vmul.f32 %v5467_v61, %v2797_v38  ;;  %v2399_v62 = vsel %vm2335_vm4, %v2303_v19, %v2367_v47  ;;  %v2674_v19 = vperm.slane %v5456_v44, 0 }
 0x269   : > { %v5461_v53 = vpop.xlane.xlu0 %2067  ;;  %v2400_v12 = vsel %vm2336_vm5, %v2304_v34, %v2368_v54 }
 0x26a   : > { %v1647_v56 = vpop.xlane.xlu1 %1646  ;;  %v2437_v29 = vmul.f32 %v5227_v5, %v2400_v12 }
 0x26b   : > { %v1742_v1 = vperm.slane %v1647_v56, %v5272_v50  ;;  %v2072_v7 = vpop.xlane.xlu2 %2071  ;;  %v5499_v56 = vperm.slane %v2247_v35, 0 }
 0x26c   : > { %v2163_v36 = vperm.slane %v2072_v7, %v5278_v60 }
 0x26d   : > { %v5476_v15 = vsel %vm1719_vm3, %v1743_v63, %v1742_v1  ;;  %v2699_v63 = vadd.f32 %v2666_v43, %v5195_v21  ;;  %v2306_v17 = vadd.f32 %v5499_v56, %v5118_v8 }
 0x26e   : > { %2474 = vadd.xlane.f32.xlu0 %v2430_v13  ;;  %v2700_v13 = vadd.f32 %v5458_v45, %v5186_v58 }
 0x26f   : > { %2476 = vadd.xlane.f32.xlu1 %v2431_v0  ;;  %v2812_v0 = vsel %vm2748_vm6, %v2716_v31, %v2780_v55  ;;  %v2763_v45 = vmul.f32 0.2, %v2699_v63  ;;  %vm2731_vm9 = vcmp.gt.f32.partialorder %v2699_v63, 0.0  ;;  %v2370_v35 = vmul.f32 0.2, %v2306_v17 }
 0x270   : > { %2863 = vadd.xlane.f32.xlu2 %v2831_v22  ;;  %vm2732_vm10 = vcmp.gt.f32.partialorder %v2700_v13, 0.0  ;;  %vm2338_vm11 = vcmp.gt.f32.partialorder %v2306_v17, 0.0  ;;  %v2248_v55 = vrot.slane %v5408_v37, 3 }
 0x271   : > { %v2451_v27 = vpop.xlane.xlu0 %2450 }
 0x272   : > { %v2551_v20 = vperm.slane %v2451_v27, %v5272_v50  ;;  %v2070_v33 = vpop.xlane.xlu1 %2069  ;;  %v2436_v27 = vmul.f32 %v5227_v5, %v2399_v62 }
 0x273   : > { %v2162_v11 = vperm.slane %v2070_v33, %v5272_v50  ;;  %v2455_v59 = vpop.xlane.xlu2 %2454  ;;  %v2764_v33 = vmul.f32 0.2, %v2700_v13 }
 0x274   : > { %v2553_v41 = vsel %vm1719_vm3, %v2552_v30, %v2551_v20  ;;  %v2554_v1 = vperm.slane %v2455_v59, %v5272_v50  ;;  %v2849_v20 = vmul.f32 %v5467_v61, %v2812_v0  ;;  %v2714_v59 = vadd.f32 %v2674_v19, %v5186_v58 }
 0x275   : > { %v5495_v42 = vsel %vm1719_vm3, %v2163_v36, %v2162_v11  ;;  %v5521_v36 = vperm.slane %v2660_v18, 0  ;;  %v2795_v11 = vsel %vm2731_vm9, %v2699_v63, %v2763_v45  ;;  %v5538_v0 = vperm.slane %v2248_v55, 0 }
 0x276   : > { %2480 = vadd.xlane.f32.xlu0 %v2433_v32  ;;  %v2715_v32 = vadd.f32 %v2674_v19, %v5195_v21  ;;  %vm2746_vm13 = vcmp.gt.f32.partialorder %v2714_v59, 0.0  ;;  %v2305_v45 = vadd.f32 %v5499_v56, %v5114_v4 }
 0x277   : > { %2482 = vadd.xlane.f32.xlu1 %v2434_v48  ;;  %v2718_v54 = vadd.f32 %v5521_v36, %v5186_v58 }
 0x278   : > { %2869 = vadd.xlane.f32.xlu2 %v2834_v39  ;;  %v2402_v39 = vsel %vm2338_vm11, %v2306_v17, %v2370_v35  ;;  %vm2747_vm14 = vcmp.gt.f32.partialorder %v2715_v32, 0.0  ;;  %vm2337_vm2 = vcmp.gt.f32.partialorder %v2305_v45, 0.0 }
 0x279   : > { %v2457_v57 = vpop.xlane.xlu0 %2456  ;;  %vm2750_vm15 = vcmp.gt.f32.partialorder %v2718_v54, 0.0 }
 0x27a   : > { %v2555_v7 = vperm.slane %v2457_v57, %v5278_v60  ;;  %v2459_v51 = vpop.xlane.xlu1 %2458  ;;  %v2832_v57 = vmul.f32 %v5467_v61, %v2795_v11 }
 0x27b   : > { %v2461_v26 = vpop.xlane.xlu2 %2460  ;;  %v2557_v43 = vperm.slane %v2459_v51, %v5272_v50  ;;  %v5535_v51 = vld [vmem:[%s4985_s3 + $0x2] ss:$0 sm:$0xff] }
 0x27c   : > { %v2556_v22 = vsel %vm1719_vm3, %v2555_v7, %v2554_v1  ;;  %v2558_v24 = vperm.slane %v2461_v26, %v5278_v60  ;;  %v2778_v1 = vmul.f32 0.2, %v2714_v59  ;;  %v2439_v12 = vmul.f32 %v5535_v51, %v2402_v39 }
 0x27d   : > { %v2599_v49 = vsel %vm1766_vm7, %v2556_v22, %v2553_v41  ;;  %v2796_v41 = vsel %vm2732_vm10, %v2700_v13, %v2764_v33  ;;  %v2779_v13 = vmul.f32 0.2, %v2715_v32  ;;  %v2782_v26 = vmul.f32 0.2, %v2718_v54 }
 0x27e   : > { %v2559_v30 = vsel %vm1719_vm3, %v2558_v24, %v2557_v43  ;;  %2486 = vadd.xlane.f32.xlu0 %v2436_v27  ;;  %v2833_v63 = vmul.f32 %v5467_v61, %v2796_v41  ;;  %v2810_v18 = vsel %vm2746_vm13, %v2714_v59, %v2778_v1  ;;  %v2717_v22 = vadd.f32 %v5480_v25, %v5195_v21 }
 0x27f   : > { %v2600_v34 = vsel %vm1768_vm8, %v2559_v30, %v2599_v49  ;;  %2488 = vadd.xlane.f32.xlu1 %v2437_v29  ;;  %v2653_v43 = vrot.slane %v5432_v16, 2  ;;  %v2811_v29 = vsel %vm2747_vm14, %v2715_v32, %v2779_v13  ;;  %v2814_v30 = vsel %vm2750_vm15, %v2718_v54, %v2782_v26 }
 0x280   : > { %2899 = vadd.xlane.f32.xlu2 %v2849_v20  ;;  %v2308_v20 = vadd.f32 %v5538_v0, %v5118_v8  ;;  %v2661_v33 = vrot.slane %v5456_v44, 3  ;;  %v2848_v56 = vmul.f32 %v5467_v61, %v2811_v29  ;;  %v2781_v59 = vmul.f32 0.2, %v2717_v22 }
 0x281   : > { %v2463_v5 = vpop.xlane.xlu0 %2462  ;;  %v2851_v41 = vmul.f32 %v5467_v61, %v2814_v30  ;;  %v2369_v32 = vmul.f32 0.2, %v2305_v45  ;;  %vm2749_vm1 = vcmp.gt.f32.partialorder %v2717_v22, 0.0 }
 0x282   : > { %v2560_v38 = vperm.slane %v2463_v5, %v5272_v50  ;;  %v2465_v31 = vpop.xlane.xlu1 %2464  ;;  %v2847_v5 = vmul.f32 %v5467_v61, %v2810_v18  ;;  %vm2340_vm4 = vcmp.gt.f32.partialorder %v2308_v20, 0.0  ;;  %v2813_v54 = vsel %vm2749_vm1, %v2717_v22, %v2781_v59 }
 0x283   : > { %v2561_v48 = vperm.slane %v2465_v31, %v5278_v60  ;;  %v2467_v47 = vpop.xlane.xlu2 %2466  ;;  %v2850_v18 = vmul.f32 %v5467_v61, %v2813_v54 }
 0x284   : > { %v2563_v24 = vperm.slane %v2467_v47, %v5272_v50  ;;  %v5562_v47 = vperm.slane %v2661_v33, 0  ;;  %v2719_v33 = vadd.f32 %v5521_v36, %v5195_v21 }
 0x285   : > { %v2562_v62 = vsel %vm1719_vm3, %v2561_v48, %v2560_v38  ;;  %v2668_v38 = vperm.slane %v2653_v43, 0  ;;  %v2372_v48 = vmul.f32 0.2, %v2308_v20 }
 0x286   : > { %v2601_v7 = vsel %vm1770_vm12, %v2562_v62, %v2600_v34  ;;  %2865 = vadd.xlane.f32.xlu0 %v2832_v57  ;;  %v2720_v26 = vadd.f32 %v5562_v47, %v5186_v58  ;;  %v2783_v36 = vmul.f32 0.2, %v2719_v33  ;;  %vm2751_vm10 = vcmp.gt.f32.partialorder %v2719_v33, 0.0 }
 0x287   : > { %2867 = vadd.xlane.f32.xlu1 %v2833_v63  ;;  %v2702_v55 = vadd.f32 %v2668_v38, %v5186_v58  ;;  %v2401_v63 = vsel %vm2337_vm2, %v2305_v45, %v2369_v32  ;;  %v2703_v1 = vadd.f32 %v2668_v38, %v5195_v21  ;;  %v2404_v13 = vsel %vm2340_vm4, %v2308_v20, %v2372_v48 }
 0x288   : > { %2492 = vadd.xlane.f32.xlu2 %v2439_v12  ;;  %v2438_v43 = vmul.f32 %v5535_v51, %v2401_v63  ;;  %v2784_v45 = vmul.f32 0.2, %v2720_v26  ;;  %vm2752_vm9 = vcmp.gt.f32.partialorder %v2720_v26, 0.0  ;;  %v2662_v38 = vrot.slane %v5456_v44, 4 }
 0x289   : > { %v2469_v17 = vpop.xlane.xlu0 %2468  ;;  %v2767_v29 = vmul.f32 0.2, %v2703_v1  ;;  %vm2734_vm5 = vcmp.gt.f32.partialorder %v2702_v55, 0.0  ;;  %vm2735_vm6 = vcmp.gt.f32.partialorder %v2703_v1, 0.0 }
 0x28a   : > { %v2564_v27 = vperm.slane %v2469_v17, %v5278_v60  ;;  %v2471_v49 = vpop.xlane.xlu1 %2470  ;;  %v2249_v17 = vrot.slane %v5408_v37, 4 }
 0x28b   : > { %v2473_v19 = vpop.xlane.xlu2 %2472  ;;  %v2566_v34 = vperm.slane %v2471_v49, %v5272_v50  ;;  %v2441_v49 = vmul.f32 %v5535_v51, %v2404_v13 }
 0x28c   : > { %v2565_v25 = vsel %vm1719_vm3, %v2564_v27, %v2563_v24  ;;  %v2567_v35 = vperm.slane %v2473_v19, %v5278_v60  ;;  %v2766_v24 = vmul.f32 0.2, %v2702_v55  ;;  %v2265_v19 = vperm.slane %v2249_v17, 0 }
 0x28d   : > { %v5555_v11 = vsel %vm1772_vm0, %v2565_v25, %v2601_v7 }
 0x28e   : > { %v5559_v31 = vsel %vm1719_vm3, %v2567_v35, %v2566_v34  ;;  %2895 = vadd.xlane.f32.xlu0 %v2847_v5  ;;  %v2798_v20 = vsel %vm2734_vm5, %v2702_v55, %v2766_v24  ;;  %v2799_v34 = vsel %vm2735_vm6, %v2703_v1, %v2767_v29  ;;  %v2307_v35 = vadd.f32 %v5538_v0, %v5114_v4 }
 0x28f   : > { %2897 = vadd.xlane.f32.xlu1 %v2848_v56  ;;  %v2816_v56 = vsel %vm2752_vm9, %v2720_v26, %v2784_v45  ;;  %v2310_v59 = vadd.f32 %v2265_v19, %v5118_v8  ;;  %v2836_v32 = vmul.f32 %v5467_v61, %v2799_v34  ;;  %v5597_v55 = vperm.slane %v2662_v38, 0 }
 0x290   : > { %2903 = vadd.xlane.f32.xlu2 %v2851_v41  ;;  %v2835_v41 = vmul.f32 %v5467_v61, %v2798_v20  ;;  %v2371_v54 = vmul.f32 0.2, %v2307_v35  ;;  %vm2339_vm11 = vcmp.gt.f32.partialorder %v2307_v35, 0.0  ;;  %v2250_v26 = vrot.slane %v5408_v37, 5 }
 0x291   : > { %v1651_v39 = vpop.xlane.xlu0 %1650  ;;  %v2374_v0 = vmul.f32 0.2, %v2310_v59  ;;  %vm2342_vm13 = vcmp.gt.f32.partialorder %v2310_v59, 0.0  ;;  %vm1774_vm5 = vcmask 1045509   ;;  %vm1776_vm6 = vcmask 1046534  }
 0x292   : > { %v1653_v57 = vpop.xlane.xlu1 %1652  ;;  %v1745_v62 = vperm.slane %v1651_v39, %v5272_v50  ;;  %v2853_v39 = vmul.f32 %v5467_v61, %v2816_v56  ;;  %v5613_v20 = vperm.slane %v2250_v26, 0  ;;  %v2721_v56 = vadd.f32 %v5562_v47, %v5195_v21 }
 0x293   : > { %v1746_v7 = vperm.slane %v1653_v57, %v5278_v60  ;;  %v5568_v12 = vpop.xlane.xlu2 %1654  ;;  %vm1778_vm9 = vcmask 1047559  }
 0x294   : > { %vm2753_vm4 = vcmp.gt.f32.partialorder %v2721_v56, 0.0 }
 0x295   : > { %v1747_v22 = vsel %vm1719_vm3, %v1746_v7, %v1745_v62  ;;  %v2815_v62 = vsel %vm2751_vm10, %v2719_v33, %v2783_v36  ;;  %v2403_v7 = vsel %vm2339_vm11, %v2307_v35, %v2371_v54  ;;  %v2663_v36 = vrot.slane %v5456_v44, 5 }
 0x296   : > { %v5578_v27 = vsel %vm1766_vm7, %v1747_v22, %v5476_v15  ;;  %2901 = vadd.xlane.f32.xlu0 %v2850_v18  ;;  %v2654_v15 = vrot.slane %v5432_v16, 3  ;;  %v2406_v18 = vsel %vm2342_vm13, %v2310_v59, %v2374_v0  ;;  %v2722_v22 = vadd.f32 %v5597_v55, %v5186_v58 }
 0x297   : > { %2490 = vadd.xlane.f32.xlu1 %v2438_v43  ;;  %v2852_v43 = vmul.f32 %v5467_v61, %v2815_v62  ;;  %v2440_v24 = vmul.f32 %v5535_v51, %v2403_v7  ;;  %v2443_v29 = vmul.f32 %v5535_v51, %v2406_v18  ;;  %v2655_v59 = vrot.slane %v5432_v16, 4 }
 0x298   : > { %2496 = vadd.xlane.f32.xlu2 %v2441_v49  ;;  %v2669_v48 = vperm.slane %v2654_v15, 0  ;;  %v2786_v33 = vmul.f32 0.2, %v2722_v22  ;;  %vm2754_vm1 = vcmp.gt.f32.partialorder %v2722_v22, 0.0  ;;  %v2309_v15 = vadd.f32 %v2265_v19, %v5114_v4 }
 0x299   : > { %v5581_v30 = vpop.xlane.xlu0 %1656  ;;  %v1739_v0 = vperm.slane %v5337_v46, %v5272_v50  ;;  %v2670_v7 = vperm.slane %v2655_v59, 0  ;;  %v1775_v46 = vsel %vm1774_vm5, %v5348_v6, %v5345_v52  ;;  %v2160_v52 = vperm.slane %v5461_v53, %v5278_v60 }
 0x29a   : > { %v5586_v25 = vpop.xlane.xlu1 %1658  ;;  %v2704_v63 = vadd.f32 %v2669_v48, %v5186_v58  ;;  %v2705_v13 = vadd.f32 %v2669_v48, %v5195_v21  ;;  %v1740_v48 = vperm.slane %v5365_v10, %v5278_v60  ;;  %vm2341_vm2 = vcmp.gt.f32.partialorder %v2309_v15, 0.0 }
 0x29b   : > { %v5590_v5 = vpop.xlane.xlu2 %1660  ;;  %v2373_v47 = vmul.f32 0.2, %v2309_v15  ;;  %v5635_v10 = vperm.slane %v2663_v36, 0 }
 0x29c   : > { %v2768_v49 = vmul.f32 0.2, %v2704_v63  ;;  %v2769_v45 = vmul.f32 0.2, %v2705_v13  ;;  %vm2736_vm14 = vcmp.gt.f32.partialorder %v2704_v63, 0.0  ;;  %vm2737_vm15 = vcmp.gt.f32.partialorder %v2705_v13, 0.0 }
 0x29d   : > { %v1741_v18 = vsel %vm1719_vm3, %v1740_v48, %v1739_v0  ;;  %v2190_v0 = vsel %vm1774_vm5, %v5417_v3, %v5435_v40 }
 0x29e   : > { %2871 = vadd.xlane.f32.xlu0 %v2835_v41  ;;  %v2800_v35 = vsel %vm2736_vm14, %v2704_v63, %v2768_v49  ;;  %v2801_v41 = vsel %vm2737_vm15, %v2705_v13, %v2769_v45  ;;  %v2785_v63 = vmul.f32 0.2, %v2721_v56  ;;  %v1777_v49 = vsel %vm1776_vm6, %v5359_v23, %v1775_v46 }
 0x29f   : > { %2873 = vadd.xlane.f32.xlu1 %v2836_v32  ;;  %v2312_v32 = vadd.f32 %v5613_v20, %v5118_v8  ;;  %v2837_v54 = vmul.f32 %v5467_v61, %v2800_v35  ;;  %v2838_v62 = vmul.f32 %v5467_v61, %v2801_v41  ;;  %v2405_v45 = vsel %vm2341_vm2, %v2309_v15, %v2373_v47 }
 0x2a0   : > { %2907 = vadd.xlane.f32.xlu2 %v2853_v39  ;;  %v2818_v39 = vsel %vm2754_vm1, %v2722_v22, %v2786_v33  ;;  %v2707_v33 = vadd.f32 %v2670_v7, %v5195_v21  ;;  %v2251_v35 = vrot.slane %v5408_v37, 6  ;;  %v5652_v59 = vsel %vm1778_vm9, %v1741_v18, %v1777_v49 }
 0x2a1   : > { %v5599_v57 = vpop.xlane.xlu0 %1662  ;;  %v2855_v13 = vmul.f32 %v5467_v61, %v2818_v39  ;;  %v2376_v26 = vmul.f32 0.2, %v2312_v32  ;;  %vm2344_vm10 = vcmp.gt.f32.partialorder %v2312_v32, 0.0  ;;  %v2724_v23 = vadd.f32 %v5635_v10, %v5186_v58 }
 0x2a2   : > { %v5602_v1 = vpop.xlane.xlu1 %1664  ;;  %v2159_v15 = vperm.slane %v5427_v2, %v5272_v50  ;;  %v2442_v36 = vmul.f32 %v5535_v51, %v2405_v45  ;;  %v2267_v53 = vperm.slane %v2251_v35, 0  ;;  %vm2739_vm13 = vcmp.gt.f32.partialorder %v2707_v33, 0.0 }
 0x2a3   : > { %v5606_v17 = vpop.xlane.xlu2 %1666  ;;  %vm2756_vm14 = vcmp.gt.f32.partialorder %v2724_v23, 0.0  ;;  %v2311_v2 = vadd.f32 %v5613_v20, %v5114_v4 }
 0x2a4   : > { %v2161_v47 = vsel %vm1719_vm3, %v2160_v52, %v2159_v15 }
 0x2a5   : > { %vm2343_vm15 = vcmp.gt.f32.partialorder %v2311_v2, 0.0 }
 0x2a6   : > { %2905 = vadd.xlane.f32.xlu0 %v2852_v43  ;;  %v2817_v43 = vsel %vm2753_vm4, %v2721_v56, %v2785_v63  ;;  %v2408_v56 = vsel %vm2344_vm10, %v2312_v32, %v2376_v26  ;;  %v2788_v32 = vmul.f32 0.2, %v2724_v23  ;;  %v2191_v63 = vsel %vm1776_vm6, %v5451_v28, %v2190_v0 }
 0x2a7   : > { %2494 = vadd.xlane.f32.xlu1 %v2440_v24  ;;  %v2706_v24 = vadd.f32 %v2670_v7, %v5186_v58  ;;  %v2854_v41 = vmul.f32 %v5467_v61, %v2817_v43  ;;  %v2445_v39 = vmul.f32 %v5535_v51, %v2408_v56  ;;  %v2723_v26 = vadd.f32 %v5597_v55, %v5195_v21 }
 0x2a8   : > { %2500 = vadd.xlane.f32.xlu2 %v2443_v29  ;;  %v5679_v18 = vsel %vm1778_vm9, %v2161_v47, %v2191_v63  ;;  %v2820_v20 = vsel %vm2756_vm14, %v2724_v23, %v2788_v32  ;;  %v2314_v43 = vadd.f32 %v2267_v53, %v5118_v8  ;;  %v2375_v28 = vmul.f32 0.2, %v2311_v2 }
 0x2a9   : > { %v5616_v34 = vpop.xlane.xlu0 %1668  ;;  %v2770_v48 = vmul.f32 0.2, %v2706_v24  ;;  %vm2738_vm11 = vcmp.gt.f32.partialorder %v2706_v24, 0.0  ;;  %v2787_v35 = vmul.f32 0.2, %v2723_v26  ;;  %v2313_v55 = vadd.f32 %v2267_v53, %v5114_v4 }
 0x2aa   : > { %v5621_v38 = vpop.xlane.xlu1 %1670  ;;  %v2857_v52 = vmul.f32 %v5467_v61, %v2820_v20  ;;  %vm2755_vm1 = vcmp.gt.f32.partialorder %v2723_v26, 0.0  ;;  %v2407_v56 = vsel %vm2343_vm15, %v2311_v2, %v2375_v28  ;;  %vm2346_vm2 = vcmp.gt.f32.partialorder %v2314_v43, 0.0 }
 0x2ab   : > { %v5628_v19 = vpop.xlane.xlu2 %1672  ;;  %v2819_v15 = vsel %vm2755_vm1, %v2723_v26, %v2787_v35  ;;  %vm2345_vm4 = vcmp.gt.f32.partialorder %v2313_v55, 0.0  ;;  %v2664_v53 = vrot.slane %v5456_v44, 6  ;;  %v2444_v0 = vmul.f32 %v5535_v51, %v2407_v56 }
 0x2ac   : > { %v2856_v2 = vmul.f32 %v5467_v61, %v2819_v15  ;;  %v2252_v63 = vrot.slane %v5408_v37, 7  ;;  %v1749_v20 = vperm.slane %v5581_v30, %v5278_v60  ;;  %v2725_v37 = vadd.f32 %v5635_v10, %v5195_v21 }
 0x2ad   : > { %v5710_v28 = vperm.slane %v2664_v53, 0  ;;  %v1755_v56 = vperm.slane %v5602_v1, %v5278_v60  ;;  %vm1791_vm14 = vcmask 130048  }
 0x2ae   : > { %2875 = vadd.xlane.f32.xlu0 %v2837_v54  ;;  %v2771_v54 = vmul.f32 0.2, %v2707_v33  ;;  %v5719_v30 = vperm.slane %v2252_v63, 0  ;;  %vm2757_vm15 = vcmp.gt.f32.partialorder %v2725_v37, 0.0 }
 0x2af   : > { %2877 = vadd.xlane.f32.xlu1 %v2838_v62  ;;  %v2656_v62 = vrot.slane %v5432_v16, 5 }
 0x2b0   : > { %2911 = vadd.xlane.f32.xlu2 %v2855_v13  ;;  %v2802_v13 = vsel %vm2738_vm11, %v2706_v24, %v2770_v48  ;;  %v2803_v40 = vsel %vm2739_vm13, %v2707_v33, %v2771_v54  ;;  %v2378_v33 = vmul.f32 0.2, %v2314_v43  ;;  %v2377_v48 = vmul.f32 0.2, %v2313_v55 }
 0x2b1   : > { %v5641_v22 = vpop.xlane.xlu0 %1674  ;;  %v2839_v49 = vmul.f32 %v5467_v61, %v2802_v13  ;;  %v2671_v45 = vperm.slane %v2656_v62, 0  ;;  %v2840_v24 = vmul.f32 %v5467_v61, %v2803_v40 }
 0x2b2   : > { %v5646_v29 = vpop.xlane.xlu1 %1676  ;;  %v2410_v47 = vsel %vm2346_vm2, %v2314_v43, %v2378_v33  ;;  %v2409_v26 = vsel %vm2345_vm4, %v2313_v55, %v2377_v48  ;;  %v5708_v43 = vld [vmem:[#allocation5] sm:$0xff]  ;;  %v1752_v55 = vperm.slane %v5590_v5, %v5278_v60  ;;  %v5737_v5 = vadd.f32 %v5710_v28, %v5186_v58 }
 0x2b3   : > { %v5656_v6 = vpop.xlane.xlu2 %2077  ;;  %v2709_v23 = vadd.f32 %v2671_v45, %v5195_v21  ;;  %v5717_v35 = vmul.f32 %v5535_v51, %v2409_v26  ;;  %vm1680_vm13 = vcmp.gt.f32.partialorder %v5708_v43, 0.0  ;;  %v1758_v48 = vperm.slane %v5616_v34, %v5278_v60 }
 0x2b4   : > { %v1757_v34 = vperm.slane %v5606_v17, %v5272_v50 }
 0x2b5   : > { %v2773_v62 = vmul.f32 0.2, %v2709_v23  ;;  %vm2741_vm10 = vcmp.gt.f32.partialorder %v2709_v23, 0.0 }
 0x2b6   : > { %2909 = vadd.xlane.f32.xlu0 %v2854_v41 }
 0x2b7   : > { %2498 = vadd.xlane.f32.xlu1 %v2442_v36  ;;  %v2708_v36 = vadd.f32 %v2671_v45, %v5186_v58  ;;  %v1748_v45 = vperm.slane %v5568_v12, %v5272_v50 }
 0x2b8   : > { %2504 = vadd.xlane.f32.xlu2 %v2445_v39  ;;  %v2657_v39 = vrot.slane %v5432_v16, 6 }
 0x2b9   : > { %v5674_v7 = vpop.xlane.xlu0 %2073  ;;  %v2772_v13 = vmul.f32 0.2, %v2708_v36  ;;  %vm2740_vm11 = vcmp.gt.f32.partialorder %v2708_v36, 0.0  ;;  %v1750_v12 = vsel %vm1719_vm3, %v1749_v20, %v1748_v45 }
 0x2ba   : > { %v5681_v3 = vpop.xlane.xlu1 %2075  ;;  %v5703_v40 = vperm.slane %v2657_v39, 0  ;;  %v2165_v26 = vperm.slane %v5674_v7, %v5272_v50  ;;  %v1763_v7 = vperm.slane %v5641_v22, %v5272_v50 }
 0x2bb   : > { %v5683_v46 = vpop.xlane.xlu2 %2083  ;;  %v2804_v33 = vsel %vm2740_vm11, %v2708_v36, %v2772_v13  ;;  %v1751_v36 = vperm.slane %v5586_v25, %v5272_v50  ;;  %v1781_v25 = vsel %vm1768_vm8, %v1750_v12, %v5578_v27  ;;  %v2166_v13 = vperm.slane %v5681_v3, %v5278_v60 }
 0x2bc   : > { %v5728_v10 = vadd.f32 %v5703_v40, %v5195_v21  ;;  %v2841_v1 = vmul.f32 %v5467_v61, %v2804_v33  ;;  %v1759_v27 = vsel %vm1719_vm3, %v1758_v48, %v1757_v34  ;;  %v1764_v3 = vperm.slane %v5646_v29, %v5278_v60 }
 0x2be   : > { %2879 = vadd.xlane.f32.xlu0 %v2839_v49  ;;  %v2447_v49 = vmul.f32 %v5535_v51, %v2410_v47  ;;  %v2789_v47 = vmul.f32 0.2, %v2725_v37  ;;  %vm2743_vm2 = vcmp.gt.f32.partialorder %v5728_v10, 0.0 }
 0x2bf   : > { %2881 = vadd.xlane.f32.xlu1 %v2840_v24  ;;  %v2805_v24 = vsel %vm2741_vm10, %v2709_v23, %v2773_v62  ;;  %v1754_v23 = vperm.slane %v5599_v57, %v5272_v50  ;;  %v5748_v57 = vsel %vm1680_vm13, %v5652_v59, -1e+30  ;;  %v1761_v62 = vperm.slane %v5628_v19, %v5278_v60 }
 0x2c0   : > { %2915 = vadd.xlane.f32.xlu2 %v2857_v52  ;;  %v2842_v53 = vmul.f32 %v5467_v61, %v2805_v24  ;;  %v1760_v59 = vperm.slane %v5621_v38, %v5272_v50  ;;  %v1792_v19 = vsel %vm1791_vm14, %v5748_v57, -inf  ;;  %v2821_v24 = vsel %vm2757_vm15, %v2725_v37, %v2789_v47 }
 0x2c1   : > { %v5691_v41 = vpop.xlane.xlu0 %2079  ;;  %v1756_v63 = vsel %vm1719_vm3, %v1755_v56, %v1754_v23  ;;  %v2775_v37 = vmul.f32 0.2, %v5728_v10  ;;  %v1765_v47 = vsel %vm1719_vm3, %v1764_v3, %v1763_v7  ;;  %vm2758_vm10 = vcmp.gt.f32.partialorder %v5737_v5, 0.0 }
 0x2c2   : > { %v5695_v54 = vpop.xlane.xlu1 %2081  ;;  %v2169_v17 = vperm.slane %v5691_v41, %v5278_v60  ;;  %v1762_v41 = vsel %vm1719_vm3, %v1761_v62, %v1760_v59  ;;  %v5817_v62 = vsel %vm1774_vm5, %v5559_v31, %v5555_v11  ;;  %v2316_v11 = vadd.f32 %v5719_v30, %v5118_v8 }
 0x2c3   : > { %v5698_v32 = vpop.xlane.xlu2 %2089  ;;  %v2171_v29 = vperm.slane %v5695_v54, %v5272_v50  ;;  %v2172_v54 = vperm.slane %v5683_v46, %v5278_v60 }
 0x2c4   : > { %v2177_v34 = vperm.slane %v5698_v32, %v5272_v50  ;;  %v2315_v32 = vadd.f32 %v5719_v30, %v5114_v4  ;;  %v2807_v4 = vsel %vm2743_vm2, %v5728_v10, %v2775_v37  ;;  %vm2348_vm15 = vcmp.gt.f32.partialorder %v2316_v11, 0.0 }
 0x2c5   : > { %v2173_v46 = vsel %vm1719_vm3, %v2172_v54, %v2171_v29 }
 0x2c6   : > { %2913 = vadd.xlane.f32.xlu0 %v2856_v2  ;;  %v1753_v2 = vsel %vm1719_vm3, %v1752_v55, %v1751_v36  ;;  %v2167_v55 = vsel %vm1719_vm3, %v2166_v13, %v2165_v26  ;;  %vm2347_vm11 = vcmp.gt.f32.partialorder %v2315_v32, 0.0 }
 0x2c7   : > { %2502 = vadd.xlane.f32.xlu1 %v2444_v0  ;;  %v5750_v0 = vld [vmem:[#allocation5 + $0x10] sm:$0xff]  ;;  %v1782_v38 = vsel %vm1770_vm12, %v1753_v2, %v1781_v25  ;;  %v2790_v25 = vmul.f32 0.2, %v5737_v5 }
 0x2c8   : > { %2508 = vadd.xlane.f32.xlu2 %v2447_v49  ;;  %vm2104_vm1 = vcmp.gt.f32.partialorder %v5750_v0, 0.0  ;;  %v1783_v20 = vsel %vm1772_vm0, %v1756_v63, %v1782_v38  ;;  %v2168_v49 = vperm.slane %v5656_v6, %v5272_v50 }
 0x2c9   : > { %v5723_v52 = vpop.xlane.xlu0 %2085  ;;  %v5787_v22 = vsel %vm2104_vm1, %v5679_v18, -1e+30  ;;  %v1784_v12 = vsel %vm1774_vm5, %v1759_v27, %v1783_v20  ;;  %v2858_v18 = vmul.f32 %v5467_v61, %v2821_v24  ;;  %v2658_v27 = vrot.slane %v5432_v16, 7  ;;  %v5850_v20 = vld [vmem:[#allocation5 + $0x18] sm:$0xff] }
 0x2ca   : > { %v2088_v15 = vpop.xlane.xlu1 %2087  ;;  %v2170_v56 = vsel %vm1719_vm3, %v2169_v17, %v2168_v49  ;;  %v2174_v6 = vperm.slane %v5723_v52, %v5272_v50  ;;  %v2204_v52 = vsel %vm1791_vm14, %v5787_v22, -inf  ;;  %v2665_v17 = vrot.slane %v5456_v44, 7 }
 0x2cb   : > { %v5743_v39 = vpop.xlane.xlu2 %2095  ;;  %v2175_v23 = vperm.slane %v2088_v15, %v5278_v60  ;;  %v2193_v15 = vsel %vm1766_vm7, %v2167_v55, %v5495_v42  ;;  %v2822_v44 = vsel %vm2758_vm10, %v5737_v5, %v2790_v25  ;;  %v2379_v24 = vmul.f32 0.2, %v2315_v32 }
 0x2cc   : > { %v2194_v2 = vsel %vm1768_vm8, %v2170_v56, %v2193_v15  ;;  %v2673_v29 = vperm.slane %v2658_v27, 0  ;;  %vm2105_vm13 = vcmp.gt.f32.partialorder %v5850_v20, 0.0 }
 0x2cd   : > { %v2176_v42 = vsel %vm1719_vm3, %v2175_v23, %v2174_v6  ;;  %v2195_v31 = vsel %vm1770_vm12, %v2173_v46, %v2194_v2  ;;  %v2710_v23 = vadd.f32 %v5703_v40, %v5186_v58  ;;  %v2411_v37 = vsel %vm2347_vm11, %v2315_v32, %v2379_v24 }
 0x2ce   : > { %2883 = vadd.xlane.f32.xlu0 %v2841_v1  ;;  %v1785_v1 = vsel %vm1776_vm6, %v1762_v41, %v1784_v12  ;;  %v2844_v41 = vmul.f32 %v5467_v61, %v2807_v4  ;;  %v5860_v12 = vperm.slane %v2665_v17, 0 }
 0x2cf   : > { %2885 = vadd.xlane.f32.xlu1 %v2842_v53  ;;  %v5801_v53 = vld [vmem:[#allocation5 + $0x8] sm:$0xff]  ;;  %v1786_v59 = vsel %vm1778_vm9, %v1765_v47, %v1785_v1  ;;  %v2774_v25 = vmul.f32 0.2, %v2710_v23  ;;  %vm2742_vm1 = vcmp.gt.f32.partialorder %v2710_v23, 0.0 }
 0x2d0   : > { %1793 = vmax.xlane.f32.xlu2 %v1792_v19  ;;  %vm1681_vm4 = vcmp.gt.f32.partialorder %v5801_v53, 0.0  ;;  %v2196_v19 = vsel %vm1772_vm0, %v2176_v42, %v2195_v31  ;;  %v2728_v15 = vadd.f32 %v5860_v12, %v5186_v58 }
 0x2d1   : > { %v2092_v45 = vpop.xlane.xlu0 %2091  ;;  %v5842_v8 = vsel %vm1681_vm4, %v1786_v59, -1e+30  ;;  %v2806_v59 = vsel %vm2742_vm1, %v2710_v23, %v2774_v25 }
 0x2d2   : > { %v2094_v33 = vpop.xlane.xlu1 %2093  ;;  %v2178_v48 = vperm.slane %v2092_v45, %v5278_v60  ;;  %v1795_v10 = vsel %vm1791_vm14, %v5842_v8, -inf  ;;  %v2859_v45 = vmul.f32 %v5467_v61, %v2822_v44  ;;  %v2792_v2 = vmul.f32 0.2, %v2728_v15 }
 0x2d3   : > { %v5794_v36 = vpop.xlane.xlu2 %2478  ;;  %v2180_v63 = vperm.slane %v2094_v33, %v5272_v50  ;;  %v2380_v33 = vmul.f32 0.2, %v2316_v11  ;;  %vm2760_vm4 = vcmp.gt.f32.partialorder %v2728_v15, 0.0 }
 0x2d4   : > { %v2179_v13 = vsel %vm1719_vm3, %v2178_v48, %v2177_v34  ;;  %v2713_v48 = vadd.f32 %v2673_v29, %v5195_v21  ;;  %v2572_v31 = vperm.slane %v5794_v36, %v5272_v50  ;;  %v2824_v17 = vsel %vm2760_vm4, %v2728_v15, %v2792_v2 }
 0x2d5   : > { %v2197_v7 = vsel %vm1774_vm5, %v2179_v13, %v2196_v19  ;;  %v2412_v47 = vsel %vm2348_vm15, %v2316_v11, %v2380_v33  ;;  %v2727_v13 = vadd.f32 %v5710_v28, %v5195_v21  ;;  %v2861_v36 = vmul.f32 %v5467_v61, %v2824_v17 }
 0x2d6   : > { %2917 = vadd.xlane.f32.xlu0 %v2858_v18  ;;  %v2449_v40 = vmul.f32 %v5535_v51, %v2412_v47  ;;  %v2777_v46 = vmul.f32 0.2, %v2713_v48  ;;  %vm2745_vm2 = vcmp.gt.f32.partialorder %v2713_v48, 0.0 }
 0x2d7   : > { %2506 = vadd.xlane.f32.xlu1 %v5717_v35  ;;  %v2181_v35 = vperm.slane %v5743_v39, %v5278_v60  ;;  %v2791_v4 = vmul.f32 0.2, %v2727_v13  ;;  %vm2759_vm10 = vcmp.gt.f32.partialorder %v2727_v13, 0.0 }
 0x2d8   : > { %2205 = vmax.xlane.f32.xlu2 %v2204_v52  ;;  %v2448_v52 = vmul.f32 %v5535_v51, %v2411_v37  ;;  %v2809_v51 = vsel %vm2745_vm2, %v2713_v48, %v2777_v46  ;;  %v2729_v48 = vadd.f32 %v5860_v12, %v5195_v21  ;;  %v4144_v46 = vld [vmem:[%s4985_s3 + $0x3] ss:$0 sm:$0xff] }
 0x2d9   : > { %v2098_v26 = vpop.xlane.xlu0 %2097  ;;  %v2182_v30 = vsel %vm1719_vm3, %v2181_v35, %v2180_v63  ;;  %v2846_v28 = vmul.f32 %v5467_v61, %v2809_v51 }
 0x2da   : > { %v2100_v38 = vpop.xlane.xlu1 %2099  ;;  %v2183_v3 = vperm.slane %v2098_v26, %v5272_v50  ;;  %v2198_v55 = vsel %vm1776_vm6, %v2182_v30, %v2197_v7  ;;  %v5889_v30 = vld [vmem:[#allocation5 + $0x20] sm:$0xff]  ;;  %vm2761_vm15 = vcmp.gt.f32.partialorder %v2729_v48, 0.0 }
 0x2db   : > { %v2184_v39 = vperm.slane %v2100_v38, %v5278_v60  ;;  %v2485_v16 = vpop.xlane.xlu2 %2484  ;;  %v2843_v38 = vmul.f32 %v5467_v61, %v2806_v59  ;;  %vm2517_vm11 = vcmp.gt.f32.partialorder %v5889_v30, 0.0 }
 0x2dc   : > { %v2576_v35 = vperm.slane %v2485_v16, %v5278_v60 }
 0x2dd   : > { %v2185_v49 = vsel %vm1719_vm3, %v2184_v39, %v2183_v3 }
 0x2de   : > { %1796 = vmax.xlane.f32.xlu0 %v1795_v10  ;;  %v2199_v5 = vsel %vm1778_vm9, %v2185_v49, %v2198_v55  ;;  %v2712_v10 = vadd.f32 %v2673_v29, %v5186_v58 }
 0x2df   : > { %2889 = vadd.xlane.f32.xlu1 %v2844_v41  ;;  %v5865_v54 = vsel %vm2105_vm13, %v2199_v5, -1e+30  ;;  %v2823_v41 = vsel %vm2759_vm10, %v2727_v13, %v2791_v4 }
 0x2e0   : > { %2919 = vadd.xlane.f32.xlu2 %v2859_v45  ;;  %v2207_v1 = vsel %vm1791_vm14, %v5865_v54, -inf  ;;  %v2860_v33 = vmul.f32 %v5467_v61, %v2823_v41  ;;  %vm2744_vm13 = vcmp.gt.f32.partialorder %v2712_v10, 0.0 }
 0x2e1   : > { %v2475_v56 = vpop.xlane.xlu0 %2474 }
 0x2e2   : > { %v2477_v6 = vpop.xlane.xlu1 %2476  ;;  %v2569_v42 = vperm.slane %v2475_v56, %v5272_v50  ;;  %v2776_v56 = vmul.f32 0.2, %v2712_v10 }
 0x2e3   : > { %v5868_v18 = vpop.xlane.xlu2 %2863  ;;  %v2570_v34 = vperm.slane %v2477_v6, %v5278_v60 }
 0x2e4   : > { %v2808_v37 = vsel %vm2744_vm13, %v2712_v10, %v2776_v56  ;;  %v2964_v61 = vperm.slane %v5868_v18, %v5272_v50 }
 0x2e5   : > { %v2571_v19 = vsel %vm1719_vm3, %v2570_v34, %v2569_v42  ;;  %v2845_v2 = vmul.f32 %v4144_v46, %v2808_v37  ;;  %v2793_v42 = vmul.f32 0.2, %v2729_v48 }
 0x2e6   : > { %2208 = vmax.xlane.f32.xlu0 %v2207_v1  ;;  %v2604_v16 = vsel %vm1776_vm6, %v2571_v19, %v5817_v62 }
 0x2e7   : > { %2510 = vadd.xlane.f32.xlu1 %v2448_v52 }
 0x2e8   : > { %2512 = vadd.xlane.f32.xlu2 %v2449_v40 }
 0x2e9   : > { %v2481_v63 = vpop.xlane.xlu0 %2480 }
 0x2ea   : > { %v2483_v32 = vpop.xlane.xlu1 %2482  ;;  %v2573_v11 = vperm.slane %v2481_v63, %v5278_v60  ;;  %v2825_v63 = vsel %vm2761_vm15, %v2729_v48, %v2793_v42 }
 0x2eb   : > { %v2575_v26 = vperm.slane %v2483_v32, %v5272_v50  ;;  %v2870_v27 = vpop.xlane.xlu2 %2869  ;;  %v2862_v51 = vmul.f32 %v4144_v46, %v2825_v63 }
 0x2ec   : > { %v2574_v39 = vsel %vm1719_vm3, %v2573_v11, %v2572_v31  ;;  %v2968_v52 = vperm.slane %v2870_v27, %v5278_v60 }
 0x2ed   : > { %v2577_v3 = vsel %vm1719_vm3, %v2576_v35, %v2575_v26  ;;  %v2605_v44 = vsel %vm1778_vm9, %v2574_v39, %v2604_v16 }
 0x2ee   : > { %2887 = vadd.xlane.f32.xlu0 %v2843_v38  ;;  %v5900_v5 = vsel %vm2517_vm11, %v2605_v44, -1e+30 }
 0x2ef   : > { %2893 = vadd.xlane.f32.xlu1 %v2846_v28  ;;  %v2617_v29 = vsel %vm1791_vm14, %v5900_v5, -inf }
 0x2f0   : > { %2923 = vadd.xlane.f32.xlu2 %v2861_v36 }
 0x2f1   : > { %v2487_v7 = vpop.xlane.xlu0 %2486 }
 0x2f2   : > { %v2489_v49 = vpop.xlane.xlu1 %2488  ;;  %v2578_v45 = vperm.slane %v2487_v7, %v5272_v50 }
 0x2f3   : > { %v2579_v24 = vperm.slane %v2489_v49, %v5278_v60  ;;  %v2900_v55 = vpop.xlane.xlu2 %2899 }
 0x2f4   : > { %v2991_v26 = vperm.slane %v2900_v55, %v5272_v50 }
 0x2f5   : > { %v2580_v62 = vsel %vm1719_vm3, %v2579_v24, %v2578_v45 }
 0x2f6   : > { %v2606_v23 = vsel %vm1766_vm7, %v2580_v62, %v2577_v3  ;;  %2921 = vadd.xlane.f32.xlu0 %v2860_v33 }
 0x2f7   : > { %2618 = vmax.xlane.f32.xlu1 %v2617_v29 }
 0x2f9   : > { %v2866_v6 = vpop.xlane.xlu0 %2865 }
 0x2fa   : > { %v2868_v47 = vpop.xlane.xlu1 %2867  ;;  %v2965_v15 = vperm.slane %v2866_v6, %v5278_v60 }
 0x2fb   : > { %v2967_v1 = vperm.slane %v2868_v47, %v5272_v50  ;;  %v2493_v25 = vpop.xlane.xlu2 %2492 }
 0x2fc   : > { %v2966_v40 = vsel %vm1719_vm3, %v2965_v15, %v2964_v61  ;;  %v2582_v19 = vperm.slane %v2493_v25, %v5278_v60 }
 0x2fd   : > { %v2969_v34 = vsel %vm1719_vm3, %v2968_v52, %v2967_v1 }
 0x2fe   : > { %v3012_v12 = vsel %vm1766_vm7, %v2969_v34, %v2966_v40  ;;  %2891 = vadd.xlane.f32.xlu0 %v2845_v2 }
 0x301   : > { %v2896_v18 = vpop.xlane.xlu0 %2895 }
 0x302   : > { %v2898_v59 = vpop.xlane.xlu1 %2897  ;;  %v2988_v13 = vperm.slane %v2896_v18, %v5272_v50 }
 0x303   : > { %v2989_v32 = vperm.slane %v2898_v59, %v5278_v60  ;;  %v2904_v11 = vpop.xlane.xlu2 %2903 }
 0x304   : > { %v2994_v55 = vperm.slane %v2904_v11, %v5272_v50 }
 0x305   : > { %v2990_v31 = vsel %vm1719_vm3, %v2989_v32, %v2988_v13 }
 0x306   : > { %2925 = vadd.xlane.f32.xlu0 %v2862_v51 }
 0x309   : > { %v2902_v35 = vpop.xlane.xlu0 %2901 }
 0x30a   : > { %v2491_v27 = vpop.xlane.xlu1 %2490  ;;  %v2992_v17 = vperm.slane %v2902_v35, %v5278_v60 }
 0x30b   : > { %v2581_v38 = vperm.slane %v2491_v27, %v5272_v50  ;;  %v2497_v3 = vpop.xlane.xlu2 %2496 }
 0x30c   : > { %v2993_v28 = vsel %vm1719_vm3, %v2992_v17, %v2991_v26  ;;  %v2585_v56 = vperm.slane %v2497_v3, %v5278_v60 }
 0x30d   : > { %v2583_v4 = vsel %vm1719_vm3, %v2582_v19, %v2581_v38  ;;  %v3019_v39 = vsel %vm1766_vm7, %v2993_v28, %v2990_v31 }
 0x30e   : > { %v2607_v36 = vsel %vm1768_vm8, %v2583_v4, %v2606_v23 }
 0x311   : > { %v2872_v16 = vpop.xlane.xlu0 %2871 }
 0x312   : > { %v2874_v44 = vpop.xlane.xlu1 %2873  ;;  %v2970_v7 = vperm.slane %v2872_v16, %v5272_v50 }
 0x313   : > { %v2971_v41 = vperm.slane %v2874_v44, %v5278_v60  ;;  %v2908_v10 = vpop.xlane.xlu2 %2907 }
 0x314   : > { %v2997_v34 = vperm.slane %v2908_v10, %v5272_v50 }
 0x315   : > { %v2972_v49 = vsel %vm1719_vm3, %v2971_v41, %v2970_v7 }
 0x316   : > { %v3013_v45 = vsel %vm1768_vm8, %v2972_v49, %v3012_v12 }
 0x319   : > { %v2906_v24 = vpop.xlane.xlu0 %2905 }
 0x31a   : > { %v2495_v33 = vpop.xlane.xlu1 %2494  ;;  %v2995_v62 = vperm.slane %v2906_v24, %v5278_v60 }
 0x31b   : > { %v2584_v23 = vperm.slane %v2495_v33, %v5272_v50  ;;  %v2501_v29 = vpop.xlane.xlu2 %2500 }
 0x31c   : > { %v2996_v6 = vsel %vm1719_vm3, %v2995_v62, %v2994_v55  ;;  %v2588_v49 = vperm.slane %v2501_v29, %v5278_v60 }
 0x31d   : > { %v2586_v37 = vsel %vm1719_vm3, %v2585_v56, %v2584_v23  ;;  %v3020_v48 = vsel %vm1768_vm8, %v2996_v6, %v3019_v39 }
 0x31e   : > { %v2608_v61 = vsel %vm1770_vm12, %v2586_v37, %v2607_v36  ;;  %v5970_v37 = vld [vmem:[#allocation5 + $0x28] sm:$0xff] }
 0x31f   : > { %vm2518_vm7 = vcmp.gt.f32.partialorder %v5970_v37, 0.0 }
 0x321   : > { %v2876_v47 = vpop.xlane.xlu0 %2875 }
 0x322   : > { %v2878_v15 = vpop.xlane.xlu1 %2877  ;;  %v2973_v52 = vperm.slane %v2876_v47, %v5272_v50 }
 0x323   : > { %v2974_v1 = vperm.slane %v2878_v15, %v5278_v60  ;;  %v2912_v25 = vpop.xlane.xlu2 %2911 }
 0x324   : > { %v3000_v31 = vperm.slane %v2912_v25, %v5272_v50 }
 0x325   : > { %v2975_v40 = vsel %vm1719_vm3, %v2974_v1, %v2973_v52 }
 0x326   : > { %v5945_v46 = vsel %vm1770_vm12, %v2975_v40, %v3013_v45 }
 0x329   : > { %v2910_v2 = vpop.xlane.xlu0 %2909 }
 0x32a   : > { %v2499_v42 = vpop.xlane.xlu1 %2498  ;;  %v2998_v12 = vperm.slane %v2910_v2, %v5278_v60 }
 0x32b   : > { %v2505_v18 = vpop.xlane.xlu2 %2504  ;;  %v2587_v41 = vperm.slane %v2499_v42, %v5272_v50 }
 0x32c   : > { %v2999_v63 = vsel %vm1719_vm3, %v2998_v12, %v2997_v34  ;;  %v2591_v24 = vperm.slane %v2505_v18, %v5278_v60 }
 0x32d   : > { %v3021_v59 = vsel %vm1770_vm12, %v2999_v63, %v3020_v48  ;;  %v2589_v55 = vsel %vm1719_vm3, %v2588_v49, %v2587_v41 }
 0x32e   : > { %v2609_v29 = vsel %vm1772_vm0, %v2589_v55, %v2608_v61 }
 0x331   : > { %v2880_v13 = vpop.xlane.xlu0 %2879 }
 0x332   : > { %v2882_v32 = vpop.xlane.xlu1 %2881 }
 0x333   : > { %v2916_v11 = vpop.xlane.xlu2 %2915 }
 0x334   : > { %v3003_v15 = vperm.slane %v2916_v11, %v5272_v50 }
 0x339   : > { %v2914_v51 = vpop.xlane.xlu0 %2913 }
 0x33a   : > { %v2503_v35 = vpop.xlane.xlu1 %2502  ;;  %v3001_v26 = vperm.slane %v2914_v51, %v5278_v60 }
 0x33b   : > { %v2509_v27 = vpop.xlane.xlu2 %2508  ;;  %v2590_v10 = vperm.slane %v2503_v35, %v5272_v50  ;;  %v2976_v35 = vperm.slane %v2880_v13, %v5272_v50  ;;  %v5998_v13 = vld [vmem:[#allocation5 + $0x30] sm:$0xff] }
 0x33c   : > { %v3002_v17 = vsel %vm1719_vm3, %v3001_v26, %v3000_v31  ;;  %v2594_v33 = vperm.slane %v2509_v27, %v5278_v60  ;;  %v2977_v31 = vperm.slane %v2882_v32, %v5278_v60  ;;  %vm2930_vm8 = vcmp.gt.f32.partialorder %v5998_v13, 0.0 }
 0x33d   : > { %v3022_v19 = vsel %vm1772_vm0, %v3002_v17, %v3021_v59  ;;  %v2592_v56 = vsel %vm1719_vm3, %v2591_v24, %v2590_v10 }
 0x33e   : > { %v2610_v25 = vsel %vm1774_vm5, %v2592_v56, %v2609_v29 }
 0x341   : > { %v2884_v38 = vpop.xlane.xlu0 %2883 }
 0x342   : > { %v2886_v3 = vpop.xlane.xlu1 %2885 }
 0x343   : > { %v5955_v28 = vpop.xlane.xlu2 %1793  ;;  %v2980_v17 = vperm.slane %v2886_v3, %v5278_v60 }
 0x349   : > { %v2918_v4 = vpop.xlane.xlu0 %2917 }
 0x34a   : > { %v2507_v39 = vpop.xlane.xlu1 %2506  ;;  %v3004_v23 = vperm.slane %v2918_v4, %v5278_v60  ;;  %v2979_v4 = vperm.slane %v2884_v38, %v5272_v50  ;;  %v1798_v38 = vsub.f32 %v5748_v57, %v5955_v28 }
 0x34b   : > { %v5957_v36 = vpop.xlane.xlu2 %2205  ;;  %v2593_v45 = vperm.slane %v2507_v39, %v5272_v50 }
 0x34c   : > { %v3005_v40 = vsel %vm1719_vm3, %v3004_v23, %v3003_v15  ;;  %v2981_v32 = vsel %vm1719_vm3, %v2980_v17, %v2979_v4  ;;  %v1800_v28 = vmul.f32 1.442695, %v1798_v38  ;;  %v6019_v15 = vld [vmem:[#allocation5 + $0x38] sm:$0xff] }
 0x34d   : > { %v2595_v48 = vsel %vm1719_vm3, %v2594_v33, %v2593_v45  ;;  %v3023_v63 = vsel %vm1774_vm5, %v3005_v40, %v3022_v19  ;;  %v2978_v19 = vsel %vm1719_vm3, %v2977_v31, %v2976_v35  ;;  %vm2931_vm12 = vcmp.gt.f32.partialorder %v6019_v15, 0.0 }
 0x34e   : > { %v2611_v34 = vsel %vm1776_vm6, %v2595_v48, %v2610_v25  ;;  %v3015_v3 = vsel %vm1772_vm0, %v2978_v19, %v5945_v46 }
 0x34f   : > { %v3016_v24 = vsel %vm1774_vm5, %v2981_v32, %v3015_v3 }
 0x351   : > { %v1797_v16 = vpop.xlane.xlu0 %1796 }
 0x352   : > { %v2890_v44 = vpop.xlane.xlu1 %2889  ;;  %v1799_v26 = vsub.f32 %v5842_v8, %v1797_v16 }
 0x353   : > { %v5959_v7 = vpop.xlane.xlu2 %2919  ;;  %v2983_v10 = vperm.slane %v2890_v44, %v5278_v60 }
 0x354   : > { %v1802_v49 = vmul.f32 1.442695, %v1799_v26 }
 0x359   : > { %v2209_v62 = vpop.xlane.xlu0 %2208 }
 0x35a   : > { %v2511_v6 = vpop.xlane.xlu1 %2510  ;;  %v2211_v44 = vsub.f32 %v5865_v54, %v2209_v62  ;;  %v3006_v54 = vperm.slane %v5959_v7, %v5272_v50 }
 0x35b   : > { %v2513_v47 = vpop.xlane.xlu2 %2512  ;;  %v2596_v52 = vperm.slane %v2511_v6, %v5272_v50 }
 0x35c   : > { %v2597_v1 = vperm.slane %v2513_v47, %v5278_v60  ;;  %v2214_v62 = vmul.f32 1.442695, %v2211_v44 }
 0x35e   : > { %v2598_v2 = vsel %vm1719_vm3, %v2597_v1, %v2596_v52 }
 0x35f   : > { %v2612_v42 = vsel %vm1778_vm9, %v2598_v2, %v2611_v34 }
 0x360   : > { %v5983_v12 = vsel %vm2518_vm7, %v2612_v42, -1e+30 }
 0x361   : > { %v2888_v61 = vpop.xlane.xlu0 %2887  ;;  %v2620_v18 = vsel %vm1791_vm14, %v5983_v12, -inf }
 0x362   : > { %v2894_v59 = vpop.xlane.xlu1 %2893  ;;  %2621 = vmax.xlane.f32.xlu2 %v2620_v18  ;;  %v2982_v39 = vperm.slane %v2888_v61, %v5272_v50 }
 0x363   : > { %v2986_v16 = vperm.slane %v2894_v59, %v5278_v60  ;;  %v2924_v48 = vpop.xlane.xlu2 %2923 }
 0x364   : > { %v2984_v8 = vsel %vm1719_vm3, %v2983_v10, %v2982_v39  ;;  %v3009_v7 = vperm.slane %v2924_v48, %v5272_v50 }
 0x365   : > { %v3017_v33 = vsel %vm1776_vm6, %v2984_v8, %v3016_v24 }
 0x369   : > { %v2922_v11 = vpop.xlane.xlu0 %2921 }
 0x36a   : > { %v2619_v51 = vpop.xlane.xlu1 %2618  ;;  %v3007_v46 = vperm.slane %v2922_v11, %v5278_v60 }
 0x36b   : > { %v2623_v27 = vsub.f32 %v5900_v5, %v2619_v51 }
 0x36c   : > { %v3008_v1 = vsel %vm1719_vm3, %v3007_v46, %v3006_v54 }
 0x36d   : > { %v2625_v41 = vmul.f32 1.442695, %v2623_v27  ;;  %v3024_v42 = vsel %vm1776_vm6, %v3008_v1, %v3023_v63 }
 0x36f   : > { %4110 = vpow2.f32 %v2625_v41 }
 0x370   : > { %4112 = vpow2.f32 %v1802_v49 }
 0x371   : > { %v2892_v5 = vpop.xlane.xlu0 %2891  ;;  %4114 = vpow2.f32 %v1800_v28 }
 0x372   : > { %v2985_v45 = vperm.slane %v2892_v5, %v5272_v50  ;;  %4116 = vpow2.f32 %v2214_v62 }
 0x374   : > { %v2987_v55 = vsel %vm1719_vm3, %v2986_v16, %v2985_v45 }
 0x375   : > { %v4111_v56 = vpop.eup %4110  ;;  %v3018_v57 = vsel %vm1778_vm9, %v2987_v55, %v3017_v33 }
 0x376   : > { %v2629_v23 = vmul.f32 %v4111_v56, %v5889_v30  ;;  %v3028_v6 = vsel %vm2930_vm8, %v3018_v57, -1e+30  ;;  %v4113_v52 = vpop.eup %4112  ;;  %v2210_v30 = vsub.f32 %v5787_v22, %v5957_v36 }
 0x377   : > { %v3030_v47 = vsel %vm1791_vm14, %v3028_v6, -inf  ;;  %v1805_v2 = vmul.f32 %v4113_v52, %v5801_v53  ;;  %v4115_v22 = vpop.eup %4114 }
 0x378   : > { %v2631_v29 = vsel %vm1791_vm14, %v2629_v23, 0.0  ;;  %3031 = vmax.xlane.f32.xlu0 %v3030_v47  ;;  %v2212_v18 = vmul.f32 1.442695, %v2210_v30  ;;  %v1804_v36 = vmul.f32 %v4115_v22, %v5708_v43 }
 0x379   : > { %2632 = vadd.xlane.f32.xlu2 %v2631_v29  ;;  %v2926_v25 = vpop.xlane.xlu0 %2925  ;;  %v1809_v50 = vsel %vm1791_vm14, %v1805_v2, 0.0 }
 0x37a   : > { %v3010_v40 = vperm.slane %v2926_v25, %v5278_v60  ;;  %v4117_v60 = vpop.eup %4116  ;;  %4118 = vpow2.f32 %v2212_v18  ;;  %v1806_v63 = vsel %vm1791_vm14, %v1804_v36, 0.0 }
 0x37b   : > { %v6035_v53 = vmul.f32 %v4117_v60, %v5850_v20 }
 0x37c   : > { %v3011_v34 = vsel %vm1719_vm3, %v3010_v40, %v3009_v7 }
 0x37d   : > { %v3025_v61 = vsel %vm1778_vm9, %v3011_v34, %v3024_v42  ;;  %v2221_v31 = vsel %vm1791_vm14, %v6035_v53, 0.0 }
 0x37e   : > { %v3029_v59 = vsel %vm2931_vm12, %v3025_v61, -1e+30 }
 0x37f   : > { %v3033_v11 = vsel %vm1791_vm14, %v3029_v59, -inf }
 0x380   : > { %3034 = vmax.xlane.f32.xlu1 %v3033_v11  ;;  %v4119_v51 = vpop.eup %4118 }
 0x381   : > { %1810 = vadd.xlane.f32.xlu2 %v1809_v50  ;;  %v6041_v35 = vmul.f32 %v4119_v51, %v5750_v0 }
 0x383   : > { %v2218_v26 = vsel %vm1791_vm14, %v6041_v35, 0.0 }
 0x388   : > { %1807 = vadd.xlane.f32.xlu1 %v1806_v63 }
 0x389   : > { %2222 = vadd.xlane.f32.xlu2 %v2221_v31 }
 0x390   : > { %2219 = vadd.xlane.f32.xlu1 %v2218_v26 }
 0x3d5   : > { %v2622_v27 = vpop.xlane.xlu2 %2621 }
 0x3d6   : > { %v2624_v43 = vsub.f32 %v5983_v12, %v2622_v27 }
 0x3d8   : > { %v2627_v20 = vmul.f32 1.442695, %v2624_v43 }
 0x3da   : > { %4120 = vpow2.f32 %v2627_v20 }
 0x3e0   : > { %v4121_v17 = vpop.eup %4120 }
 0x3e1   : > { %v6047_v4 = vmul.f32 %v4121_v17, %v5970_v37 }
 0x3e3   : > { %v2634_v39 = vsel %vm1791_vm14, %v6047_v4, 0.0 }
 0x3e4   : > { %2635 = vadd.xlane.f32.xlu0 %v2634_v39 }
 0x3eb   : > { %v3032_v41 = vpop.xlane.xlu0 %3031 }
 0x3ec   : > { %v2633_v0 = vpop.xlane.xlu2 %2632  ;;  %v3036_v19 = vsub.f32 %v3028_v6, %v3032_v41 }
 0x3ed   : > { %4122 = vrcp.f32 %v2633_v0  ;;  %vm2639_vm3 = vcmp.gt.f32.partialorder %v2633_v0, 0.0 }
 0x3ee   : > { %v3038_v10 = vmul.f32 1.442695, %v3036_v19 }
 0x3f0   : > { %4124 = vpow2.f32 %v3038_v10 }
 0x3f3   : > { %v4123_v49 = vpop.eup %4122  ;;  %v3035_v12 = vpop.xlane.xlu1 %3034 }
 0x3f4   : > { %v2641_v32 = vsel %vm2639_vm3, %v4123_v49, 0.0  ;;  %v1811_v8 = vpop.xlane.xlu2 %1810  ;;  %v3037_v5 = vsub.f32 %v3029_v59, %v3035_v12 }
 0x3f5   : > { %v2643_v3 = vmul.f32 %v2641_v32, %v2629_v23  ;;  %4126 = vrcp.f32 %v1811_v8  ;;  %vm1815_vm0 = vcmp.gt.f32.partialorder %v1811_v8, 0.0 }
 0x3f6   : > { %v4125_v37 = vpop.eup %4124  ;;  %v3040_v38 = vmul.f32 1.442695, %v3037_v5 }
 0x3f7   : > { %v2645_v16 = vsel %vm1791_vm14, %v2643_v3, 0.0  ;;  %v3042_v45 = vmul.f32 %v4125_v37, %v5998_v13 }
 0x3f8   : > { %3842 = vst [vmem:[%s6054_s5 + $0x20] sm:$0xff] %v2645_v16  ;;  %4128 = vpow2.f32 %v3040_v38 }
 0x3f9   : > { %v3044_v44 = vsel %vm1791_vm14, %v3042_v45, 0.0 }
 0x3fa   : > { %3045 = vadd.xlane.f32.xlu1 %v3044_v44 }
 0x3fb   : > { %v4127_v24 = vpop.eup %4126  ;;  %v1808_v55 = vpop.xlane.xlu1 %1807 }
 0x3fc   : > { %v1817_v33 = vsel %vm1815_vm0, %v4127_v24, 0.0  ;;  %v2223_v56 = vpop.xlane.xlu2 %2222  ;;  %4130 = vrcp.f32 %v1808_v55  ;;  %vm1814_vm5 = vcmp.gt.f32.partialorder %v1808_v55, 0.0 }
 0x3fd   : > { %v1819_v46 = vmul.f32 %v1817_v33, %v1805_v2  ;;  %4132 = vrcp.f32 %v2223_v56  ;;  %vm2227_vm6 = vcmp.gt.f32.partialorder %v2223_v56, 0.0 }
 0x3fe   : > { %v4129_v57 = vpop.eup %4128 }
 0x3ff   : > { %v1821_v13 = vsel %vm1791_vm14, %v1819_v46, 0.0  ;;  %v3043_v28 = vmul.f32 %v4129_v57, %v6019_v15 }
 0x400   : > { %1823 = vst [vmem:[%s6054_s5 + $0x8] sm:$0xff] %v1821_v13 }
 0x401   : > { %v3047_v23 = vsel %vm1791_vm14, %v3043_v28, 0.0 }
 0x402   : > { %v4131_v6 = vpop.eup %4130  ;;  %3048 = vadd.xlane.f32.xlu2 %v3047_v23 }
 0x403   : > { %v4133_v54 = vpop.eup %4132  ;;  %v1816_v62 = vsel %vm1814_vm5, %v4131_v6, 0.0  ;;  %v2220_v48 = vpop.xlane.xlu1 %2219 }
 0x404   : > { %v2229_v47 = vsel %vm2227_vm6, %v4133_v54, 0.0  ;;  %v1818_v29 = vmul.f32 %v1816_v62, %v1804_v36  ;;  %4134 = vrcp.f32 %v2220_v48  ;;  %vm2226_vm9 = vcmp.gt.f32.partialorder %v2220_v48, 0.0 }
 0x405   : > { %v2231_v52 = vmul.f32 %v2229_v47, %v6035_v53 }
 0x406   : > { %v1820_v15 = vsel %vm1791_vm14, %v1818_v29, 0.0 }
 0x407   : > { %v2233_v1 = vsel %vm1791_vm14, %v2231_v52, 0.0  ;;  %1822 = vst [vmem:[%s6054_s5] sm:$0xff] %v1820_v15 }
 0x408   : > { %3840 = vst [vmem:[%s6054_s5 + $0x18] sm:$0xff] %v2233_v1 }
 0x40a   : > { %v4135_v25 = vpop.eup %4134 }
 0x40b   : > { %v2228_v30 = vsel %vm2226_vm9, %v4135_v25, 0.0 }
 0x40c   : > { %v2230_v7 = vmul.f32 %v2228_v30, %v6041_v35 }
 0x40e   : > { %v2232_v40 = vsel %vm1791_vm14, %v2230_v7, 0.0 }
 0x40f   : > { %3839 = vst [vmem:[%s6054_s5 + $0x10] sm:$0xff] %v2232_v40 }
 0x457   : > { %v2636_v2 = vpop.xlane.xlu0 %2635 }
 0x458   : > { %4136 = vrcp.f32 %v2636_v2  ;;  %vm2640_vm1 = vcmp.gt.f32.partialorder %v2636_v2, 0.0 }
 0x45e   : > { %v4137_v34 = vpop.eup %4136 }
 0x45f   : > { %v2642_v42 = vsel %vm2640_vm1, %v4137_v34, 0.0 }
 0x460   : > { %v2644_v61 = vmul.f32 %v2642_v42, %v6047_v4 }
 0x462   : > { %v2646_v18 = vsel %vm1791_vm14, %v2644_v61, 0.0 }
 0x463   : > { %3843 = vst [vmem:[%s6054_s5 + $0x28] sm:$0xff] %v2646_v18 }
 0x46d   : > { %v3046_v59 = vpop.xlane.xlu1 %3045 }
 0x46e   : > { %4138 = vrcp.f32 %v3046_v59  ;;  %vm3052_vm2 = vcmp.gt.f32.partialorder %v3046_v59, 0.0 }
 0x474   : > { %v4139_v11 = vpop.eup %4138 }
 0x475   : > { %v3054_v22 = vsel %vm3052_vm2, %v4139_v11, 0.0  ;;  %v3049_v50 = vpop.xlane.xlu2 %3048 }
 0x476   : > { %v3056_v60 = vmul.f32 %v3054_v22, %v3042_v45  ;;  %4140 = vrcp.f32 %v3049_v50  ;;  %vm3053_vm4 = vcmp.gt.f32.partialorder %v3049_v50, 0.0 }
 0x478   : > { %v3058_v36 = vsel %vm1791_vm14, %v3056_v60, 0.0 }
 0x479   : > { %3845 = vst [vmem:[%s6054_s5 + $0x30] sm:$0xff] %v3058_v36 }
 0x47c   : > { %v4141_v53 = vpop.eup %4140 }
 0x47d   : > { %v3055_v63 = vsel %vm3053_vm4, %v4141_v53, 0.0  ;;  %3066 = sbr.rel (%p3847_p13) target bundleno = 1576 (0x628), region = 120 }
 0x47e   : > { %v3057_v51 = vmul.f32 %v3055_v63, %v3043_v28 }
 0x480   : > { %v3059_v31 = vsel %vm1791_vm14, %v3057_v51, 0.0 }
 0x481   : > { %3846 = vst [vmem:[%s6054_s5 + $0x38] sm:$0xff] %v3059_v31 }
 0x482   : > { %v3068_v35 = vpack.c.bf16 %v5130_v14, %v5120_v9  ;;  %v3092_v26 = vpack.c.bf16 %v5195_v21, %v5186_v58  ;;  %v3067_v27 = vpack.c.bf16 %v2231_v52, %v2230_v7  ;;  %v3091_v43 = vpack.c.bf16 %v3057_v51, %v3056_v60  ;;  %v3973_v20 = vld [vmem:[#allocation15 + $0x38] sm:$0xff]  ;;  %v3972_v17 = vld [vmem:[#allocation15 + $0x30] sm:$0xff]  ;;  %v3971_v4 = vld [vmem:[#allocation15 + $0x28] sm:$0xff] }
 0x483   : > { %3205 = vmatpush.bf16.msra.mxu3 %v3973_v20  ;;  %v3970_v9 = vld [vmem:[#allocation15 + $0x20] sm:$0xff]  ;;  %v3969_v58 = vld [vmem:[#allocation15 + $0x18] sm:$0xff]  ;;  %v3968_v0 = vld [vmem:[#allocation15 + $0x10] sm:$0xff] }
 0x484   : > { %3084 = vmatpush.bf16.msra.mxu0 %v3068_v35  ;;  %3108 = vmatpush.bf16.msra.mxu1 %v3092_v26  ;;  %v4145_v21 = vld [vmem:[%s5000_s22 + $0x1] ss:$0 sm:$0xff]  ;;  %v4146_v41 = vld [vmem:[%s5000_s22 + $0x3] ss:$0 sm:$0xff]  ;;  %v3967_v32 = vld [vmem:[#allocation15 + $0x8] sm:$0xff] }
 0x485   : > { %v3117_v38 = vld [vmem:[#allocation14] sm:$0xff]  ;;  %v3966_v44 = vld [vmem:[#allocation15] sm:$0xff] }
 0x486   : > { %v3118_v45 = vpack.c.bf16 %v3117_v38, %v3117_v38  ;;  %v4147_v56 = vld [vmem:[%s6238_s14] ss:$0 sm:$0xff] }
 0x487   : > { %3849 = vmatmul.msk.bf16.vlgmr.msra.gmra.mxu0 %vm1791_vm14, %v3067_v27  ;;  %3851 = vmatmul.msk.bf16.vlgmr.msra.gmra.mxu1 %vm1791_vm14, %v3091_v43 }
 0x488   : > { %3206 = vmatpush.bf16.msra.mxu3 %v3972_v17 }
 0x48c   : > { %3207 = vmatpush.bf16.msra.mxu3 %v3971_v4 }
 0x490   : > { %3208 = vmatpush.bf16.msra.mxu3 %v3970_v9 }
 0x494   : > { %3209 = vmatpush.bf16.msra.mxu3 %v3969_v58 }
 0x498   : > { %3210 = vmatpush.bf16.msra.mxu3 %v3968_v0 }
 0x49c   : > { %3211 = vmatpush.bf16.msra.mxu3 %v3967_v32 }
 0x4a0   : > { %3212 = vmatpush.bf16.msra.mxu3 %v3966_v44 }
 0x504   : > { %v3086_v14 = vpop.f32.mrf.mxu0  ;;  %v3110_v39 = vpop.f32.mrf.mxu1 }
 0x505   : > { %v3087_v19 = vadd.f32 %v4145_v21, %v3086_v14  ;;  %v3111_v10 = vadd.f32 %v4146_v41, %v3110_v39 }
 0x507   : > { %v3115_v3 = vadd.f32 %v3111_v10, %v3087_v19 }
 0x50c   : > { %v3088_v49 = vpop.f32.mrf.mxu0  ;;  %v3112_v12 = vpop.f32.mrf.mxu1 }
 0x50d   : > { %v3089_v8 = vadd.f32 %v4145_v21, %v3088_v49  ;;  %v3113_v5 = vadd.f32 %v4146_v41, %v3112_v12 }
 0x50f   : > { %v3116_v37 = vadd.f32 %v3113_v5, %v3089_v8 }
 0x511   : > { %v3119_v16 = vpack.c.bf16 %v3116_v37, %v3115_v3 }
 0x513   : > { %3130 = vmatpush.bf16.msra.mxu2 %v3119_v16 }
 0x516   : > { %3852 = vmatmul.msk.bf16.vlgmr.msra.gmra.mxu2 %vm1791_vm14, %v3118_v45 }
 0x599   : > { %v3132_v24 = vpop.f32.mrf.mxu2 }
 0x59a   : > { %v3136_v55 = vpack.c.bf16 %v3132_v24, %v3132_v24 }
 0x59c   : > { %3213 = vmatmul.bf16.vlgmr.msra.gmra.mxu3 %v3136_v55 }
 0x5a1   : > { %v3134_v33 = vpop.f32.mrf.mxu2 }
 0x61f   : > { %v3214_v46 = vpop.f32.mrf.mxu3 }
 0x620   : > { %v3215_v57 = vadd.f32 %v4147_v56, %v3214_v46 }
 0x622   : > { %3218 = vst [vmem:[%s6079_s0] sm:$0xff] %v3215_v57 }
 0x627   : > { %v3216_v13 = vpop.f32.mrf.mxu3 }
 0x628 PF: > { %s6239_s15 = sld [smem:[#allocation30_spill]]  ;;  %s3237_s13 = sshll.u32 %s6079_s0, 4  ;;  %s3238_s13 = int_to_ptr.vmem [resolvable:$true] %s3237_s13 }
 0x629   : > { %s6241_s24 = sld [smem:[#allocation44_spill]]  ;;  %s3220_s29 = scalar_lea.sflag [#allocation4], %s4958_s9 }
 0x62e   : > { %s3887_s17 = sshll.u32 %s6239_s15, 3 }
 0x62f   : > { %s3235_s12 = scalar_lea.hbm %s6241_s24, %s3887_s17  ;;  %s4498_s20 = scalar_lea.hbm %s6241_s24, 16 }
 0x630   : > { %s3239_s4 = sshll.u32 %s3235_s12, 4  ;;  %s3240_s4 = int_to_ptr.hbm [resolvable:$true] %s3239_s4 }
 0x631   : > { %s4492_s21 = sshra.s32 %s3240_s4, 4  ;;  %s4493_s21 = int_to_ptr.hbm [resolvable:$true] %s4492_s21 }
 0x632   : > { %s4494_s3 = scalar_lea.hbm %s4493_s21, 8  ;;  %p4499_p7 = scmp.lt.s32.totalorder %s4493_s21, %s6241_s24 }
 0x633   : > { %p4495_p0 = scmp.ne.s32.totalorder %s4493_s21, %s4494_s3  ;;  %p4500_p1 = scmp.lt.s32.totalorder %s4498_s20, %s4494_s3 }
 0x635   : > { %p4496_p3 = pnand %p4495_p0, %p4760_p5  ;;  %p4501_p11 = por %p4500_p1, %p4499_p7 }
 0x637   : > { %p4497_p12 = pneg %p4496_p3 }
 0x639   : > { %p4502_p4 = pnand %p4501_p11, %p4497_p12 }
 0x63b   : > { %4505 = shalt.err (!%p4502_p4)
}
 0x63c   : > { %4006 = dma.vmem_to_hbm [thread:$0]  (%p4760_p5), %s3238_s13, 128, %s3240_s4, %s3220_s29  }
 0x63d   : > { %s3975_s22 = sshll.u32 %s6239_s15, 6  ;;  %s3252_s0 = sshll.u32 %s6054_s5, 4  ;;  %s3253_s0 = int_to_ptr.vmem [resolvable:$true] %s3252_s0 }
 0x63e   : > { %s6242_s14 = sld [smem:[#allocation45_spill]]  ;;  %s3225_s30 = scalar_lea.sflag [#allocation19], %s4958_s9 }
 0x644   : > { %s3251_s17 = scalar_lea.hbm %s6242_s14, %s3975_s22  ;;  %s4526_s15 = scalar_lea.hbm %s6242_s14, 128 }
 0x645   : > { %s3254_s25 = sshll.u32 %s3251_s17, 4  ;;  %s3255_s25 = int_to_ptr.hbm [resolvable:$true] %s3254_s25 }
 0x646   : > { %s4520_s12 = sshra.s32 %s3255_s25, 4  ;;  %s4521_s12 = int_to_ptr.hbm [resolvable:$true] %s4520_s12 }
 0x647   : > { %s4522_s21 = scalar_lea.hbm %s4521_s12, 64  ;;  %p4527_p10 = scmp.lt.s32.totalorder %s4521_s12, %s6242_s14 }
 0x648   : > { %p4523_p8 = scmp.ne.s32.totalorder %s4521_s12, %s4522_s21  ;;  %p4528_p13 = scmp.lt.s32.totalorder %s4526_s15, %s4522_s21 }
 0x64a   : > { %p4524_p2 = pnand %p4523_p8, %p4760_p5  ;;  %p4529_p0 = por %p4528_p13, %p4527_p10 }
 0x64c   : > { %p4525_p9 = pneg %p4524_p2 }
 0x64e   : > { %p4530_p3 = pnand %p4529_p0, %p4525_p9 }
 0x650   : > { %4533 = shalt.err (!%p4530_p3)
}
 0x651   : > { %s4604_s9 = smov 128   ;;  %s4605_s4 = smov 8  }
 0x652   : > { %4007 = dma.vmem_to_hbm [thread:$0]  (%p4760_p5), %s3253_s0, 1024, %s3255_s25, %s3225_s30, %s4604_s9, %s4604_s9, %s4605_s4  }
 0x653 PF: > { %s6243_s29 = sld [smem:[#allocation27_spill]]  ;;  %p6245_p12 = scmp.ge.s32.totalorder %s4592_s16, 2 }
 0x655   : > { %p4046_p7 = pnand %p6245_p12, %p4716_p6 }
 0x657   : > { %p4047_p1 = pneg %p4046_p7 }
 0x659   : > { %s3269_s20 = sand.u32 1, %s6243_s29  }
 0x65a   : > { %s3270_s28 = scalar_lea.sflag [#allocation4], %s3269_s20 }
 0x65b   : > { %4571 = dma.done.wait (%p4047_p1), %s3270_s28, 128  }
 0x65c   : > { %4573 = vsyncadd (%p4047_p1), %s3270_s28, 4294967168  ;;  %s3280_s23 = scalar_lea.sflag [#allocation19], %s3269_s20 }
 0x65d   : > { %4575 = dma.done.wait (%p4047_p1), %s3280_s23, 1024  }
 0x65e   : > { %4577 = vsyncadd (%p4047_p1), %s3280_s23, 4294966272  ;;  %s6246_s16 = sld [smem:[#allocation34_spill]] }
 0x65f   : > { %s6247_s29 = sld [smem:[#allocation28_spill]] }
 0x660   : > { %s6248_s30 = sld [smem:[#allocation29_spill]] }
 0x661   : > { %s6249_s15 = sld [smem:[#allocation35_spill]] }
 0x664   : > { %p31_p5 = scmp.ge.s32.totalorder %s6246_s16, 4  }
 0x666   :  { %33 = sbr.rel (!%p31_p5) target bundleno = 18 (0x12), region = 235 }
 0x66b   :  { %3286 = vsyncpa [#allocation3], 1 }
 0x66c   :  { %3288 = vsyncpa [#allocation3 + $0x1], 1 }
 0x66d   :  { %3289 = vsyncpa [#allocation6], 1 }
 0x66e   :  { %3290 = vsyncpa [#allocation16], 1 }
 0x66f   :  { %3291 = vsyncpa [#allocation4], 1 }
 0x670   :  { %3293 = vsyncpa [#allocation4 + $0x1], 1 }
 0x671   :  { %3294 = vsyncpa [#allocation19], 1 }
 0x672   :  { %3296 = vsyncpa [#allocation19 + $0x1], 1 }

</bundles_post_ra>
